<compile_context>
chip_gen: v5e
topology: v5e:2x2
jax: 0.10.0
libtpu: 0.0.40
codegen_flags: <defaults>
</compile_context>

<pallas_src>
import math
import functools

import jax
import jax.numpy as jnp
from jax.experimental import pallas as pl
from jax.experimental.pallas import tpu as pltpu


# ----------------------------------------------------------------------------
# Fused kernel: all encoder layers + mean pool + classifier for ONE batch row
# ----------------------------------------------------------------------------
def _layer_norm(x, gamma, beta, eps=1e-5):
    mean = jnp.mean(x, axis=-1, keepdims=True)
    xc = x - mean
    var = jnp.mean(xc * xc, axis=-1, keepdims=True)
    return xc * jax.lax.rsqrt(var + eps) * gamma + beta


def _encoder_kernel(x_ref, pool_ref,
                    wqkv_ref, bqkv_ref, wo_ref, bo_ref,
                    ln1g_ref, ln1b_ref,
                    w1_ref, b1_ref, w2_ref, b2_ref,
                    ln2g_ref, ln2b_ref,
                    wc1_ref, bc1_ref, wc2_ref, bc2_ref,
                    out_ref, *, num_layers, num_heads):
    H = num_heads
    S, E = x_ref.shape[1], x_ref.shape[2]
    hd = E // H
    scale = 1.0 / math.sqrt(hd)

    x = x_ref[0]                                    # (S, E) f32 residual stream

    for l in range(num_layers):
        # ---- multi-head self-attention: heads on a leading batch axis -------
        xb = jnp.broadcast_to(x.astype(jnp.bfloat16)[None], (3 * H, S, E))
        qkv = jnp.einsum('gse,ged->gsd', xb, wqkv_ref[l],
                         preferred_element_type=jnp.float32) + bqkv_ref[l]
        qh = qkv[:H].astype(jnp.bfloat16)           # (H, S, hd) free array slice
        kh = qkv[H:2 * H].astype(jnp.bfloat16)
        vh = qkv[2 * H:].astype(jnp.bfloat16)

        s = jnp.einsum('hqd,hkd->hqk', qh, kh,
                       preferred_element_type=jnp.float32) * scale
        s = s - jnp.max(s, axis=-1, keepdims=True)
        p = jnp.exp(s)
        # approx reciprocal: EUP slot, ~1e-3 rel. err (fine for classification)
        p = p * pl.reciprocal(jnp.sum(p, axis=-1, keepdims=True), approx=True)
        ctx = jnp.einsum('hqk,hkd->hqd', p.astype(jnp.bfloat16), vh,
                         preferred_element_type=jnp.float32)       # (H, S, hd)

        attn = jnp.einsum('hsd,hde->hse', ctx.astype(jnp.bfloat16), wo_ref[l],
                          preferred_element_type=jnp.float32)      # (H, S, E)
        attn = jnp.sum(attn, axis=0) + bo_ref[l]                   # (S, E)
        x = _layer_norm(x + attn, ln1g_ref[l], ln1b_ref[l])

        # ---- position-wise feed-forward (relu) ------------------------------
        h1 = jnp.maximum(
            jnp.dot(x.astype(jnp.bfloat16), w1_ref[l],
                    preferred_element_type=jnp.float32) + b1_ref[l], 0.0)
        y = jnp.dot(h1.astype(jnp.bfloat16), w2_ref[l],
                    preferred_element_type=jnp.float32) + b2_ref[l]
        x = _layer_norm(x + y, ln2g_ref[l], ln2b_ref[l])

    # ---- mean pooling as one MXU op, sublane-padded to 8 rows ---------------
    pooled = jnp.dot(pool_ref[...], x, preferred_element_type=jnp.float32)  # (8, E)

    # ---- classifier (lane-dense 128-wide padded logits) ---------------------
    c1 = jnp.maximum(
        jnp.dot(pooled.astype(jnp.bfloat16), wc1_ref[...],
                preferred_element_type=jnp.float32) + bc1_ref[...], 0.0)
    logits = jnp.dot(c1.astype(jnp.bfloat16), wc2_ref[...],
                     preferred_element_type=jnp.float32) + bc2_ref[...]     # (8, 128)
    out_ref[...] = logits[None].astype(out_ref.dtype)


# ----------------------------------------------------------------------------
# Forward pass wrapper (embedding gather + positional encoding are JAX glue)
# ----------------------------------------------------------------------------
def sentiment_transformer_forward(params, input_ids, *, num_heads, num_classes):
    table = params["embedding"]
    E = table.shape[1]
    B, S = input_ids.shape
    L = params["wqkv"].shape[0]

    # Embedding lookup (gather) + sqrt(E) scaling + positional encoding.
    # TODO(synk): fuse the gather into the kernel (scalar-prefetch input_ids +
    # VMEM-resident table) once B*S is large enough for the round-trip to matter.
    emb = jnp.take(table, input_ids, axis=0) * math.sqrt(E)        # (B, S, E)
    emb = emb + params["pe"][:S][None, :, :]
    x = emb.astype(jnp.float32)

    # mean-pool matrix padded to 8 sublane rows (row 0 = 1/S, rest zero)
    pool = jnp.zeros((8, S), jnp.float32).at[0, :].set(1.0 / S)

    kernel = functools.partial(_encoder_kernel, num_layers=L,
                               num_heads=num_heads)

    def const_spec(arr):
        zeros = (0,) * arr.ndim
        return pl.BlockSpec(arr.shape, lambda b, z=zeros: z)

    weights = (params["wqkv"], params["bqkv"], params["wo"], params["bo"],
               params["ln1g"], params["ln1b"],
               params["w1"], params["b1"], params["w2"], params["b2"],
               params["ln2g"], params["ln2b"],
               params["wc1"], params["bc1"], params["wc2"], params["bc2"])

    in_specs = ([pl.BlockSpec((1, S, E), lambda b: (b, 0, 0)),
                 const_spec(pool)]
                + [const_spec(w) for w in weights])

    # TODO(synk): for production-size configs (E>=256, F=4E, L>=6) move the
    # layer axis into the grid (weight index_map lambda l: (l, ...)) and set
    # pltpu.CompilerParams(vmem_limit_bytes=...) so weight DMA pipelines
    # instead of being held fully resident.
    out = pl.pallas_call(
        kernel,
        out_shape=jax.ShapeDtypeStruct((B, 8, 128), jnp.float32),
        grid=(B,),
        in_specs=in_specs,
        out_specs=pl.BlockSpec((1, 8, 128), lambda b: (b, 0, 0)),
        compiler_params=pltpu.CompilerParams(
            dimension_semantics=("parallel",)),
    )(x, pool, *weights)

    # row 0 of each grid step's 8-row sublane pad holds the real logits
    return out[:, 0, :num_classes]


# ----------------------------------------------------------------------------
# Deterministic parameter init (shapes follow the PyTorch module; attention
# weights are stored head-major and matmul weights in bfloat16)
# ----------------------------------------------------------------------------
def init_params(key, vocab_size, embed_dim, num_classes, num_heads, num_layers,
                dim_feedforward, max_seq_len):
    E, F, L, C, H = embed_dim, dim_feedforward, num_layers, num_classes, num_heads
    hd = E // H
    keys = iter(jax.random.split(key, 16))

    def dense(shape, fan_in, fan_out, dtype=jnp.bfloat16):
        limit = math.sqrt(6.0 / (fan_in + fan_out))                # xavier-uniform
        w = jax.random.uniform(next(keys), shape, jnp.float32, -limit, limit)
        return w.astype(dtype)

    params = {}
    params["embedding"] = (jax.random.normal(next(keys), (vocab_size, E),
                                             jnp.float32) * 0.1)

    # Positional encoding table (max_seq_len, E): sin on even, cos on odd cols.
    pos = jnp.arange(max_seq_len, dtype=jnp.float32)[:, None]
    div = jnp.exp(jnp.arange(0, E, 2, dtype=jnp.float32)
                  * (-math.log(10000.0) / E))
    pe = jnp.zeros((max_seq_len, E), jnp.float32)
    pe = pe.at[:, 0::2].set(jnp.sin(pos * div))
    pe = pe.at[:, 1::2].set(jnp.cos(pos * div))
    params["pe"] = pe

    # Head-major attention weights: heads on a leading array axis so in-kernel
    # head slices are free leading-axis slices (no lane-offset relayouts).
    params["wqkv"] = dense((L, 3 * H, E, hd), E, 3 * E)            # q|k|v stacked
    params["bqkv"] = jnp.zeros((L, 3 * H, 1, hd), jnp.float32)
    params["wo"] = dense((L, H, hd, E), E, E)                      # out_proj^T
    params["bo"] = jnp.zeros((L, 1, E), jnp.float32)
    params["ln1g"] = jnp.ones((L, 1, E), jnp.float32)
    params["ln1b"] = jnp.zeros((L, 1, E), jnp.float32)
    params["w1"] = dense((L, E, F), E, F)                          # linear1^T
    params["b1"] = jnp.zeros((L, 1, F), jnp.float32)
    params["w2"] = dense((L, F, E), F, E)                          # linear2^T
    params["b2"] = jnp.zeros((L, 1, E), jnp.float32)
    params["ln2g"] = jnp.ones((L, 1, E), jnp.float32)
    params["ln2b"] = jnp.zeros((L, 1, E), jnp.float32)

    # Classifier: Linear(E, E//2) -> ReLU -> Linear(E//2, C); logits weight/bias
    # padded to 128 lanes (extra columns zero; wrapper slices the first C).
    params["wc1"] = dense((E, E // 2), E, E // 2)
    params["bc1"] = jnp.zeros((1, E // 2), jnp.float32)
    wc2 = dense((E // 2, C), E // 2, C, dtype=jnp.float32)
    params["wc2"] = jnp.pad(wc2, ((0, 0), (0, 128 - C))).astype(jnp.bfloat16)
    params["bc2"] = jnp.zeros((1, 128), jnp.float32)
    return params


if __name__ == "__main__":
    vocab_size, embed_dim = 100, 64
    num_classes, num_layers, num_heads = 3, 2, 8
    dim_feedforward = 128
    B, S = 2, 8
    assert embed_dim % num_heads == 0

    key = jax.random.PRNGKey(0)
    k_param, k_ids = jax.random.split(key)
    params = init_params(k_param, vocab_size, embed_dim, num_classes,
                         num_heads, num_layers, dim_feedforward,
                         max_seq_len=64)
    input_ids = jax.random.randint(k_ids, (B, S), 0, vocab_size,
                                   dtype=jnp.int32)

    logits = sentiment_transformer_forward(params, input_ids,
                                           num_heads=num_heads,
                                           num_classes=num_classes)
    logits = jax.block_until_ready(logits)

    assert logits.shape == (B, num_classes)
    assert bool(jnp.all(jnp.isfinite(logits)))
    print("KERNEL_OK")
</pallas_src>

<mosaic_0001>
module attributes {stable_mosaic.version = 11 : i64} {
  func.func @_encoder_kernel(%arg0: i32, %arg1: memref<1x8x64xf32, #tpu.memory_space<vmem>>, %arg2: memref<8x8xf32, #tpu.memory_space<vmem>>, %arg3: memref<2x24x64x8xbf16, #tpu.memory_space<vmem>>, %arg4: memref<2x24x1x8xf32, #tpu.memory_space<vmem>>, %arg5: memref<2x8x8x64xbf16, #tpu.memory_space<vmem>>, %arg6: memref<2x1x64xf32, #tpu.memory_space<vmem>>, %arg7: memref<2x1x64xf32, #tpu.memory_space<vmem>>, %arg8: memref<2x1x64xf32, #tpu.memory_space<vmem>>, %arg9: memref<2x64x128xbf16, #tpu.memory_space<vmem>>, %arg10: memref<2x1x128xf32, #tpu.memory_space<vmem>>, %arg11: memref<2x128x64xbf16, #tpu.memory_space<vmem>>, %arg12: memref<2x1x64xf32, #tpu.memory_space<vmem>>, %arg13: memref<2x1x64xf32, #tpu.memory_space<vmem>>, %arg14: memref<2x1x64xf32, #tpu.memory_space<vmem>>, %arg15: memref<64x32xbf16, #tpu.memory_space<vmem>>, %arg16: memref<1x32xf32, #tpu.memory_space<vmem>>, %arg17: memref<32x128xbf16, #tpu.memory_space<vmem>>, %arg18: memref<1x128xf32, #tpu.memory_space<vmem>>, %arg19: memref<1x8x128xf32, #tpu.memory_space<vmem>>) attributes {dimension_semantics = [#tpu.dimension_semantics<parallel>], iteration_bounds = array<i64: 2>, scalar_prefetch = 0 : i64, scratch_operands = 0 : i64, tpu.core_type = #tpu.core_type<tc>, window_params = [{transform_indices = @transform_0, window_bounds = array<i64: 1, 8, 64>}, {pipeline_mode = #tpu.pipeline_mode<synchronous>, transform_indices = @transform_1, window_bounds = array<i64: 8, 8>}, {pipeline_mode = #tpu.pipeline_mode<synchronous>, transform_indices = @transform_2, window_bounds = array<i64: 2, 24, 64, 8>}, {pipeline_mode = #tpu.pipeline_mode<synchronous>, transform_indices = @transform_3, window_bounds = array<i64: 2, 24, 1, 8>}, {pipeline_mode = #tpu.pipeline_mode<synchronous>, transform_indices = @transform_4, window_bounds = array<i64: 2, 8, 8, 64>}, {pipeline_mode = #tpu.pipeline_mode<synchronous>, transform_indices = @transform_5, window_bounds = array<i64: 2, 1, 64>}, {pipeline_mode = #tpu.pipeline_mode<synchronous>, transform_indices = @transform_6, window_bounds = array<i64: 2, 1, 64>}, {pipeline_mode = #tpu.pipeline_mode<synchronous>, transform_indices = @transform_7, window_bounds = array<i64: 2, 1, 64>}, {pipeline_mode = #tpu.pipeline_mode<synchronous>, transform_indices = @transform_8, window_bounds = array<i64: 2, 64, 128>}, {pipeline_mode = #tpu.pipeline_mode<synchronous>, transform_indices = @transform_9, window_bounds = array<i64: 2, 1, 128>}, {pipeline_mode = #tpu.pipeline_mode<synchronous>, transform_indices = @transform_10, window_bounds = array<i64: 2, 128, 64>}, {pipeline_mode = #tpu.pipeline_mode<synchronous>, transform_indices = @transform_11, window_bounds = array<i64: 2, 1, 64>}, {pipeline_mode = #tpu.pipeline_mode<synchronous>, transform_indices = @transform_12, window_bounds = array<i64: 2, 1, 64>}, {pipeline_mode = #tpu.pipeline_mode<synchronous>, transform_indices = @transform_13, window_bounds = array<i64: 2, 1, 64>}, {pipeline_mode = #tpu.pipeline_mode<synchronous>, transform_indices = @transform_14, window_bounds = array<i64: 64, 32>}, {pipeline_mode = #tpu.pipeline_mode<synchronous>, transform_indices = @transform_15, window_bounds = array<i64: 1, 32>}, {pipeline_mode = #tpu.pipeline_mode<synchronous>, transform_indices = @transform_16, window_bounds = array<i64: 32, 128>}, {pipeline_mode = #tpu.pipeline_mode<synchronous>, transform_indices = @transform_17, window_bounds = array<i64: 1, 128>}, {transform_indices = @transform_18, window_bounds = array<i64: 1, 8, 128>}]} {
    %c0 = arith.constant 0 : index
    %c0_0 = arith.constant 0 : index
    %c0_1 = arith.constant 0 : index
    %0 = vector.load %arg1[%c0, %c0_0, %c0_1] : memref<1x8x64xf32, #tpu.memory_space<vmem>>, vector<1x8x64xf32>
    %1 = vector.shape_cast %0 : vector<1x8x64xf32> to vector<8x64xf32>
    %2 = arith.truncf %1 : vector<8x64xf32> to vector<8x64xbf16>
    %3 = vector.shape_cast %2 : vector<8x64xbf16> to vector<1x8x64xbf16>
    %4 = vector.shape_cast %3 : vector<1x8x64xbf16> to vector<1x8x64xbf16>
    %5 = vector.broadcast %4 : vector<1x8x64xbf16> to vector<24x8x64xbf16>
    %c0_2 = arith.constant 0 : index
    %c0_3 = arith.constant 0 : index
    %c0_4 = arith.constant 0 : index
    %c0_5 = arith.constant 0 : index
    %6 = vector.load %arg3[%c0_2, %c0_3, %c0_4, %c0_5] : memref<2x24x64x8xbf16, #tpu.memory_space<vmem>>, vector<1x24x64x8xbf16>
    %7 = vector.shape_cast %6 : vector<1x24x64x8xbf16> to vector<24x64x8xbf16>
    "tpu.trace_start"() <{level = 10 : i32, message = "gse,ged->gsd"}> : () -> ()
    %cst = arith.constant dense<0.000000e+00> : vector<24x8x8xf32>
    %8 = tpu.matmul %5, %7, %cst {dimension_numbers = #tpu.dot_dimension_numbers<[2], [1], [1], [2], [0, 0, 0, 1, 1, 2], [0], [0]>} : vector<24x8x64xbf16>, vector<24x64x8xbf16>, vector<24x8x8xf32> -> vector<24x8x8xf32>
    "tpu.trace_stop"() : () -> ()
    %c0_6 = arith.constant 0 : index
    %c0_7 = arith.constant 0 : index
    %c0_8 = arith.constant 0 : index
    %c0_9 = arith.constant 0 : index
    %9 = vector.load %arg4[%c0_6, %c0_7, %c0_8, %c0_9] : memref<2x24x1x8xf32, #tpu.memory_space<vmem>>, vector<1x24x1x8xf32>
    %10 = vector.shape_cast %9 : vector<1x24x1x8xf32> to vector<24x1x8xf32>
    %11 = vector.broadcast %10 : vector<24x1x8xf32> to vector<24x8x8xf32>
    %12 = arith.addf %8, %11 : vector<24x8x8xf32>
    %13 = vector.extract_strided_slice %12 {offsets = [0, 0, 0], sizes = [8, 8, 8], strides = [1, 1, 1]} : vector<24x8x8xf32> to vector<8x8x8xf32>
    %14 = arith.truncf %13 : vector<8x8x8xf32> to vector<8x8x8xbf16>
    %15 = vector.extract_strided_slice %12 {offsets = [8, 0, 0], sizes = [8, 8, 8], strides = [1, 1, 1]} : vector<24x8x8xf32> to vector<8x8x8xf32>
    %16 = arith.truncf %15 : vector<8x8x8xf32> to vector<8x8x8xbf16>
    %17 = vector.extract_strided_slice %12 {offsets = [16, 0, 0], sizes = [8, 8, 8], strides = [1, 1, 1]} : vector<24x8x8xf32> to vector<8x8x8xf32>
    %18 = arith.truncf %17 : vector<8x8x8xf32> to vector<8x8x8xbf16>
    "tpu.trace_start"() <{level = 10 : i32, message = "hqd,hkd->hqk"}> : () -> ()
    %cst_10 = arith.constant dense<0.000000e+00> : vector<8x8x8xf32>
    %19 = tpu.matmul %14, %16, %cst_10 {dimension_numbers = #tpu.dot_dimension_numbers<[2], [2], [1], [1], [0, 0, 0, 1, 1, 1], [0], [0]>} : vector<8x8x8xbf16>, vector<8x8x8xbf16>, vector<8x8x8xf32> -> vector<8x8x8xf32>
    "tpu.trace_stop"() : () -> ()
    %cst_11 = arith.constant 0.353553385 : f32
    %20 = vector.broadcast %cst_11 : f32 to vector<8x8x8xf32>
    %21 = arith.mulf %19, %20 : vector<8x8x8xf32>
    %cst_12 = arith.constant dense<0xFF800000> : vector<8x8xf32>
    %22 = vector.multi_reduction <maximumf>, %21, %cst_12 [2] : vector<8x8x8xf32> to vector<8x8xf32>
    %23 = vector.shape_cast %22 : vector<8x8xf32> to vector<8x8x1xf32>
    %24 = vector.broadcast %23 : vector<8x8x1xf32> to vector<8x8x8xf32>
    %25 = arith.subf %21, %24 : vector<8x8x8xf32>
    %26 = math.exp %25 : vector<8x8x8xf32>
    %cst_13 = arith.constant dense<0.000000e+00> : vector<8x8xf32>
    %27 = vector.multi_reduction <add>, %26, %cst_13 [2] : vector<8x8x8xf32> to vector<8x8xf32>
    %28 = vector.shape_cast %27 : vector<8x8xf32> to vector<8x8x1xf32>
    %29 = tpu.reciprocal %28 {approx = true} : vector<8x8x1xf32> -> vector<8x8x1xf32>
    %30 = vector.broadcast %29 : vector<8x8x1xf32> to vector<8x8x8xf32>
    %31 = arith.mulf %26, %30 : vector<8x8x8xf32>
    %32 = arith.truncf %31 : vector<8x8x8xf32> to vector<8x8x8xbf16>
    "tpu.trace_start"() <{level = 10 : i32, message = "hqk,hkd->hqd"}> : () -> ()
    %cst_14 = arith.constant dense<0.000000e+00> : vector<8x8x8xf32>
    %33 = tpu.matmul %32, %18, %cst_14 {dimension_numbers = #tpu.dot_dimension_numbers<[2], [1], [1], [2], [0, 0, 0, 1, 1, 2], [0], [0]>} : vector<8x8x8xbf16>, vector<8x8x8xbf16>, vector<8x8x8xf32> -> vector<8x8x8xf32>
    "tpu.trace_stop"() : () -> ()
    %34 = arith.truncf %33 : vector<8x8x8xf32> to vector<8x8x8xbf16>
    %c0_15 = arith.constant 0 : index
    %c0_16 = arith.constant 0 : index
    %c0_17 = arith.constant 0 : index
    %c0_18 = arith.constant 0 : index
    %35 = vector.load %arg5[%c0_15, %c0_16, %c0_17, %c0_18] : memref<2x8x8x64xbf16, #tpu.memory_space<vmem>>, vector<1x8x8x64xbf16>
    %36 = vector.shape_cast %35 : vector<1x8x8x64xbf16> to vector<8x8x64xbf16>
    "tpu.trace_start"() <{level = 10 : i32, message = "hsd,hde->hse"}> : () -> ()
    %cst_19 = arith.constant dense<0.000000e+00> : vector<8x8x64xf32>
    %37 = tpu.matmul %34, %36, %cst_19 {dimension_numbers = #tpu.dot_dimension_numbers<[2], [1], [1], [2], [0, 0, 0, 1, 1, 2], [0], [0]>} : vector<8x8x8xbf16>, vector<8x8x64xbf16>, vector<8x8x64xf32> -> vector<8x8x64xf32>
    "tpu.trace_stop"() : () -> ()
    %cst_20 = arith.constant dense<0.000000e+00> : vector<8x64xf32>
    %38 = vector.multi_reduction <add>, %37, %cst_20 [0] : vector<8x8x64xf32> to vector<8x64xf32>
    %c0_21 = arith.constant 0 : index
    %c0_22 = arith.constant 0 : index
    %c0_23 = arith.constant 0 : index
    %39 = vector.load %arg6[%c0_21, %c0_22, %c0_23] : memref<2x1x64xf32, #tpu.memory_space<vmem>>, vector<1x1x64xf32>
    %40 = vector.shape_cast %39 : vector<1x1x64xf32> to vector<1x64xf32>
    %41 = vector.broadcast %40 : vector<1x64xf32> to vector<8x64xf32>
    %42 = arith.addf %38, %41 : vector<8x64xf32>
    %43 = arith.addf %1, %42 : vector<8x64xf32>
    %c0_24 = arith.constant 0 : index
    %c0_25 = arith.constant 0 : index
    %c0_26 = arith.constant 0 : index
    %44 = vector.load %arg7[%c0_24, %c0_25, %c0_26] : memref<2x1x64xf32, #tpu.memory_space<vmem>>, vector<1x1x64xf32>
    %45 = vector.shape_cast %44 : vector<1x1x64xf32> to vector<1x64xf32>
    %c0_27 = arith.constant 0 : index
    %c0_28 = arith.constant 0 : index
    %c0_29 = arith.constant 0 : index
    %46 = vector.load %arg8[%c0_27, %c0_28, %c0_29] : memref<2x1x64xf32, #tpu.memory_space<vmem>>, vector<1x1x64xf32>
    %47 = vector.shape_cast %46 : vector<1x1x64xf32> to vector<1x64xf32>
    %cst_30 = arith.constant dense<0.000000e+00> : vector<8xf32>
    %48 = vector.multi_reduction <add>, %43, %cst_30 [1] : vector<8x64xf32> to vector<8xf32>
    %49 = vector.shape_cast %48 : vector<8xf32> to vector<8x1xf32>
    %cst_31 = arith.constant 6.400000e+01 : f32
    %50 = vector.broadcast %cst_31 : f32 to vector<8x1xf32>
    %51 = arith.divf %49, %50 : vector<8x1xf32>
    %52 = vector.broadcast %51 : vector<8x1xf32> to vector<8x64xf32>
    %53 = arith.subf %43, %52 : vector<8x64xf32>
    %54 = arith.mulf %53, %53 : vector<8x64xf32>
    %cst_32 = arith.constant dense<0.000000e+00> : vector<8xf32>
    %55 = vector.multi_reduction <add>, %54, %cst_32 [1] : vector<8x64xf32> to vector<8xf32>
    %56 = vector.shape_cast %55 : vector<8xf32> to vector<8x1xf32>
    %cst_33 = arith.constant 6.400000e+01 : f32
    %57 = vector.broadcast %cst_33 : f32 to vector<8x1xf32>
    %58 = arith.divf %56, %57 : vector<8x1xf32>
    %cst_34 = arith.constant 9.99999974E-6 : f32
    %59 = vector.broadcast %cst_34 : f32 to vector<8x1xf32>
    %60 = arith.addf %58, %59 : vector<8x1xf32>
    %61 = math.rsqrt %60 : vector<8x1xf32>
    %62 = vector.broadcast %61 : vector<8x1xf32> to vector<8x64xf32>
    %63 = arith.mulf %53, %62 : vector<8x64xf32>
    %64 = vector.broadcast %45 : vector<1x64xf32> to vector<8x64xf32>
    %65 = arith.mulf %63, %64 : vector<8x64xf32>
    %66 = vector.broadcast %47 : vector<1x64xf32> to vector<8x64xf32>
    %67 = arith.addf %65, %66 : vector<8x64xf32>
    %68 = arith.truncf %67 : vector<8x64xf32> to vector<8x64xbf16>
    %c0_35 = arith.constant 0 : index
    %c0_36 = arith.constant 0 : index
    %c0_37 = arith.constant 0 : index
    %69 = vector.load %arg9[%c0_35, %c0_36, %c0_37] : memref<2x64x128xbf16, #tpu.memory_space<vmem>>, vector<1x64x128xbf16>
    %70 = vector.shape_cast %69 : vector<1x64x128xbf16> to vector<64x128xbf16>
    %cst_38 = arith.constant dense<0.000000e+00> : vector<8x128xf32>
    %71 = tpu.matmul %68, %70, %cst_38 {dimension_numbers = #tpu.dot_dimension_numbers<[1], [0], [0], [1], [0, 0, 1, 1], [], []>} : vector<8x64xbf16>, vector<64x128xbf16>, vector<8x128xf32> -> vector<8x128xf32>
    %c0_39 = arith.constant 0 : index
    %c0_40 = arith.constant 0 : index
    %c0_41 = arith.constant 0 : index
    %72 = vector.load %arg10[%c0_39, %c0_40, %c0_41] : memref<2x1x128xf32, #tpu.memory_space<vmem>>, vector<1x1x128xf32>
    %73 = vector.shape_cast %72 : vector<1x1x128xf32> to vector<1x128xf32>
    %74 = vector.broadcast %73 : vector<1x128xf32> to vector<8x128xf32>
    %75 = arith.addf %71, %74 : vector<8x128xf32>
    %cst_42 = arith.constant 0.000000e+00 : f32
    %76 = vector.broadcast %cst_42 : f32 to vector<8x128xf32>
    %77 = arith.maximumf %75, %76 : vector<8x128xf32>
    %78 = arith.truncf %77 : vector<8x128xf32> to vector<8x128xbf16>
    %c0_43 = arith.constant 0 : index
    %c0_44 = arith.constant 0 : index
    %c0_45 = arith.constant 0 : index
    %79 = vector.load %arg11[%c0_43, %c0_44, %c0_45] : memref<2x128x64xbf16, #tpu.memory_space<vmem>>, vector<1x128x64xbf16>
    %80 = vector.shape_cast %79 : vector<1x128x64xbf16> to vector<128x64xbf16>
    %cst_46 = arith.constant dense<0.000000e+00> : vector<8x64xf32>
    %81 = tpu.matmul %78, %80, %cst_46 {dimension_numbers = #tpu.dot_dimension_numbers<[1], [0], [0], [1], [0, 0, 1, 1], [], []>} : vector<8x128xbf16>, vector<128x64xbf16>, vector<8x64xf32> -> vector<8x64xf32>
    %c0_47 = arith.constant 0 : index
    %c0_48 = arith.constant 0 : index
    %c0_49 = arith.constant 0 : index
    %82 = vector.load %arg12[%c0_47, %c0_48, %c0_49] : memref<2x1x64xf32, #tpu.memory_space<vmem>>, vector<1x1x64xf32>
    %83 = vector.shape_cast %82 : vector<1x1x64xf32> to vector<1x64xf32>
    %84 = vector.broadcast %83 : vector<1x64xf32> to vector<8x64xf32>
    %85 = arith.addf %81, %84 : vector<8x64xf32>
    %86 = arith.addf %67, %85 : vector<8x64xf32>
    %c0_50 = arith.constant 0 : index
    %c0_51 = arith.constant 0 : index
    %c0_52 = arith.constant 0 : index
    %87 = vector.load %arg13[%c0_50, %c0_51, %c0_52] : memref<2x1x64xf32, #tpu.memory_space<vmem>>, vector<1x1x64xf32>
    %88 = vector.shape_cast %87 : vector<1x1x64xf32> to vector<1x64xf32>
    %c0_53 = arith.constant 0 : index
    %c0_54 = arith.constant 0 : index
    %c0_55 = arith.constant 0 : index
    %89 = vector.load %arg14[%c0_53, %c0_54, %c0_55] : memref<2x1x64xf32, #tpu.memory_space<vmem>>, vector<1x1x64xf32>
    %90 = vector.shape_cast %89 : vector<1x1x64xf32> to vector<1x64xf32>
    %cst_56 = arith.constant dense<0.000000e+00> : vector<8xf32>
    %91 = vector.multi_reduction <add>, %86, %cst_56 [1] : vector<8x64xf32> to vector<8xf32>
    %92 = vector.shape_cast %91 : vector<8xf32> to vector<8x1xf32>
    %cst_57 = arith.constant 6.400000e+01 : f32
    %93 = vector.broadcast %cst_57 : f32 to vector<8x1xf32>
    %94 = arith.divf %92, %93 : vector<8x1xf32>
    %95 = vector.broadcast %94 : vector<8x1xf32> to vector<8x64xf32>
    %96 = arith.subf %86, %95 : vector<8x64xf32>
    %97 = arith.mulf %96, %96 : vector<8x64xf32>
    %cst_58 = arith.constant dense<0.000000e+00> : vector<8xf32>
    %98 = vector.multi_reduction <add>, %97, %cst_58 [1] : vector<8x64xf32> to vector<8xf32>
    %99 = vector.shape_cast %98 : vector<8xf32> to vector<8x1xf32>
    %cst_59 = arith.constant 6.400000e+01 : f32
    %100 = vector.broadcast %cst_59 : f32 to vector<8x1xf32>
    %101 = arith.divf %99, %100 : vector<8x1xf32>
    %cst_60 = arith.constant 9.99999974E-6 : f32
    %102 = vector.broadcast %cst_60 : f32 to vector<8x1xf32>
    %103 = arith.addf %101, %102 : vector<8x1xf32>
    %104 = math.rsqrt %103 : vector<8x1xf32>
    %105 = vector.broadcast %104 : vector<8x1xf32> to vector<8x64xf32>
    %106 = arith.mulf %96, %105 : vector<8x64xf32>
    %107 = vector.broadcast %88 : vector<1x64xf32> to vector<8x64xf32>
    %108 = arith.mulf %106, %107 : vector<8x64xf32>
    %109 = vector.broadcast %90 : vector<1x64xf32> to vector<8x64xf32>
    %110 = arith.addf %108, %109 : vector<8x64xf32>
    %111 = arith.truncf %110 : vector<8x64xf32> to vector<8x64xbf16>
    %112 = vector.shape_cast %111 : vector<8x64xbf16> to vector<1x8x64xbf16>
    %113 = vector.shape_cast %112 : vector<1x8x64xbf16> to vector<1x8x64xbf16>
    %114 = vector.broadcast %113 : vector<1x8x64xbf16> to vector<24x8x64xbf16>
    %c1 = arith.constant 1 : index
    %c0_61 = arith.constant 0 : index
    %c0_62 = arith.constant 0 : index
    %c0_63 = arith.constant 0 : index
    %115 = vector.load %arg3[%c1, %c0_61, %c0_62, %c0_63] : memref<2x24x64x8xbf16, #tpu.memory_space<vmem>>, vector<1x24x64x8xbf16>
    %116 = vector.shape_cast %115 : vector<1x24x64x8xbf16> to vector<24x64x8xbf16>
    "tpu.trace_start"() <{level = 10 : i32, message = "gse,ged->gsd"}> : () -> ()
    %cst_64 = arith.constant dense<0.000000e+00> : vector<24x8x8xf32>
    %117 = tpu.matmul %114, %116, %cst_64 {dimension_numbers = #tpu.dot_dimension_numbers<[2], [1], [1], [2], [0, 0, 0, 1, 1, 2], [0], [0]>} : vector<24x8x64xbf16>, vector<24x64x8xbf16>, vector<24x8x8xf32> -> vector<24x8x8xf32>
    "tpu.trace_stop"() : () -> ()
    %c1_65 = arith.constant 1 : index
    %c0_66 = arith.constant 0 : index
    %c0_67 = arith.constant 0 : index
    %c0_68 = arith.constant 0 : index
    %118 = vector.load %arg4[%c1_65, %c0_66, %c0_67, %c0_68] : memref<2x24x1x8xf32, #tpu.memory_space<vmem>>, vector<1x24x1x8xf32>
    %119 = vector.shape_cast %118 : vector<1x24x1x8xf32> to vector<24x1x8xf32>
    %120 = vector.broadcast %119 : vector<24x1x8xf32> to vector<24x8x8xf32>
    %121 = arith.addf %117, %120 : vector<24x8x8xf32>
    %122 = vector.extract_strided_slice %121 {offsets = [0, 0, 0], sizes = [8, 8, 8], strides = [1, 1, 1]} : vector<24x8x8xf32> to vector<8x8x8xf32>
    %123 = arith.truncf %122 : vector<8x8x8xf32> to vector<8x8x8xbf16>
    %124 = vector.extract_strided_slice %121 {offsets = [8, 0, 0], sizes = [8, 8, 8], strides = [1, 1, 1]} : vector<24x8x8xf32> to vector<8x8x8xf32>
    %125 = arith.truncf %124 : vector<8x8x8xf32> to vector<8x8x8xbf16>
    %126 = vector.extract_strided_slice %121 {offsets = [16, 0, 0], sizes = [8, 8, 8], strides = [1, 1, 1]} : vector<24x8x8xf32> to vector<8x8x8xf32>
    %127 = arith.truncf %126 : vector<8x8x8xf32> to vector<8x8x8xbf16>
    "tpu.trace_start"() <{level = 10 : i32, message = "hqd,hkd->hqk"}> : () -> ()
    %cst_69 = arith.constant dense<0.000000e+00> : vector<8x8x8xf32>
    %128 = tpu.matmul %123, %125, %cst_69 {dimension_numbers = #tpu.dot_dimension_numbers<[2], [2], [1], [1], [0, 0, 0, 1, 1, 1], [0], [0]>} : vector<8x8x8xbf16>, vector<8x8x8xbf16>, vector<8x8x8xf32> -> vector<8x8x8xf32>
    "tpu.trace_stop"() : () -> ()
    %cst_70 = arith.constant 0.353553385 : f32
    %129 = vector.broadcast %cst_70 : f32 to vector<8x8x8xf32>
    %130 = arith.mulf %128, %129 : vector<8x8x8xf32>
    %cst_71 = arith.constant dense<0xFF800000> : vector<8x8xf32>
    %131 = vector.multi_reduction <maximumf>, %130, %cst_71 [2] : vector<8x8x8xf32> to vector<8x8xf32>
    %132 = vector.shape_cast %131 : vector<8x8xf32> to vector<8x8x1xf32>
    %133 = vector.broadcast %132 : vector<8x8x1xf32> to vector<8x8x8xf32>
    %134 = arith.subf %130, %133 : vector<8x8x8xf32>
    %135 = math.exp %134 : vector<8x8x8xf32>
    %cst_72 = arith.constant dense<0.000000e+00> : vector<8x8xf32>
    %136 = vector.multi_reduction <add>, %135, %cst_72 [2] : vector<8x8x8xf32> to vector<8x8xf32>
    %137 = vector.shape_cast %136 : vector<8x8xf32> to vector<8x8x1xf32>
    %138 = tpu.reciprocal %137 {approx = true} : vector<8x8x1xf32> -> vector<8x8x1xf32>
    %139 = vector.broadcast %138 : vector<8x8x1xf32> to vector<8x8x8xf32>
    %140 = arith.mulf %135, %139 : vector<8x8x8xf32>
    %141 = arith.truncf %140 : vector<8x8x8xf32> to vector<8x8x8xbf16>
    "tpu.trace_start"() <{level = 10 : i32, message = "hqk,hkd->hqd"}> : () -> ()
    %cst_73 = arith.constant dense<0.000000e+00> : vector<8x8x8xf32>
    %142 = tpu.matmul %141, %127, %cst_73 {dimension_numbers = #tpu.dot_dimension_numbers<[2], [1], [1], [2], [0, 0, 0, 1, 1, 2], [0], [0]>} : vector<8x8x8xbf16>, vector<8x8x8xbf16>, vector<8x8x8xf32> -> vector<8x8x8xf32>
    "tpu.trace_stop"() : () -> ()
    %143 = arith.truncf %142 : vector<8x8x8xf32> to vector<8x8x8xbf16>
    %c1_74 = arith.constant 1 : index
    %c0_75 = arith.constant 0 : index
    %c0_76 = arith.constant 0 : index
    %c0_77 = arith.constant 0 : index
    %144 = vector.load %arg5[%c1_74, %c0_75, %c0_76, %c0_77] : memref<2x8x8x64xbf16, #tpu.memory_space<vmem>>, vector<1x8x8x64xbf16>
    %145 = vector.shape_cast %144 : vector<1x8x8x64xbf16> to vector<8x8x64xbf16>
    "tpu.trace_start"() <{level = 10 : i32, message = "hsd,hde->hse"}> : () -> ()
    %cst_78 = arith.constant dense<0.000000e+00> : vector<8x8x64xf32>
    %146 = tpu.matmul %143, %145, %cst_78 {dimension_numbers = #tpu.dot_dimension_numbers<[2], [1], [1], [2], [0, 0, 0, 1, 1, 2], [0], [0]>} : vector<8x8x8xbf16>, vector<8x8x64xbf16>, vector<8x8x64xf32> -> vector<8x8x64xf32>
    "tpu.trace_stop"() : () -> ()
    %cst_79 = arith.constant dense<0.000000e+00> : vector<8x64xf32>
    %147 = vector.multi_reduction <add>, %146, %cst_79 [0] : vector<8x8x64xf32> to vector<8x64xf32>
    %c1_80 = arith.constant 1 : index
    %c0_81 = arith.constant 0 : index
    %c0_82 = arith.constant 0 : index
    %148 = vector.load %arg6[%c1_80, %c0_81, %c0_82] : memref<2x1x64xf32, #tpu.memory_space<vmem>>, vector<1x1x64xf32>
    %149 = vector.shape_cast %148 : vector<1x1x64xf32> to vector<1x64xf32>
    %150 = vector.broadcast %149 : vector<1x64xf32> to vector<8x64xf32>
    %151 = arith.addf %147, %150 : vector<8x64xf32>
    %152 = arith.addf %110, %151 : vector<8x64xf32>
    %c1_83 = arith.constant 1 : index
    %c0_84 = arith.constant 0 : index
    %c0_85 = arith.constant 0 : index
    %153 = vector.load %arg7[%c1_83, %c0_84, %c0_85] : memref<2x1x64xf32, #tpu.memory_space<vmem>>, vector<1x1x64xf32>
    %154 = vector.shape_cast %153 : vector<1x1x64xf32> to vector<1x64xf32>
    %c1_86 = arith.constant 1 : index
    %c0_87 = arith.constant 0 : index
    %c0_88 = arith.constant 0 : index
    %155 = vector.load %arg8[%c1_86, %c0_87, %c0_88] : memref<2x1x64xf32, #tpu.memory_space<vmem>>, vector<1x1x64xf32>
    %156 = vector.shape_cast %155 : vector<1x1x64xf32> to vector<1x64xf32>
    %cst_89 = arith.constant dense<0.000000e+00> : vector<8xf32>
    %157 = vector.multi_reduction <add>, %152, %cst_89 [1] : vector<8x64xf32> to vector<8xf32>
    %158 = vector.shape_cast %157 : vector<8xf32> to vector<8x1xf32>
    %cst_90 = arith.constant 6.400000e+01 : f32
    %159 = vector.broadcast %cst_90 : f32 to vector<8x1xf32>
    %160 = arith.divf %158, %159 : vector<8x1xf32>
    %161 = vector.broadcast %160 : vector<8x1xf32> to vector<8x64xf32>
    %162 = arith.subf %152, %161 : vector<8x64xf32>
    %163 = arith.mulf %162, %162 : vector<8x64xf32>
    %cst_91 = arith.constant dense<0.000000e+00> : vector<8xf32>
    %164 = vector.multi_reduction <add>, %163, %cst_91 [1] : vector<8x64xf32> to vector<8xf32>
    %165 = vector.shape_cast %164 : vector<8xf32> to vector<8x1xf32>
    %cst_92 = arith.constant 6.400000e+01 : f32
    %166 = vector.broadcast %cst_92 : f32 to vector<8x1xf32>
    %167 = arith.divf %165, %166 : vector<8x1xf32>
    %cst_93 = arith.constant 9.99999974E-6 : f32
    %168 = vector.broadcast %cst_93 : f32 to vector<8x1xf32>
    %169 = arith.addf %167, %168 : vector<8x1xf32>
    %170 = math.rsqrt %169 : vector<8x1xf32>
    %171 = vector.broadcast %170 : vector<8x1xf32> to vector<8x64xf32>
    %172 = arith.mulf %162, %171 : vector<8x64xf32>
    %173 = vector.broadcast %154 : vector<1x64xf32> to vector<8x64xf32>
    %174 = arith.mulf %172, %173 : vector<8x64xf32>
    %175 = vector.broadcast %156 : vector<1x64xf32> to vector<8x64xf32>
    %176 = arith.addf %174, %175 : vector<8x64xf32>
    %177 = arith.truncf %176 : vector<8x64xf32> to vector<8x64xbf16>
    %c1_94 = arith.constant 1 : index
    %c0_95 = arith.constant 0 : index
    %c0_96 = arith.constant 0 : index
    %178 = vector.load %arg9[%c1_94, %c0_95, %c0_96] : memref<2x64x128xbf16, #tpu.memory_space<vmem>>, vector<1x64x128xbf16>
    %179 = vector.shape_cast %178 : vector<1x64x128xbf16> to vector<64x128xbf16>
    %cst_97 = arith.constant dense<0.000000e+00> : vector<8x128xf32>
    %180 = tpu.matmul %177, %179, %cst_97 {dimension_numbers = #tpu.dot_dimension_numbers<[1], [0], [0], [1], [0, 0, 1, 1], [], []>} : vector<8x64xbf16>, vector<64x128xbf16>, vector<8x128xf32> -> vector<8x128xf32>
    %c1_98 = arith.constant 1 : index
    %c0_99 = arith.constant 0 : index
    %c0_100 = arith.constant 0 : index
    %181 = vector.load %arg10[%c1_98, %c0_99, %c0_100] : memref<2x1x128xf32, #tpu.memory_space<vmem>>, vector<1x1x128xf32>
    %182 = vector.shape_cast %181 : vector<1x1x128xf32> to vector<1x128xf32>
    %183 = vector.broadcast %182 : vector<1x128xf32> to vector<8x128xf32>
    %184 = arith.addf %180, %183 : vector<8x128xf32>
    %cst_101 = arith.constant 0.000000e+00 : f32
    %185 = vector.broadcast %cst_101 : f32 to vector<8x128xf32>
    %186 = arith.maximumf %184, %185 : vector<8x128xf32>
    %187 = arith.truncf %186 : vector<8x128xf32> to vector<8x128xbf16>
    %c1_102 = arith.constant 1 : index
    %c0_103 = arith.constant 0 : index
    %c0_104 = arith.constant 0 : index
    %188 = vector.load %arg11[%c1_102, %c0_103, %c0_104] : memref<2x128x64xbf16, #tpu.memory_space<vmem>>, vector<1x128x64xbf16>
    %189 = vector.shape_cast %188 : vector<1x128x64xbf16> to vector<128x64xbf16>
    %cst_105 = arith.constant dense<0.000000e+00> : vector<8x64xf32>
    %190 = tpu.matmul %187, %189, %cst_105 {dimension_numbers = #tpu.dot_dimension_numbers<[1], [0], [0], [1], [0, 0, 1, 1], [], []>} : vector<8x128xbf16>, vector<128x64xbf16>, vector<8x64xf32> -> vector<8x64xf32>
    %c1_106 = arith.constant 1 : index
    %c0_107 = arith.constant 0 : index
    %c0_108 = arith.constant 0 : index
    %191 = vector.load %arg12[%c1_106, %c0_107, %c0_108] : memref<2x1x64xf32, #tpu.memory_space<vmem>>, vector<1x1x64xf32>
    %192 = vector.shape_cast %191 : vector<1x1x64xf32> to vector<1x64xf32>
    %193 = vector.broadcast %192 : vector<1x64xf32> to vector<8x64xf32>
    %194 = arith.addf %190, %193 : vector<8x64xf32>
    %195 = arith.addf %176, %194 : vector<8x64xf32>
    %c1_109 = arith.constant 1 : index
    %c0_110 = arith.constant 0 : index
    %c0_111 = arith.constant 0 : index
    %196 = vector.load %arg13[%c1_109, %c0_110, %c0_111] : memref<2x1x64xf32, #tpu.memory_space<vmem>>, vector<1x1x64xf32>
    %197 = vector.shape_cast %196 : vector<1x1x64xf32> to vector<1x64xf32>
    %c1_112 = arith.constant 1 : index
    %c0_113 = arith.constant 0 : index
    %c0_114 = arith.constant 0 : index
    %198 = vector.load %arg14[%c1_112, %c0_113, %c0_114] : memref<2x1x64xf32, #tpu.memory_space<vmem>>, vector<1x1x64xf32>
    %199 = vector.shape_cast %198 : vector<1x1x64xf32> to vector<1x64xf32>
    %cst_115 = arith.constant dense<0.000000e+00> : vector<8xf32>
    %200 = vector.multi_reduction <add>, %195, %cst_115 [1] : vector<8x64xf32> to vector<8xf32>
    %201 = vector.shape_cast %200 : vector<8xf32> to vector<8x1xf32>
    %cst_116 = arith.constant 6.400000e+01 : f32
    %202 = vector.broadcast %cst_116 : f32 to vector<8x1xf32>
    %203 = arith.divf %201, %202 : vector<8x1xf32>
    %204 = vector.broadcast %203 : vector<8x1xf32> to vector<8x64xf32>
    %205 = arith.subf %195, %204 : vector<8x64xf32>
    %206 = arith.mulf %205, %205 : vector<8x64xf32>
    %cst_117 = arith.constant dense<0.000000e+00> : vector<8xf32>
    %207 = vector.multi_reduction <add>, %206, %cst_117 [1] : vector<8x64xf32> to vector<8xf32>
    %208 = vector.shape_cast %207 : vector<8xf32> to vector<8x1xf32>
    %cst_118 = arith.constant 6.400000e+01 : f32
    %209 = vector.broadcast %cst_118 : f32 to vector<8x1xf32>
    %210 = arith.divf %208, %209 : vector<8x1xf32>
    %cst_119 = arith.constant 9.99999974E-6 : f32
    %211 = vector.broadcast %cst_119 : f32 to vector<8x1xf32>
    %212 = arith.addf %210, %211 : vector<8x1xf32>
    %213 = math.rsqrt %212 : vector<8x1xf32>
    %214 = vector.broadcast %213 : vector<8x1xf32> to vector<8x64xf32>
    %215 = arith.mulf %205, %214 : vector<8x64xf32>
    %216 = vector.broadcast %197 : vector<1x64xf32> to vector<8x64xf32>
    %217 = arith.mulf %215, %216 : vector<8x64xf32>
    %218 = vector.broadcast %199 : vector<1x64xf32> to vector<8x64xf32>
    %219 = arith.addf %217, %218 : vector<8x64xf32>
    %c0_120 = arith.constant 0 : index
    %c0_121 = arith.constant 0 : index
    %220 = vector.load %arg2[%c0_120, %c0_121] : memref<8x8xf32, #tpu.memory_space<vmem>>, vector<8x8xf32>
    %cst_122 = arith.constant dense<0.000000e+00> : vector<8x64xf32>
    %221 = tpu.matmul %220, %219, %cst_122 {dimension_numbers = #tpu.dot_dimension_numbers<[1], [0], [0], [1], [0, 0, 1, 1], [], []>} : vector<8x8xf32>, vector<8x64xf32>, vector<8x64xf32> -> vector<8x64xf32>
    %222 = arith.truncf %221 : vector<8x64xf32> to vector<8x64xbf16>
    %c0_123 = arith.constant 0 : index
    %c0_124 = arith.constant 0 : index
    %223 = vector.load %arg15[%c0_123, %c0_124] : memref<64x32xbf16, #tpu.memory_space<vmem>>, vector<64x32xbf16>
    %cst_125 = arith.constant dense<0.000000e+00> : vector<8x32xf32>
    %224 = tpu.matmul %222, %223, %cst_125 {dimension_numbers = #tpu.dot_dimension_numbers<[1], [0], [0], [1], [0, 0, 1, 1], [], []>} : vector<8x64xbf16>, vector<64x32xbf16>, vector<8x32xf32> -> vector<8x32xf32>
    %c0_126 = arith.constant 0 : index
    %c0_127 = arith.constant 0 : index
    %225 = vector.load %arg16[%c0_126, %c0_127] : memref<1x32xf32, #tpu.memory_space<vmem>>, vector<1x32xf32>
    %226 = vector.broadcast %225 : vector<1x32xf32> to vector<8x32xf32>
    %227 = arith.addf %224, %226 : vector<8x32xf32>
    %cst_128 = arith.constant 0.000000e+00 : f32
    %228 = vector.broadcast %cst_128 : f32 to vector<8x32xf32>
    %229 = arith.maximumf %227, %228 : vector<8x32xf32>
    %230 = arith.truncf %229 : vector<8x32xf32> to vector<8x32xbf16>
    %c0_129 = arith.constant 0 : index
    %c0_130 = arith.constant 0 : index
    %231 = vector.load %arg17[%c0_129, %c0_130] : memref<32x128xbf16, #tpu.memory_space<vmem>>, vector<32x128xbf16>
    %cst_131 = arith.constant dense<0.000000e+00> : vector<8x128xf32>
    %232 = tpu.matmul %230, %231, %cst_131 {dimension_numbers = #tpu.dot_dimension_numbers<[1], [0], [0], [1], [0, 0, 1, 1], [], []>} : vector<8x32xbf16>, vector<32x128xbf16>, vector<8x128xf32> -> vector<8x128xf32>
    %c0_132 = arith.constant 0 : index
    %c0_133 = arith.constant 0 : index
    %233 = vector.load %arg18[%c0_132, %c0_133] : memref<1x128xf32, #tpu.memory_space<vmem>>, vector<1x128xf32>
    %234 = vector.broadcast %233 : vector<1x128xf32> to vector<8x128xf32>
    %235 = arith.addf %232, %234 : vector<8x128xf32>
    %236 = vector.shape_cast %235 : vector<8x128xf32> to vector<1x8x128xf32>
    %c0_134 = arith.constant 0 : index
    %c0_135 = arith.constant 0 : index
    %c0_136 = arith.constant 0 : index
    %237 = vector.load %arg19[%c0_134, %c0_135, %c0_136] : memref<1x8x128xf32, #tpu.memory_space<vmem>>, vector<1x8x128xf32>
    tpu.vector_store %arg19[%c0_134, %c0_135, %c0_136], %236 {strides = array<i32>} : memref<1x8x128xf32, #tpu.memory_space<vmem>>, vector<1x8x128xf32>,
    return
  }
  func.func @transform_0(%arg0: i32) -> (i32, i32, i32) {
    %c0_i32 = arith.constant 0 : i32
    %c0_i32_0 = arith.constant 0 : i32
    %c0_i32_1 = arith.constant 0 : i32
    return %arg0, %c0_i32, %c0_i32_0 : i32, i32, i32
  }
  func.func @transform_1(%arg0: i32) -> (i32, i32) {
    %c0_i32 = arith.constant 0 : i32
    %c0_i32_0 = arith.constant 0 : i32
    %c0_i32_1 = arith.constant 0 : i32
    return %c0_i32, %c0_i32_0 : i32, i32
  }
  func.func @transform_2(%arg0: i32) -> (i32, i32, i32, i32) {
    %c0_i32 = arith.constant 0 : i32
    %c0_i32_0 = arith.constant 0 : i32
    %c0_i32_1 = arith.constant 0 : i32
    %c0_i32_2 = arith.constant 0 : i32
    %c0_i32_3 = arith.constant 0 : i32
    return %c0_i32, %c0_i32_0, %c0_i32_1, %c0_i32_2 : i32, i32, i32, i32
  }
  func.func @transform_3(%arg0: i32) -> (i32, i32, i32, i32) {
    %c0_i32 = arith.constant 0 : i32
    %c0_i32_0 = arith.constant 0 : i32
    %c0_i32_1 = arith.constant 0 : i32
    %c0_i32_2 = arith.constant 0 : i32
    %c0_i32_3 = arith.constant 0 : i32
    return %c0_i32, %c0_i32_0, %c0_i32_1, %c0_i32_2 : i32, i32, i32, i32
  }
  func.func @transform_4(%arg0: i32) -> (i32, i32, i32, i32) {
    %c0_i32 = arith.constant 0 : i32
    %c0_i32_0 = arith.constant 0 : i32
    %c0_i32_1 = arith.constant 0 : i32
    %c0_i32_2 = arith.constant 0 : i32
    %c0_i32_3 = arith.constant 0 : i32
    return %c0_i32, %c0_i32_0, %c0_i32_1, %c0_i32_2 : i32, i32, i32, i32
  }
  func.func @transform_5(%arg0: i32) -> (i32, i32, i32) {
    %c0_i32 = arith.constant 0 : i32
    %c0_i32_0 = arith.constant 0 : i32
    %c0_i32_1 = arith.constant 0 : i32
    %c0_i32_2 = arith.constant 0 : i32
    return %c0_i32, %c0_i32_0, %c0_i32_1 : i32, i32, i32
  }
  func.func @transform_6(%arg0: i32) -> (i32, i32, i32) {
    %c0_i32 = arith.constant 0 : i32
    %c0_i32_0 = arith.constant 0 : i32
    %c0_i32_1 = arith.constant 0 : i32
    %c0_i32_2 = arith.constant 0 : i32
    return %c0_i32, %c0_i32_0, %c0_i32_1 : i32, i32, i32
  }
  func.func @transform_7(%arg0: i32) -> (i32, i32, i32) {
    %c0_i32 = arith.constant 0 : i32
    %c0_i32_0 = arith.constant 0 : i32
    %c0_i32_1 = arith.constant 0 : i32
    %c0_i32_2 = arith.constant 0 : i32
    return %c0_i32, %c0_i32_0, %c0_i32_1 : i32, i32, i32
  }
  func.func @transform_8(%arg0: i32) -> (i32, i32, i32) {
    %c0_i32 = arith.constant 0 : i32
    %c0_i32_0 = arith.constant 0 : i32
    %c0_i32_1 = arith.constant 0 : i32
    %c0_i32_2 = arith.constant 0 : i32
    return %c0_i32, %c0_i32_0, %c0_i32_1 : i32, i32, i32
  }
  func.func @transform_9(%arg0: i32) -> (i32, i32, i32) {
    %c0_i32 = arith.constant 0 : i32
    %c0_i32_0 = arith.constant 0 : i32
    %c0_i32_1 = arith.constant 0 : i32
    %c0_i32_2 = arith.constant 0 : i32
    return %c0_i32, %c0_i32_0, %c0_i32_1 : i32, i32, i32
  }
  func.func @transform_10(%arg0: i32) -> (i32, i32, i32) {
    %c0_i32 = arith.constant 0 : i32
    %c0_i32_0 = arith.constant 0 : i32
    %c0_i32_1 = arith.constant 0 : i32
    %c0_i32_2 = arith.constant 0 : i32
    return %c0_i32, %c0_i32_0, %c0_i32_1 : i32, i32, i32
  }
  func.func @transform_11(%arg0: i32) -> (i32, i32, i32) {
    %c0_i32 = arith.constant 0 : i32
    %c0_i32_0 = arith.constant 0 : i32
    %c0_i32_1 = arith.constant 0 : i32
    %c0_i32_2 = arith.constant 0 : i32
    return %c0_i32, %c0_i32_0, %c0_i32_1 : i32, i32, i32
  }
  func.func @transform_12(%arg0: i32) -> (i32, i32, i32) {
    %c0_i32 = arith.constant 0 : i32
    %c0_i32_0 = arith.constant 0 : i32
    %c0_i32_1 = arith.constant 0 : i32
    %c0_i32_2 = arith.constant 0 : i32
    return %c0_i32, %c0_i32_0, %c0_i32_1 : i32, i32, i32
  }
  func.func @transform_13(%arg0: i32) -> (i32, i32, i32) {
    %c0_i32 = arith.constant 0 : i32
    %c0_i32_0 = arith.constant 0 : i32
    %c0_i32_1 = arith.constant 0 : i32
    %c0_i32_2 = arith.constant 0 : i32
    return %c0_i32, %c0_i32_0, %c0_i32_1 : i32, i32, i32
  }
  func.func @transform_14(%arg0: i32) -> (i32, i32) {
    %c0_i32 = arith.constant 0 : i32
    %c0_i32_0 = arith.constant 0 : i32
    %c0_i32_1 = arith.constant 0 : i32
    return %c0_i32, %c0_i32_0 : i32, i32
  }
  func.func @transform_15(%arg0: i32) -> (i32, i32) {
    %c0_i32 = arith.constant 0 : i32
    %c0_i32_0 = arith.constant 0 : i32
    %c0_i32_1 = arith.constant 0 : i32
    return %c0_i32, %c0_i32_0 : i32, i32
  }
  func.func @transform_16(%arg0: i32) -> (i32, i32) {
    %c0_i32 = arith.constant 0 : i32
    %c0_i32_0 = arith.constant 0 : i32
    %c0_i32_1 = arith.constant 0 : i32
    return %c0_i32, %c0_i32_0 : i32, i32
  }
  func.func @transform_17(%arg0: i32) -> (i32, i32) {
    %c0_i32 = arith.constant 0 : i32
    %c0_i32_0 = arith.constant 0 : i32
    %c0_i32_1 = arith.constant 0 : i32
    return %c0_i32, %c0_i32_0 : i32, i32
  }
  func.func @transform_18(%arg0: i32) -> (i32, i32, i32) {
    %c0_i32 = arith.constant 0 : i32
    %c0_i32_0 = arith.constant 0 : i32
    %c0_i32_1 = arith.constant 0 : i32
    return %arg0, %c0_i32, %c0_i32_0 : i32, i32, i32
  }
}

</mosaic_0001>

<bundles_post_ra>
// kernel: tpu_custom_call.1
= control target key start
LH: loop header
LB: loop body
LE: loop exit
PB: predicated region body
PF: predicated region fallthrough
CT: control target
= control target key end

     0   :  { %s7904_s0 = inlined_call_operand.vmem [shape: f32[2,8,64], index: 0, kind: input, shape index: {}]   ;;  %s7905_s1 = inlined_call_operand.vmem [shape: f32[8,8], index: 1, kind: input, shape index: {}]   ;;  %s7906_s2 = inlined_call_operand.vmem [shape: bf16[2,24,64,8], index: 2, kind: input, shape index: {}]   ;;  %s7907_s3 = inlined_call_operand.vmem [shape: f32[2,24,1,8], index: 3, kind: input, shape index: {}]   ;;  %s7908_s4 = inlined_call_operand.vmem [shape: bf16[2,8,8,64], index: 4, kind: input, shape index: {}]   ;;  %s7909_s5 = inlined_call_operand.vmem [shape: f32[2,1,64], index: 5, kind: input, shape index: {}]   ;;  %s7910_s6 = inlined_call_operand.vmem [shape: f32[2,1,64], index: 6, kind: input, shape index: {}]   ;;  %s7911_s7 = inlined_call_operand.vmem [shape: f32[2,1,64], index: 7, kind: input, shape index: {}]   ;;  %s7912_s8 = inlined_call_operand.vmem [shape: bf16[2,64,128], index: 8, kind: input, shape index: {}]   ;;  %s7913_s9 = inlined_call_operand.vmem [shape: f32[2,1,128], index: 9, kind: input, shape index: {}]   ;;  %s7914_s10 = inlined_call_operand.vmem [shape: bf16[2,128,64], index: 10, kind: input, shape index: {}]   ;;  %s7915_s11 = inlined_call_operand.vmem [shape: f32[2,1,64], index: 11, kind: input, shape index: {}]   ;;  %s7916_s12 = inlined_call_operand.vmem [shape: f32[2,1,64], index: 12, kind: input, shape index: {}]   ;;  %s7917_s13 = inlined_call_operand.vmem [shape: f32[2,1,64], index: 13, kind: input, shape index: {}]   ;;  %s7918_s14 = inlined_call_operand.vmem [shape: bf16[64,32], index: 14, kind: input, shape index: {}]   ;;  %s7919_s15 = inlined_call_operand.vmem [shape: f32[1,32], index: 15, kind: input, shape index: {}]   ;;  %s7920_s16 = inlined_call_operand.vmem [shape: bf16[32,128], index: 16, kind: input, shape index: {}]   ;;  %s7921_s17 = inlined_call_operand.vmem [shape: f32[1,128], index: 17, kind: input, shape index: {}]   ;;  %s7922_s18 = inlined_call_operand.hbm [shape: f32[2,8,128], index: 18, kind: output, shape index: {}]  }
   0x1   :  { %7932 = sst [smem:[#allocation12_spill]] %s7904_s0 }
   0x2   :  { %7933 = sst [smem:[#allocation13_spill]] %s7905_s1 }
   0x3   :  { %7934 = sst [smem:[#allocation14_spill]] %s7906_s2 }
   0x4   :  { %7935 = sst [smem:[#allocation15_spill]] %s7907_s3 }
   0x5   :  { %7936 = sst [smem:[#allocation16_spill]] %s7908_s4 }
   0x6   :  { %7937 = sst [smem:[#allocation17_spill]] %s7921_s17 }
   0x7   :  { %23 = vsyncpa [#allocation3], 0 }
   0x8   :  { %25 = vsyncpa [#allocation3 + $0x1], 0  ;;  %s6606_s27 = smov 0   ;;  %s6608_s28 = smov 0  }
   0x9   :  { %s6610_s29 = smov 0   ;;  %s6612_s30 = smov 0  }
   0xa LB: > { %7938 = sst [smem:[#allocation5_spill]] %s6496_s27  ;;  %s6627_s0 = sadd.s32 4294967295, %s6508_s30   ;;  %s6508_s30 = sphi %s6612_s30, %s7957_s30   ;;  %s6504_s29 = sphi %s6610_s29, %s7959_s29   ;;  %s6500_s28 = sphi %s6608_s28, %s7961_s28   ;;  %s6496_s27 = sphi %s6606_s27, %s7960_s27  }
   0xb   : > { %7939 = sst [smem:[#allocation6_spill]] %s6504_s29  ;;  %s4791_s19 = sadd.s32 4294967294, %s6508_s30  }
   0xc   : > { %7940 = sst [smem:[#allocation7_spill]] %s6508_s30  ;;  %s6631_s1 = sadd.s32 1, %s6508_s30  }
   0xd   : > { %7941 = sst [smem:[#allocation8_spill]] %s6631_s1  ;;  %s421_s20 = sadd.s32 1, %s6504_s29 }
   0xe   : > { %s418_s21 = ssub.s32 %s6508_s30, %s6631_s1  ;;  %p431_p0 = scmp.ne.s32.totalorder %s6504_s29, %s6500_s28 }
   0xf   : > { %p419_p1 = scmp.eq.s32.totalorder %s418_s21, 0  ;;  %p432_p2 = scmp.eq.s32.totalorder %s6627_s0, 1 }
  0x10   : > { %p437_p3 = scmp.ne.s32.totalorder %s6500_s28, %s6496_s27  ;;  %p438_p4 = scmp.eq.s32.totalorder %s4791_s19, 1 }
  0x11   : > { %s6642_s22 = scalar_select %p419_p1, %s6504_s29, %s421_s20  }
  0x12   : > { %p6644_p5 = por %p432_p2, %p431_p0  ;;  %p6648_p6 = por %p438_p4, %p437_p3 }
  0x13   : > { %7942 = sst [smem:[#allocation9_spill]] %s6642_s22  ;;  %p4794_p7 = scmp.ge.s32.totalorder %s6508_s30, 1 }
  0x14   : > { %s7943_s2 = scalar_select %p6644_p5, 1, 0 }
  0x15   : > { %s7945_s23 = scalar_select %p6648_p6, 1, 0 }
  0x16   : > { %7944 = sst [smem:[#allocation10_spill]] %s7943_s2  ;;  %p514_p8 = scmp.lt.s32.totalorder %s6508_s30, 3 }
  0x17   : > { %7946 = sst [smem:[#allocation11_spill]] %s7945_s23 }
  0x18   : > { %p515_p9 = pnand %p4794_p7, %p514_p8 }
  0x19   : > { %s7947_s26 = sld [smem:[#allocation14_spill]] (!%p515_p9)  ;;  %p567_p10 = scmp.lt.s32.totalorder (!%p515_p9), %s6627_s0, 1 }
  0x1a   : > { %518 = sbr.rel (%p515_p9) target bundleno = 3798 (0xed6), region = 92  ;;  %s7948_s17 = sld [smem:[#allocation12_spill]] (!%p515_p9) }
  0x1b   : > { %s7949_s3 = sld [smem:[#allocation15_spill]] (!%p515_p9)  ;;  %s564_s27 = sand.u32 (!%p515_p9), 1, %s6500_s28  }
  0x1c   : > { %s7950_s4 = sld [smem:[#allocation16_spill]] (!%p515_p9)  ;;  %s6042_s25 = sshll.u32 (!%p515_p9), %s6627_s0, 3 }
  0x1d   : > { %s4795_s30 = sshll.u32 (!%p515_p9), %s564_s27, 3 }
  0x1e   : > { %s566_s29 = scalar_lea.vmem (!%p515_p9), [#allocation2], %s4795_s30 }
  0x1f   : > { %v6048_v0 = vld [vmem:[%s7947_s26 + $0x18] sm:$0xff]  ;;  %v6047_v4 = vld [vmem:[%s7947_s26 + $0x10] sm:$0xff]  ;;  %s568_s19 = scalar_select %p567_p10, %s6627_s0, 1  ;;  %v6046_v8 = vld [vmem:[%s7947_s26 + $0x8] sm:$0xff]  ;;  %vm886_vm0 = vcmask 523264   ;;  %vm1778_vm1 = vcmask 64512  }
  0x20   : > { %v6056_v1 = vld [vmem:[%s7947_s26 + $0x58] sm:$0xff]  ;;  %894 = vmatpush.bf16.msra.mxu1 %v6048_v0  ;;  %v6055_v5 = vld [vmem:[%s7947_s26 + $0x50] sm:$0xff]  ;;  %v6054_v9 = vld [vmem:[%s7947_s26 + $0x48] sm:$0xff]  ;;  %vm2038_vm2 = vcmask 1043456   ;;  %s4729_s23 = sshll.u32 %s566_s29, 4  ;;  %s4730_s23 = int_to_ptr.vmem [resolvable:$true] %s4729_s23 }
  0x21   : > { %v6060_v2 = vld [vmem:[%s7947_s26 + $0x78] sm:$0xff]  ;;  %968 = vmatpush.bf16.msra.mxu2 %v6056_v1  ;;  %v6059_v6 = vld [vmem:[%s7947_s26 + $0x70] sm:$0xff]  ;;  %s4796_s1 = sshll.u32 %s568_s19, 3  ;;  %v6058_v10 = vld [vmem:[%s7947_s26 + $0x68] sm:$0xff]  ;;  %s7953_s19 = sld [smem:[#allocation17_spill]] }
  0x22   : > { %v6064_v3 = vld [vmem:[%s7947_s26 + $0x98] sm:$0xff]  ;;  %1005 = vmatpush.bf16.msra.mxu3 %v6060_v2  ;;  %v6063_v7 = vld [vmem:[%s7947_s26 + $0x90] sm:$0xff]  ;;  %v6062_v11 = vld [vmem:[%s7947_s26 + $0x88] sm:$0xff]  ;;  %s6695_s2 = scalar_lea.vmem %s7948_s17, %s4796_s1  ;;  %s4727_s1 = scalar_lea.hbm %s7922_s18, %s6042_s25 }
  0x23   : > { %1042 = vmatpush.bf16.msra.mxu0 %v6064_v3  ;;  %v6045_v12 = vld [vmem:[%s7947_s26] sm:$0xff]  ;;  %v6052_v17 = vld [vmem:[%s7947_s26 + $0x38] sm:$0xff]  ;;  %v6051_v22 = vld [vmem:[%s7947_s26 + $0x30] sm:$0xff]  ;;  %s4731_s24 = sshll.u32 %s4727_s1, 4  ;;  %s4732_s24 = int_to_ptr.hbm [resolvable:$true] %s4731_s24 }
  0x24   : > { %895 = vmatpush.bf16.msra.mxu1 %v6047_v4  ;;  %v6053_v13 = vld [vmem:[%s7947_s26 + $0x40] sm:$0xff]  ;;  %v6072_v18 = vld [vmem:[%s7947_s26 + $0xd8] sm:$0xff]  ;;  %v6071_v23 = vld [vmem:[%s7947_s26 + $0xd0] sm:$0xff]  ;;  %s6460_s0 = sshra.s32 %s4732_s24, 4  ;;  %s6461_s0 = int_to_ptr.hbm [resolvable:$true] %s6460_s0 }
  0x25   : > { %969 = vmatpush.bf16.msra.mxu2 %v6055_v5  ;;  %v572_v14 = vld [vmem:[%s6695_s2] sm:$0xff]  ;;  %v6076_v20 = vld [vmem:[%s7947_s26 + $0xf8] sm:$0xff]  ;;  %v6075_v24 = vld [vmem:[%s7947_s26 + $0xf0] sm:$0xff]  ;;  %p6467_p0 = scmp.lt.s32.totalorder %s6461_s0, %s7922_s18 }
  0x26   : > { %1006 = vmatpush.bf16.msra.mxu3 %v6059_v6  ;;  %v6057_v15 = vld [vmem:[%s7947_s26 + $0x60] sm:$0xff]  ;;  %v6716_v19 = vpack.c.bf16 %v572_v14, %v572_v14  ;;  %v6080_v21 = vld [vmem:[%s7947_s26 + $0x118] sm:$0xff]  ;;  %v6079_v25 = vld [vmem:[%s7947_s26 + $0x110] sm:$0xff] }
  0x27   : > { %1043 = vmatpush.bf16.msra.mxu0 %v6063_v7  ;;  %v6061_v16 = vld [vmem:[%s7947_s26 + $0x80] sm:$0xff]  ;;  %v6050_v26 = vld [vmem:[%s7947_s26 + $0x28] sm:$0xff]  ;;  %v6068_v32 = vld [vmem:[%s7947_s26 + $0xb8] sm:$0xff] }
  0x28   : > { %896 = vmatpush.bf16.msra.mxu1 %v6046_v8  ;;  %v6070_v27 = vld [vmem:[%s7947_s26 + $0xc8] sm:$0xff]  ;;  %v6049_v30 = vld [vmem:[%s7947_s26 + $0x20] sm:$0xff]  ;;  %v6088_v33 = vld [vmem:[%s7947_s26 + $0x158] sm:$0xff] }
  0x29   : > { %970 = vmatpush.bf16.msra.mxu2 %v6054_v9  ;;  %v6074_v28 = vld [vmem:[%s7947_s26 + $0xe8] sm:$0xff]  ;;  %v6069_v31 = vld [vmem:[%s7947_s26 + $0xc0] sm:$0xff]  ;;  %v6092_v36 = vld [vmem:[%s7947_s26 + $0x178] sm:$0xff] }
  0x2a   : > { %1007 = vmatpush.bf16.msra.mxu3 %v6058_v10  ;;  %v6078_v29 = vld [vmem:[%s7947_s26 + $0x108] sm:$0xff]  ;;  %v6073_v34 = vld [vmem:[%s7947_s26 + $0xe0] sm:$0xff]  ;;  %v6096_v37 = vld [vmem:[%s7947_s26 + $0x198] sm:$0xff] }
  0x2b   : > { %1044 = vmatpush.bf16.msra.mxu0 %v6062_v11  ;;  %v6077_v35 = vld [vmem:[%s7947_s26 + $0x100] sm:$0xff]  ;;  %v6067_v38 = vld [vmem:[%s7947_s26 + $0xb0] sm:$0xff]  ;;  %v6066_v42 = vld [vmem:[%s7947_s26 + $0xa8] sm:$0xff] }
  0x2c   : > { %897 = vmatpush.bf16.msra.mxu1 %v6045_v12  ;;  %v6087_v39 = vld [vmem:[%s7947_s26 + $0x150] sm:$0xff]  ;;  %v6086_v43 = vld [vmem:[%s7947_s26 + $0x148] sm:$0xff]  ;;  %v6065_v46 = vld [vmem:[%s7947_s26 + $0xa0] sm:$0xff] }
  0x2d   : > { %971 = vmatpush.bf16.msra.mxu2 %v6053_v13  ;;  %v6091_v40 = vld [vmem:[%s7947_s26 + $0x170] sm:$0xff]  ;;  %v6090_v44 = vld [vmem:[%s7947_s26 + $0x168] sm:$0xff]  ;;  %v6085_v47 = vld [vmem:[%s7947_s26 + $0x140] sm:$0xff] }
  0x2e   : > { %1008 = vmatpush.bf16.msra.mxu3 %v6057_v15  ;;  %v6095_v41 = vld [vmem:[%s7947_s26 + $0x190] sm:$0xff]  ;;  %v6094_v45 = vld [vmem:[%s7947_s26 + $0x188] sm:$0xff]  ;;  %v6089_v48 = vld [vmem:[%s7947_s26 + $0x160] sm:$0xff] }
  0x2f   : > { %1045 = vmatpush.bf16.msra.mxu0 %v6061_v16  ;;  %4813 = vmatmul.msk.bf16.vlgmr.msra.gmra.mxu1 %vm886_vm0, %v6716_v19  ;;  %v6093_v49 = vld [vmem:[%s7947_s26 + $0x180] sm:$0xff]  ;;  %v6084_v50 = vld [vmem:[%s7947_s26 + $0x138] sm:$0xff]  ;;  %v6083_v53 = vld [vmem:[%s7947_s26 + $0x130] sm:$0xff] }
  0x30   : > { %931 = vmatpush.bf16.msrb.mxu1 %v6052_v17  ;;  %4847 = vmatmul.msk.bf16.vlgmr.msra.gmra.mxu2 %vm886_vm0, %v6716_v19  ;;  %v6104_v51 = vld [vmem:[%s7947_s26 + $0x1d8] sm:$0xff]  ;;  %v6103_v54 = vld [vmem:[%s7947_s26 + $0x1d0] sm:$0xff]  ;;  %v6082_v57 = vld [vmem:[%s7947_s26 + $0x128] sm:$0xff] }
  0x31   : > { %1116 = vmatpush.bf16.msrb.mxu2 %v6072_v18  ;;  %4864 = vmatmul.msk.bf16.vlgmr.msra.gmra.mxu3 %vm886_vm0, %v6716_v19  ;;  %v6108_v52 = vld [vmem:[%s7947_s26 + $0x1f8] sm:$0xff]  ;;  %v6107_v55 = vld [vmem:[%s7947_s26 + $0x1f0] sm:$0xff]  ;;  %v6102_v58 = vld [vmem:[%s7947_s26 + $0x1c8] sm:$0xff] }
  0x32   : > { %4881 = vmatmul.msk.bf16.vlgmr.msra.gmra.mxu0 %vm886_vm0, %v6716_v19  ;;  %1153 = vmatpush.bf16.msrb.mxu3 %v6076_v20  ;;  %v6112_v56 = vld [vmem:[%s7947_s26 + $0x218] sm:$0xff]  ;;  %v6106_v59 = vld [vmem:[%s7947_s26 + $0x1e8] sm:$0xff]  ;;  %v6111_v60 = vld [vmem:[%s7947_s26 + $0x210] sm:$0xff] }
  0x33   : > { %1190 = vmatpush.bf16.msrb.mxu0 %v6080_v21  ;;  %v6081_v61 = vld [vmem:[%s7947_s26 + $0x120] sm:$0xff]  ;;  %v6100_v0 = vld [vmem:[%s7947_s26 + $0x1b8] sm:$0xff]  ;;  %v6110_v1 = vld [vmem:[%s7947_s26 + $0x208] sm:$0xff] }
  0x34   : > { %932 = vmatpush.bf16.msrb.mxu1 %v6051_v22  ;;  %v6101_v62 = vld [vmem:[%s7947_s26 + $0x1c0] sm:$0xff]  ;;  %v6120_v2 = vld [vmem:[%s7947_s26 + $0x258] sm:$0xff]  ;;  %v6099_v3 = vld [vmem:[%s7947_s26 + $0x1b0] sm:$0xff] }
  0x35   : > { %1117 = vmatpush.bf16.msrb.mxu2 %v6071_v23  ;;  %v6105_v63 = vld [vmem:[%s7947_s26 + $0x1e0] sm:$0xff]  ;;  %v6128_v5 = vld [vmem:[%s7947_s26 + $0x298] sm:$0xff]  ;;  %v6098_v6 = vld [vmem:[%s7947_s26 + $0x1a8] sm:$0xff] }
  0x36   : > { %1154 = vmatpush.bf16.msrb.mxu3 %v6075_v24  ;;  %v6109_v4 = vld [vmem:[%s7947_s26 + $0x200] sm:$0xff]  ;;  %v6119_v8 = vld [vmem:[%s7947_s26 + $0x250] sm:$0xff]  ;;  %v6118_v10 = vld [vmem:[%s7947_s26 + $0x248] sm:$0xff] }
  0x37   : > { %1191 = vmatpush.bf16.msrb.mxu0 %v6079_v25  ;;  %v6097_v7 = vld [vmem:[%s7947_s26 + $0x1a0] sm:$0xff]  ;;  %v6127_v9 = vld [vmem:[%s7947_s26 + $0x290] sm:$0xff]  ;;  %v6124_v11 = vld [vmem:[%s7947_s26 + $0x278] sm:$0xff] }
  0x38   : > { %933 = vmatpush.bf16.msrb.mxu1 %v6050_v26  ;;  %v6126_v12 = vld [vmem:[%s7947_s26 + $0x288] sm:$0xff]  ;;  %v6117_v13 = vld [vmem:[%s7947_s26 + $0x240] sm:$0xff]  ;;  %v6123_v14 = vld [vmem:[%s7947_s26 + $0x270] sm:$0xff] }
  0x39   : > { %1118 = vmatpush.bf16.msrb.mxu2 %v6070_v27  ;;  %v6125_v15 = vld [vmem:[%s7947_s26 + $0x280] sm:$0xff]  ;;  %v6122_v16 = vld [vmem:[%s7947_s26 + $0x268] sm:$0xff]  ;;  %v6136_v17 = vld [vmem:[%s7947_s26 + $0x2d8] sm:$0xff] }
  0x3a   : > { %1155 = vmatpush.bf16.msrb.mxu3 %v6074_v28  ;;  %v6116_v18 = vld [vmem:[%s7947_s26 + $0x238] sm:$0xff]  ;;  %v6121_v20 = vld [vmem:[%s7947_s26 + $0x260] sm:$0xff]  ;;  %v6135_v21 = vld [vmem:[%s7947_s26 + $0x2d0] sm:$0xff] }
  0x3b   : > { %1192 = vmatpush.bf16.msrb.mxu0 %v6078_v29  ;;  %v6115_v22 = vld [vmem:[%s7947_s26 + $0x230] sm:$0xff]  ;;  %v6134_v23 = vld [vmem:[%s7947_s26 + $0x2c8] sm:$0xff]  ;;  %v6140_v24 = vld [vmem:[%s7947_s26 + $0x2f8] sm:$0xff] }
  0x3c   : > { %934 = vmatpush.bf16.msrb.mxu1 %v6049_v30  ;;  %v6114_v25 = vld [vmem:[%s7947_s26 + $0x228] sm:$0xff]  ;;  %v6133_v26 = vld [vmem:[%s7947_s26 + $0x2c0] sm:$0xff]  ;;  %v6139_v27 = vld [vmem:[%s7947_s26 + $0x2f0] sm:$0xff] }
  0x3d   : > { %1119 = vmatpush.bf16.msrb.mxu2 %v6069_v31  ;;  %v6113_v28 = vld [vmem:[%s7947_s26 + $0x220] sm:$0xff]  ;;  %v6138_v29 = vld [vmem:[%s7947_s26 + $0x2e8] sm:$0xff]  ;;  %v6132_v30 = vld [vmem:[%s7947_s26 + $0x2b8] sm:$0xff] }
  0x3e   : > { %1156 = vmatpush.bf16.msrb.mxu3 %v6073_v34  ;;  %v6137_v31 = vld [vmem:[%s7947_s26 + $0x2e0] sm:$0xff]  ;;  %v6131_v34 = vld [vmem:[%s7947_s26 + $0x2b0] sm:$0xff] }
  0x3f   : > { %1193 = vmatpush.bf16.msrb.mxu0 %v6077_v35  ;;  %4830 = vmatmul.msk.bf16.vlgmr.msrb.gmra.mxu1 %vm886_vm0, %v6716_v19  ;;  %v6130_v35 = vld [vmem:[%s7947_s26 + $0x2a8] sm:$0xff] }
  0x40   : > { %1079 = vmatpush.bf16.msra.mxu1 %v6068_v32  ;;  %4915 = vmatmul.msk.bf16.vlgmr.msrb.gmra.mxu2 %vm886_vm0, %v6716_v19 }
  0x41   : > { %1264 = vmatpush.bf16.msra.mxu2 %v6088_v33  ;;  %4932 = vmatmul.msk.bf16.vlgmr.msrb.gmra.mxu3 %vm886_vm0, %v6716_v19 }
  0x42   : > { %1301 = vmatpush.bf16.msra.mxu3 %v6092_v36  ;;  %4949 = vmatmul.msk.bf16.vlgmr.msrb.gmra.mxu0 %vm886_vm0, %v6716_v19 }
  0x43   : > { %1338 = vmatpush.bf16.msra.mxu0 %v6096_v37 }
  0x44   : > { %1080 = vmatpush.bf16.msra.mxu1 %v6067_v38 }
  0x45   : > { %1265 = vmatpush.bf16.msra.mxu2 %v6087_v39 }
  0x46   : > { %1302 = vmatpush.bf16.msra.mxu3 %v6091_v40  ;;  %v6129_v40 = vld [vmem:[%s7947_s26 + $0x2a0] sm:$0xff] }
  0x47   : > { %1339 = vmatpush.bf16.msra.mxu0 %v6095_v41 }
  0x48   : > { %1081 = vmatpush.bf16.msra.mxu1 %v6066_v42  ;;  %v6312_v42 = vld [vmem:[%s7949_s3 + $0x8] ss:$0 sm:$0xff] }
  0x49   : > { %1266 = vmatpush.bf16.msra.mxu2 %v6086_v43 }
  0x4a   : > { %1303 = vmatpush.bf16.msra.mxu3 %v6090_v44 }
  0x4b   : > { %1340 = vmatpush.bf16.msra.mxu0 %v6094_v45 }
  0x4c   : > { %1082 = vmatpush.bf16.msra.mxu1 %v6065_v46 }
  0x4d   : > { %1267 = vmatpush.bf16.msra.mxu2 %v6085_v47  ;;  %v6307_v47 = vld [vmem:[%s7949_s3] ss:$0 sm:$0xff] }
  0x4e   : > { %1304 = vmatpush.bf16.msra.mxu3 %v6089_v48 }
  0x4f   : > { %1341 = vmatpush.bf16.msra.mxu0 %v6093_v49  ;;  %4898 = vmatmul.msk.bf16.vlgmr.msra.gmra.mxu1 %vm886_vm0, %v6716_v19 }
  0x50   : > { %1227 = vmatpush.bf16.msrb.mxu1 %v6084_v50  ;;  %4983 = vmatmul.msk.bf16.vlgmr.msra.gmra.mxu2 %vm886_vm0, %v6716_v19 }
  0x51   : > { %1412 = vmatpush.bf16.msrb.mxu2 %v6104_v51  ;;  %5000 = vmatmul.msk.bf16.vlgmr.msra.gmra.mxu3 %vm886_vm0, %v6716_v19 }
  0x52   : > { %1449 = vmatpush.bf16.msrb.mxu3 %v6108_v52  ;;  %5017 = vmatmul.msk.bf16.vlgmr.msra.gmra.mxu0 %vm886_vm0, %v6716_v19 }
  0x53   : > { %1486 = vmatpush.bf16.msrb.mxu0 %v6112_v56  ;;  %v6316_v56 = vld [vmem:[%s7949_s3 + $0xc] ss:$0 sm:$0xff] }
  0x54   : > { %1228 = vmatpush.bf16.msrb.mxu1 %v6083_v53 }
  0x55   : > { %1413 = vmatpush.bf16.msrb.mxu2 %v6103_v54 }
  0x56   : > { %1450 = vmatpush.bf16.msrb.mxu3 %v6107_v55 }
  0x57   : > { %1487 = vmatpush.bf16.msrb.mxu0 %v6111_v60 }
  0x58   : > { %1229 = vmatpush.bf16.msrb.mxu1 %v6082_v57 }
  0x59   : > { %1414 = vmatpush.bf16.msrb.mxu2 %v6102_v58 }
  0x5a   : > { %1451 = vmatpush.bf16.msrb.mxu3 %v6106_v59 }
  0x5b   : > { %1488 = vmatpush.bf16.msrb.mxu0 %v6110_v1 }
  0x5c   : > { %1230 = vmatpush.bf16.msrb.mxu1 %v6081_v61  ;;  %v6317_v61 = vld [vmem:[%s7949_s3 + $0xa] ss:$0 sm:$0xff] }
  0x5d   : > { %1415 = vmatpush.bf16.msrb.mxu2 %v6101_v62  ;;  %v6308_v62 = vld [vmem:[%s7949_s3 + $0x4] ss:$0 sm:$0xff] }
  0x5e   : > { %1452 = vmatpush.bf16.msrb.mxu3 %v6105_v63 }
  0x5f   : > { %4966 = vmatmul.msk.bf16.vlgmr.msrb.gmra.mxu1 %vm886_vm0, %v6716_v19  ;;  %1489 = vmatpush.bf16.msrb.mxu0 %v6109_v4 }
  0x60   : > { %1375 = vmatpush.bf16.msra.mxu1 %v6100_v0  ;;  %5051 = vmatmul.msk.bf16.vlgmr.msrb.gmra.mxu2 %vm886_vm0, %v6716_v19  ;;  %v6318_v0 = vld [vmem:[%s7949_s3 + $0xb] ss:$0 sm:$0xff] }
  0x61   : > { %1560 = vmatpush.bf16.msra.mxu2 %v6120_v2  ;;  %5068 = vmatmul.msk.bf16.vlgmr.msrb.gmra.mxu3 %vm886_vm0, %v6716_v19 }
  0x62   : > { %5085 = vmatmul.msk.bf16.vlgmr.msrb.gmra.mxu0 %vm886_vm0, %v6716_v19  ;;  %1597 = vmatpush.bf16.msra.mxu3 %v6124_v11  ;;  %v6310_v11 = vld [vmem:[%s7949_s3 + $0x3] ss:$0 sm:$0xff] }
  0x63   : > { %1634 = vmatpush.bf16.msra.mxu0 %v6128_v5 }
  0x64   : > { %1376 = vmatpush.bf16.msra.mxu1 %v6099_v3 }
  0x65   : > { %1561 = vmatpush.bf16.msra.mxu2 %v6119_v8  ;;  %v6309_v8 = vld [vmem:[%s7949_s3 + $0x2] ss:$0 sm:$0xff] }
  0x66   : > { %1598 = vmatpush.bf16.msra.mxu3 %v6123_v14 }
  0x67   : > { %1635 = vmatpush.bf16.msra.mxu0 %v6127_v9 }
  0x68   : > { %1377 = vmatpush.bf16.msra.mxu1 %v6098_v6 }
  0x69   : > { %1562 = vmatpush.bf16.msra.mxu2 %v6118_v10 }
  0x6a   : > { %1599 = vmatpush.bf16.msra.mxu3 %v6122_v16 }
  0x6b   : > { %1636 = vmatpush.bf16.msra.mxu0 %v6126_v12 }
  0x6c   : > { %1378 = vmatpush.bf16.msra.mxu1 %v6097_v7 }
  0x6d   : > { %1563 = vmatpush.bf16.msra.mxu2 %v6117_v13 }
  0x6e   : > { %1600 = vmatpush.bf16.msra.mxu3 %v6121_v20 }
  0x6f   : > { %5034 = vmatmul.msk.bf16.vlgmr.msra.gmra.mxu1 %vm886_vm0, %v6716_v19  ;;  %1637 = vmatpush.bf16.msra.mxu0 %v6125_v15 }
  0x70   : > { %5119 = vmatmul.msk.bf16.vlgmr.msra.gmra.mxu2 %vm886_vm0, %v6716_v19  ;;  %1523 = vmatpush.bf16.msrb.mxu1 %v6116_v18 }
  0x71   : > { %1708 = vmatpush.bf16.msrb.mxu2 %v6136_v17  ;;  %5136 = vmatmul.msk.bf16.vlgmr.msra.gmra.mxu3 %vm886_vm0, %v6716_v19  ;;  %v6319_v17 = vld [vmem:[%s7949_s3 + $0x9] ss:$0 sm:$0xff] }
  0x72   : > { %5153 = vmatmul.msk.bf16.vlgmr.msra.gmra.mxu0 %vm886_vm0, %v6716_v19  ;;  %1745 = vmatpush.bf16.msrb.mxu3 %v6140_v24 }
  0x74   : > { %1524 = vmatpush.bf16.msrb.mxu1 %v6115_v22 }
  0x75   : > { %1709 = vmatpush.bf16.msrb.mxu2 %v6135_v21 }
  0x76   : > { %1746 = vmatpush.bf16.msrb.mxu3 %v6139_v27  ;;  %v6311_v27 = vld [vmem:[%s7949_s3 + $0x1] ss:$0 sm:$0xff] }
  0x78   : > { %1525 = vmatpush.bf16.msrb.mxu1 %v6114_v25  ;;  %v6323_v25 = vld [vmem:[%s7949_s3 + $0x10] ss:$0 sm:$0xff] }
  0x79   : > { %1710 = vmatpush.bf16.msrb.mxu2 %v6134_v23 }
  0x7a   : > { %1747 = vmatpush.bf16.msrb.mxu3 %v6138_v29  ;;  %v6320_v29 = vld [vmem:[%s7949_s3 + $0xe] ss:$0 sm:$0xff] }
  0x7c   : > { %1526 = vmatpush.bf16.msrb.mxu1 %v6113_v28 }
  0x7d   : > { %1711 = vmatpush.bf16.msrb.mxu2 %v6133_v26 }
  0x7e   : > { %1748 = vmatpush.bf16.msrb.mxu3 %v6137_v31 }
  0x7f   : > { %5102 = vmatmul.msk.bf16.vlgmr.msrb.gmra.mxu1 %vm886_vm0, %v6716_v19 }
  0x80   : > { %5187 = vmatmul.msk.bf16.vlgmr.msrb.gmra.mxu2 %vm886_vm0, %v6716_v19  ;;  %1671 = vmatpush.bf16.msra.mxu1 %v6132_v30  ;;  %v6321_v30 = vld [vmem:[%s7949_s3 + $0xf] ss:$0 sm:$0xff] }
  0x81   : > { %5204 = vmatmul.msk.bf16.vlgmr.msrb.gmra.mxu3 %vm886_vm0, %v6716_v19 }
  0x84   : > { %1672 = vmatpush.bf16.msra.mxu1 %v6131_v34 }
  0x88   : > { %1673 = vmatpush.bf16.msra.mxu1 %v6130_v35 }
  0x8c   : > { %1674 = vmatpush.bf16.msra.mxu1 %v6129_v40 }
  0x8f   : > { %5170 = vmatmul.msk.bf16.vlgmr.msra.gmra.mxu1 %vm886_vm0, %v6716_v19 }
  0xac   : > { %v899_v32 = vpop.f32.mrf.mxu1 }
  0xad   : > { %v900_v52 = vadd.f32 %v6307_v47, %v899_v32 }
  0xaf   : > { %v1047_v33 = vpop.f32.mrf.mxu0  ;;  %v1754_v54 = vpack.c.bf16 %v900_v52, %v900_v52 }
  0xb0   : > { %v1048_v5 = vadd.f32 %v6308_v62, %v1047_v33 }
  0xb2   : > { %v1758_v14 = vpack.c.bf16 %v1048_v5, %v1048_v5 }
  0xb3   : > { %v973_v36 = vpop.f32.mrf.mxu2 }
  0xb4   : > { %v1010_v37 = vpop.f32.mrf.mxu3  ;;  %v901_v38 = vpop.f32.mrf.mxu1  ;;  %v974_v16 = vadd.f32 %v6309_v8, %v973_v36 }
  0xb5   : > { %v1011_v18 = vadd.f32 %v6310_v11, %v1010_v37  ;;  %v6326_v11 = vld [vmem:[%s7949_s3 + $0x13] ss:$0 sm:$0xff] }
  0xb6   : > { %v1756_v23 = vpack.c.bf16 %v974_v16, %v974_v16 }
  0xb7   : > { %v1049_v39 = vpop.f32.mrf.mxu0  ;;  %v1757_v26 = vpack.c.bf16 %v1011_v18, %v1011_v18 }
  0xbb   : > { %v975_v41 = vpop.f32.mrf.mxu2 }
  0xbc   : > { %v1012_v43 = vpop.f32.mrf.mxu3  ;;  %v7003_v44 = vpop.f32.mrf.mxu1  ;;  %v6313_v41 = vld [vmem:[%s7949_s3 + $0x6] ss:$0 sm:$0xff] }
  0xbd   : > { %v937_v35 = vadd.f32 %v6311_v27, %v7003_v44 }
  0xbf   : > { %v1195_v45 = vpop.f32.mrf.mxu0  ;;  %v1755_v44 = vpack.c.bf16 %v937_v35, %v937_v35 }
  0xc0   : > { %v1196_v46 = vadd.f32 %v6312_v42, %v1195_v45  ;;  %v6314_v45 = vld [vmem:[%s7949_s3 + $0x7] ss:$0 sm:$0xff] }
  0xc2   : > { %v1762_v48 = vpack.c.bf16 %v1196_v46, %v1196_v46 }
  0xc3   : > { %v7009_v50 = vpop.f32.mrf.mxu2 }
  0xc4   : > { %v1783_v49 = vsel %vm1778_vm1, %v1762_v48, 0  ;;  %v7011_v51 = vpop.f32.mrf.mxu3  ;;  %v938_v19 = vpop.f32.mrf.mxu1  ;;  %v1122_v52 = vadd.f32 %v6313_v41, %v7009_v50 }
  0xc5   : > { %1792 = vmatpush.bf16.xpose.msrb.mxu0 %v1783_v49  ;;  %v6322_v19 = vld [vmem:[%s7949_s3 + $0xd] ss:$0 sm:$0xff] }
  0xc7   : > { %v1197_v53 = vpop.f32.mrf.mxu0 }
  0xc8   : > { %v1159_v53 = vadd.f32 %v6314_v45, %v7011_v51 }
  0xcb   : > { %v1123_v55 = vpop.f32.mrf.mxu2 }
  0xcc   : > { %5205 = vmatmul.msk.bf16.vlgmr.msrb.gmra.mxu0 %vm1778_vm1, %v1754_v54  ;;  %v1160_v57 = vpop.f32.mrf.mxu3  ;;  %v7017_v58 = vpop.f32.mrf.mxu1 }
  0xcd   : > { %v1760_v57 = vpack.c.bf16 %v1122_v52, %v1122_v52 }
  0xcf   : > { %v1343_v59 = vpop.f32.mrf.mxu0 }
  0xd0   : > { %v1344_v60 = vadd.f32 %v6316_v56, %v1343_v59 }
  0xd2   : > { %v1766_v63 = vpack.c.bf16 %v1344_v60, %v1344_v60  ;;  %v1761_v60 = vpack.c.bf16 %v1159_v53, %v1159_v53 }
  0xd3   : > { %v1269_v2 = vpop.f32.mrf.mxu2 }
  0xd4   : > { %v1859_v1 = vsel %vm1778_vm1, %v1766_v63, 0  ;;  %v1270_v3 = vadd.f32 %v6317_v61, %v1269_v2  ;;  %v1306_v4 = vpop.f32.mrf.mxu3  ;;  %v1086_v7 = vpop.f32.mrf.mxu1  ;;  %v6315_v61 = vld [vmem:[%s7949_s3 + $0x5] ss:$0 sm:$0xff] }
  0xd5   : > { %1868 = vmatpush.bf16.xpose.msra.mxu0 %v1859_v1  ;;  %v1307_v6 = vadd.f32 %v6318_v0, %v1306_v4  ;;  %v1085_v51 = vadd.f32 %v6315_v61, %v7017_v58  ;;  %v6324_v1 = vld [vmem:[%s7949_s3 + $0x14] ss:$0 sm:$0xff]  ;;  %v6325_v4 = vld [vmem:[%s7949_s3 + $0x12] ss:$0 sm:$0xff] }
  0xd6   : > { %v1764_v9 = vpack.c.bf16 %v1270_v3, %v1270_v3 }
  0xd7   : > { %v1345_v10 = vpop.f32.mrf.mxu0  ;;  %v1765_v12 = vpack.c.bf16 %v1307_v6, %v1307_v6  ;;  %v1759_v0 = vpack.c.bf16 %v1085_v51, %v1085_v51 }
  0xd8   : > { %v1821_v13 = vsel %vm1778_vm1, %v1764_v9, 0 }
  0xd9   : > { %v1840_v15 = vsel %vm1778_vm1, %v1765_v12, 0  ;;  %1830 = vmatpush.bf16.xpose.msra.mxu2 %v1821_v13 }
  0xda   : > { %1849 = vmatpush.bf16.xpose.msra.mxu3 %v1840_v15  ;;  %v6327_v15 = vld [vmem:[%s7949_s3 + $0x11] ss:$0 sm:$0xff] }
  0xdb   : > { %v1271_v20 = vpop.f32.mrf.mxu2 }
  0xdc   : > { %5209 = vmatmul.msk.bf16.vlgmr.msra.gmra.mxu0 %vm1778_vm1, %v1758_v14  ;;  %v1308_v21 = vpop.f32.mrf.mxu3  ;;  %v1232_v22 = vpop.f32.mrf.mxu1 }
  0xdd   : > { %v1233_v24 = vadd.f32 %v6319_v17, %v1232_v22  ;;  %v6328_v21 = vld [vmem:[%s7949_s3 + $0x16] ss:$0 sm:$0xff] }
  0xdf   : > { %v1763_v28 = vpack.c.bf16 %v1233_v24, %v1233_v24  ;;  %v1491_v31 = vpop.f32.mrf.mxu0 }
  0xe0   : > { %5207 = vmatmul.msk.bf16.vlgmr.msra.gmra.mxu2 %vm1778_vm1, %v1756_v23  ;;  %v1492_v33 = vadd.f32 %v6323_v25, %v1491_v31 }
  0xe1   : > { %5208 = vmatmul.msk.bf16.vlgmr.msra.gmra.mxu3 %vm1778_vm1, %v1757_v26  ;;  %v1802_v32 = vsel %vm1778_vm1, %v1763_v28, 0 }
  0xe2   : > { %1811 = vmatpush.bf16.xpose.msrb.mxu1 %v1802_v32  ;;  %v1770_v38 = vpack.c.bf16 %v1492_v33, %v1492_v33 }
  0xe3   : > { %v1417_v34 = vpop.f32.mrf.mxu2 }
  0xe4   : > { %v1418_v36 = vadd.f32 %v6320_v29, %v1417_v34  ;;  %v1454_v37 = vpop.f32.mrf.mxu3  ;;  %v1234_v40 = vpop.f32.mrf.mxu1  ;;  %v2040_v43 = vsel %vm2038_vm2, %v1770_v38, 0  ;;  %v6330_v34 = vld [vmem:[%s7949_s3 + $0x15] ss:$0 sm:$0xff] }
  0xe5   : > { %v1455_v39 = vadd.f32 %v6321_v30, %v1454_v37  ;;  %2049 = vmatpush.bf16.msrb.mxu0 %v2040_v43  ;;  %v6329_v30 = vld [vmem:[%s7949_s3 + $0x17] ss:$0 sm:$0xff] }
  0xe6   : > { %v1768_v42 = vpack.c.bf16 %v1418_v36, %v1418_v36 }
  0xe7   : > { %v1769_v46 = vpack.c.bf16 %v1455_v39, %v1455_v39  ;;  %v1493_v49 = vpop.f32.mrf.mxu0 }
  0xe8   : > { %v1897_v47 = vsel %vm1778_vm1, %v1768_v42, 0 }
  0xe9   : > { %v1916_v48 = vsel %vm1778_vm1, %v1769_v46, 0  ;;  %1906 = vmatpush.bf16.xpose.msrb.mxu2 %v1897_v47  ;;  %5206 = vmatmul.msk.bf16.vlgmr.msrb.gmra.mxu1 %vm1778_vm1, %v1755_v44 }
  0xea   : > { %1925 = vmatpush.bf16.xpose.msrb.mxu3 %v1916_v48 }
  0xeb   : > { %v1419_v54 = vpop.f32.mrf.mxu2 }
  0xec   : > { %v1456_v55 = vpop.f32.mrf.mxu3  ;;  %v1380_v56 = vpop.f32.mrf.mxu1 }
  0xed   : > { %v1381_v59 = vadd.f32 %v6322_v19, %v1380_v56 }
  0xef   : > { %v1767_v50 = vpack.c.bf16 %v1381_v59, %v1381_v59  ;;  %v1639_v2 = vpop.f32.mrf.mxu0 }
  0xf0   : > { %5211 = vmatmul.msk.bf16.vlgmr.msrb.gmra.mxu2 %vm1778_vm1, %v1760_v57  ;;  %v1640_v3 = vadd.f32 %v6324_v1, %v1639_v2 }
  0xf1   : > { %5212 = vmatmul.msk.bf16.vlgmr.msrb.gmra.mxu3 %vm1778_vm1, %v1761_v60  ;;  %v1878_v62 = vsel %vm1778_vm1, %v1767_v50, 0 }
  0xf2   : > { %1887 = vmatpush.bf16.xpose.msra.mxu1 %v1878_v62  ;;  %v1774_v5 = vpack.c.bf16 %v1640_v3, %v1640_v3 }
  0xf3   : > { %v1565_v6 = vpop.f32.mrf.mxu2 }
  0xf4   : > { %v1382_v63 = vpop.f32.mrf.mxu1  ;;  %v2116_v7 = vsel %vm2038_vm2, %v1774_v5, 0  ;;  %v1566_v8 = vadd.f32 %v6325_v4, %v1565_v6  ;;  %v1602_v13 = vpop.f32.mrf.mxu3 }
  0xf5   : > { %2125 = vmatpush.bf16.msra.mxu0 %v2116_v7  ;;  %v1603_v14 = vadd.f32 %v6326_v11, %v1602_v13 }
  0xf6   : > { %v1772_v58 = vpack.c.bf16 %v1566_v8, %v1566_v8 }
  0xf7   : > { %v1641_v9 = vpop.f32.mrf.mxu0  ;;  %v1773_v16 = vpack.c.bf16 %v1603_v14, %v1603_v14 }
  0xf8   : > { %v2078_v10 = vsel %vm2038_vm2, %v1772_v58, 0 }
  0xf9   : > { %5210 = vmatmul.msk.bf16.vlgmr.msra.gmra.mxu1 %vm1778_vm1, %v1759_v0  ;;  %2087 = vmatpush.bf16.msra.mxu2 %v2078_v10  ;;  %v2097_v18 = vsel %vm2038_vm2, %v1773_v16, 0 }
  0xfa   : > { %2106 = vmatpush.bf16.msra.mxu3 %v2097_v18 }
  0xfb   : > { %v1567_v12 = vpop.f32.mrf.mxu2 }
  0xfc   : > { %v1528_v17 = vpop.f32.mrf.mxu1  ;;  %v1604_v23 = vpop.f32.mrf.mxu3 }
  0xfd   : > { %v1529_v20 = vadd.f32 %v6327_v15, %v1528_v17 }
  0xff   : > { %v1771_v22 = vpack.c.bf16 %v1529_v20, %v1529_v20 }
 0x101   : > { %v2059_v25 = vsel %vm2038_vm2, %v1771_v22, 0 }
 0x102   : > { %2068 = vmatpush.bf16.msrb.mxu1 %v2059_v25 }
 0x103   : > { %v1713_v24 = vpop.f32.mrf.mxu2 }
 0x104   : > { %v1714_v26 = vadd.f32 %v6328_v21, %v1713_v24  ;;  %v1530_v28 = vpop.f32.mrf.mxu1  ;;  %v1750_v32 = vpop.f32.mrf.mxu3 }
 0x105   : > { %v1751_v33 = vadd.f32 %v6329_v30, %v1750_v32 }
 0x106   : > { %v1776_v27 = vpack.c.bf16 %v1714_v26, %v1714_v26 }
 0x107   : > { %v1777_v35 = vpack.c.bf16 %v1751_v33, %v1751_v33 }
 0x108   : > { %v2154_v29 = vsel %vm2038_vm2, %v1776_v27, 0 }
 0x109   : > { %2163 = vmatpush.bf16.msrb.mxu2 %v2154_v29  ;;  %v2173_v37 = vsel %vm2038_vm2, %v1777_v35, 0 }
 0x10a   : > { %2182 = vmatpush.bf16.msrb.mxu3 %v2173_v37 }
 0x10b   : > { %v1715_v31 = vpop.f32.mrf.mxu2 }
 0x10c   : > { %v1676_v36 = vpop.f32.mrf.mxu1  ;;  %v1752_v40 = vpop.f32.mrf.mxu3 }
 0x10d   : > { %v1677_v38 = vadd.f32 %v6330_v34, %v1676_v36 }
 0x10f   : > { %v1775_v39 = vpack.c.bf16 %v1677_v38, %v1677_v38 }
 0x111   : > { %v2135_v41 = vsel %vm2038_vm2, %v1775_v39, 0 }
 0x112   : > { %2144 = vmatpush.bf16.msra.mxu1 %v2135_v41 }
 0x114   : > { %v1678_v42 = vpop.f32.mrf.mxu1 }
 0x149   : > { %v1794_v43 = vpop.f32.mrf.mxu0 }
 0x14a   : > { %v1931_v45 = vmul.f32 0.35355338, %v1794_v43 }
 0x14c   : > { %v1939_v46 = vsel %vm1778_vm1, %v1931_v45, -inf }
 0x14d   : > { %1940 = vmax.xlane.f32.xlu1 %v1939_v46 }
 0x151   : > { %v1796_v44 = vpop.f32.mrf.mxu0 }
 0x159   : > { %v1870_v47 = vpop.f32.mrf.mxu0 }
 0x15a   : > { %v1935_v62 = vmul.f32 0.35355338, %v1870_v47 }
 0x15c   : > { %v1951_v2 = vsel %vm1778_vm1, %v1935_v62, -inf }
 0x161   : > { %v1872_v48 = vpop.f32.mrf.mxu0 }
 0x163   : > { %v1832_v49 = vpop.f32.mrf.mxu2 }
 0x164   : > { %v1933_v52 = vmul.f32 0.35355338, %v1832_v49  ;;  %v1851_v19 = vpop.f32.mrf.mxu3 }
 0x165   : > { %v1934_v56 = vmul.f32 0.35355338, %v1851_v19 }
 0x166   : > { %v1945_v53 = vsel %vm1778_vm1, %v1933_v52, -inf  ;;  %v1813_v54 = vpop.f32.mrf.mxu1 }
 0x167   : > { %1946 = vmax.xlane.f32.xlu0 %v1945_v53  ;;  %v1932_v55 = vmul.f32 0.35355338, %v1813_v54  ;;  %v1948_v61 = vsel %vm1778_vm1, %v1934_v56, -inf }
 0x169   : > { %v1942_v57 = vsel %vm1778_vm1, %v1932_v55, -inf }
 0x16a   : > { %1943 = vmax.xlane.f32.xlu1 %v1942_v57 }
 0x16b   : > { %v1834_v59 = vpop.f32.mrf.mxu2 }
 0x16c   : > { %v1853_v60 = vpop.f32.mrf.mxu3 }
 0x16e   : > { %v1815_v50 = vpop.f32.mrf.mxu1 }
 0x16f   : > { %1949 = vmax.xlane.f32.xlu0 %v1948_v61 }
 0x173   : > { %v1908_v51 = vpop.f32.mrf.mxu2 }
 0x174   : > { %v1937_v63 = vmul.f32 0.35355338, %v1908_v51  ;;  %v1927_v0 = vpop.f32.mrf.mxu3 }
 0x175   : > { %v1938_v5 = vmul.f32 0.35355338, %v1927_v0 }
 0x176   : > { %v1957_v1 = vsel %vm1778_vm1, %v1937_v63, -inf  ;;  %v1889_v3 = vpop.f32.mrf.mxu1 }
 0x177   : > { %1958 = vmax.xlane.f32.xlu2 %v1957_v1  ;;  %1952 = vmax.xlane.f32.xlu0 %v1951_v2  ;;  %v1936_v4 = vmul.f32 0.35355338, %v1889_v3  ;;  %v1960_v58 = vsel %vm1778_vm1, %v1938_v5, -inf }
 0x179   : > { %v1954_v6 = vsel %vm1778_vm1, %v1936_v4, -inf }
 0x17a   : > { %1955 = vmax.xlane.f32.xlu1 %v1954_v6 }
 0x17b   : > { %v1910_v7 = vpop.f32.mrf.mxu2 }
 0x17c   : > { %v1929_v8 = vpop.f32.mrf.mxu3 }
 0x17e   : > { %v1891_v9 = vpop.f32.mrf.mxu1 }
 0x17f   : > { %1961 = vmax.xlane.f32.xlu2 %v1960_v58 }
 0x1c0   : > { %v1941_v10 = vpop.xlane.xlu1 %1940 }
 0x1c1   : > { %v1963_v11 = vsub.f32 %v1931_v45, %v1941_v10 }
 0x1c3   : > { %v1971_v12 = vmul.f32 1.442695, %v1963_v11 }
 0x1c5   : > { %6371 = vpow2.f32 %v1971_v12 }
 0x1cb   : > { %v6372_v13 = vpop.eup %6371 }
 0x1cc   : > { %v1987_v14 = vsel %vm1778_vm1, %v6372_v13, 0.0 }
 0x1cd   : > { %1988 = vadd.xlane.f32.xlu1 %v1987_v14 }
 0x1da   : > { %v1947_v15 = vpop.xlane.xlu0 %1946 }
 0x1db   : > { %v1965_v16 = vsub.f32 %v1933_v52, %v1947_v15 }
 0x1dd   : > { %v1975_v17 = vmul.f32 1.442695, %v1965_v16  ;;  %v1944_v18 = vpop.xlane.xlu1 %1943 }
 0x1de   : > { %v1964_v20 = vsub.f32 %v1932_v55, %v1944_v18  ;;  %v2196_v18 = vld [vmem:[%s7950_s4] sm:$0xf] }
 0x1df   : > { %6373 = vpow2.f32 %v1975_v17 }
 0x1e0   : > { %v1973_v21 = vmul.f32 1.442695, %v1964_v20  ;;  %v2208_v20 = vsel %vm2038_vm2, %v2196_v18, 0 }
 0x1e2   : > { %v1950_v22 = vpop.xlane.xlu0 %1949  ;;  %6375 = vpow2.f32 %v1973_v21 }
 0x1e3   : > { %v1966_v23 = vsub.f32 %v1934_v56, %v1950_v22  ;;  %v2198_v22 = vld [vmem:[%s7950_s4 + $0x8] sm:$0xf] }
 0x1e5   : > { %v6374_v24 = vpop.eup %6373  ;;  %v1977_v25 = vmul.f32 1.442695, %v1966_v23 }
 0x1e6   : > { %v1993_v26 = vsel %vm1778_vm1, %v6374_v24, 0.0 }
 0x1e7   : > { %6377 = vpow2.f32 %v1977_v25  ;;  %1994 = vadd.xlane.f32.xlu2 %v1993_v26  ;;  %v2197_v25 = vld [vmem:[%s7950_s4 + $0x4] sm:$0xf] }
 0x1e8   : > { %v6376_v29 = vpop.eup %6375  ;;  %v2227_v26 = vsel %vm2038_vm2, %v2197_v25, 0 }
 0x1e9   : > { %v1990_v36 = vsel %vm1778_vm1, %v6376_v29, 0.0 }
 0x1ea   : > { %v1959_v27 = vpop.xlane.xlu2 %1958  ;;  %v1953_v28 = vpop.xlane.xlu0 %1952 }
 0x1eb   : > { %v1969_v30 = vsub.f32 %v1937_v63, %v1959_v27  ;;  %v1967_v31 = vsub.f32 %v1935_v62, %v1953_v28  ;;  %v2199_v28 = vld [vmem:[%s7950_s4 + $0xc] sm:$0xf] }
 0x1ed   : > { %v6378_v32 = vpop.eup %6377  ;;  %v1983_v33 = vmul.f32 1.442695, %v1969_v30  ;;  %v1979_v34 = vmul.f32 1.442695, %v1967_v31  ;;  %v1956_v35 = vpop.xlane.xlu1 %1955  ;;  %v2200_v30 = vld [vmem:[%s7950_s4 + $0x10] sm:$0xf] }
 0x1ee   : > { %v1996_v37 = vsel %vm1778_vm1, %v6378_v32, 0.0  ;;  %v1968_v38 = vsub.f32 %v1936_v4, %v1956_v35  ;;  %v2284_v31 = vsel %vm2038_vm2, %v2200_v30, 0 }
 0x1ef   : > { %6379 = vpow2.f32 %v1983_v33  ;;  %1991 = vadd.xlane.f32.xlu2 %v1990_v36  ;;  %1997 = vadd.xlane.f32.xlu0 %v1996_v37  ;;  %v2203_v36 = vld [vmem:[%s7950_s4 + $0x1c] sm:$0xf] }
 0x1f0   : > { %6381 = vpow2.f32 %v1979_v34  ;;  %v1981_v39 = vmul.f32 1.442695, %v1968_v38  ;;  %v2201_v34 = vld [vmem:[%s7950_s4 + $0x14] sm:$0xf]  ;;  %v2341_v37 = vsel %vm2038_vm2, %v2203_v36, 0 }
 0x1f1   : > { %v2303_v35 = vsel %vm2038_vm2, %v2201_v34, 0 }
 0x1f2   : > { %v1962_v40 = vpop.xlane.xlu2 %1961  ;;  %6383 = vpow2.f32 %v1981_v39 }
 0x1f3   : > { %v1970_v41 = vsub.f32 %v1938_v5, %v1962_v40 }
 0x1f5   : > { %v6380_v42 = vpop.eup %6379  ;;  %v1985_v43 = vmul.f32 1.442695, %v1970_v41 }
 0x1f6   : > { %v6382_v45 = vpop.eup %6381  ;;  %v2005_v46 = vsel %vm1778_vm1, %v6380_v42, 0.0 }
 0x1f7   : > { %6385 = vpow2.f32 %v1985_v43  ;;  %2006 = vadd.xlane.f32.xlu0 %v2005_v46  ;;  %v1999_v44 = vsel %vm1778_vm1, %v6382_v45, 0.0 }
 0x1f8   : > { %2000 = vadd.xlane.f32.xlu2 %v1999_v44  ;;  %v6384_v47 = vpop.eup %6383 }
 0x1f9   : > { %v2002_v52 = vsel %vm1778_vm1, %v6384_v47, 0.0 }
 0x1fd   : > { %v6386_v48 = vpop.eup %6385 }
 0x1fe   : > { %v2008_v49 = vsel %vm1778_vm1, %v6386_v48, 0.0 }
 0x1ff   : > { %2009 = vadd.xlane.f32.xlu1 %v2008_v49  ;;  %2003 = vadd.xlane.f32.xlu0 %v2002_v52 }
 0x240   : > { %v1989_v19 = vpop.xlane.xlu1 %1988 }
 0x241   : > { %6387 = vrcp.f32 %v1989_v19 }
 0x247   : > { %v6388_v53 = vpop.eup %6387 }
 0x248   : > { %v2019_v54 = vmul.f32 %v6388_v53, %v6372_v13 }
 0x24a   : > { %v2027_v55 = vpack.c.bf16 %v2019_v54, %v2019_v54 }
 0x24c   : > { %5213 = vmatmul.msk.bf16.vlgmr.msrb.gmra.mxu0 %vm1778_vm1, %v2027_v55 }
 0x24d   : > { %2217 = vmatpush.bf16.msrb.mxu0 %v2208_v20 }
 0x25a   : > { %v1995_v56 = vpop.xlane.xlu2 %1994 }
 0x25b   : > { %6389 = vrcp.f32 %v1995_v56 }
 0x261   : > { %v6390_v57 = vpop.eup %6389 }
 0x262   : > { %v2021_v59 = vmul.f32 %v6390_v57, %v6374_v24  ;;  %v1992_v60 = vpop.xlane.xlu2 %1991  ;;  %v1998_v61 = vpop.xlane.xlu0 %1997  ;;  %v2246_v24 = vsel %vm2038_vm2, %v2198_v22, 0 }
 0x263   : > { %6391 = vrcp.f32 %v1992_v60 }
 0x264   : > { %v2029_v50 = vpack.c.bf16 %v2021_v59, %v2021_v59  ;;  %6393 = vrcp.f32 %v1998_v61 }
 0x266   : > { %5215 = vmatmul.msk.bf16.vlgmr.msra.gmra.mxu2 %vm1778_vm1, %v2029_v50 }
 0x267   : > { %2255 = vmatpush.bf16.msra.mxu2 %v2246_v24 }
 0x269   : > { %v6392_v62 = vpop.eup %6391 }
 0x26a   : > { %v6394_v51 = vpop.eup %6393  ;;  %v2020_v63 = vmul.f32 %v6392_v62, %v6376_v29  ;;  %v2007_v0 = vpop.xlane.xlu0 %2006  ;;  %v2265_v29 = vsel %vm2038_vm2, %v2199_v28, 0 }
 0x26b   : > { %v2022_v1 = vmul.f32 %v6394_v51, %v6378_v32  ;;  %v2001_v2 = vpop.xlane.xlu2 %2000  ;;  %6395 = vrcp.f32 %v2007_v0  ;;  %v2202_v32 = vld [vmem:[%s7950_s4 + $0x18] sm:$0xf] }
 0x26c   : > { %v2028_v3 = vpack.c.bf16 %v2020_v63, %v2020_v63  ;;  %6397 = vrcp.f32 %v2001_v2  ;;  %v2322_v33 = vsel %vm2038_vm2, %v2202_v32, 0 }
 0x26d   : > { %v2030_v4 = vpack.c.bf16 %v2022_v1, %v2022_v1 }
 0x26e   : > { %5214 = vmatmul.msk.bf16.vlgmr.msrb.gmra.mxu1 %vm1778_vm1, %v2028_v3 }
 0x26f   : > { %5216 = vmatmul.msk.bf16.vlgmr.msra.gmra.mxu3 %vm1778_vm1, %v2030_v4  ;;  %2236 = vmatpush.bf16.msrb.mxu1 %v2227_v26 }
 0x270   : > { %2274 = vmatpush.bf16.msra.mxu3 %v2265_v29 }
 0x271   : > { %v6396_v5 = vpop.eup %6395 }
 0x272   : > { %v6398_v6 = vpop.eup %6397  ;;  %v2025_v7 = vmul.f32 %v6396_v5, %v6380_v42  ;;  %v2010_v8 = vpop.xlane.xlu1 %2009 }
 0x273   : > { %v2004_v58 = vpop.xlane.xlu0 %2003  ;;  %v2023_v9 = vmul.f32 %v6398_v6, %v6382_v45  ;;  %6399 = vrcp.f32 %v2010_v8 }
 0x274   : > { %v2033_v10 = vpack.c.bf16 %v2025_v7, %v2025_v7  ;;  %6401 = vrcp.f32 %v2004_v58 }
 0x275   : > { %v2031_v11 = vpack.c.bf16 %v2023_v9, %v2023_v9 }
 0x276   : > { %5219 = vmatmul.msk.bf16.vlgmr.msrb.gmra.mxu2 %vm1778_vm1, %v2033_v10 }
 0x277   : > { %5217 = vmatmul.msk.bf16.vlgmr.msra.gmra.mxu0 %vm1778_vm1, %v2031_v11  ;;  %2331 = vmatpush.bf16.msrb.mxu2 %v2322_v33 }
 0x278   : > { %2293 = vmatpush.bf16.msra.mxu0 %v2284_v31  ;;  %v6510_v31 = vmov 64.0  }
 0x279   : > { %v6400_v12 = vpop.eup %6399  ;;  %6403 = vrcp.f32 %v6510_v31  ;;  %v6179_v31 = vld [vmem:[%s7947_s26 + $0x3d0] sm:$0xff] }
 0x27a   : > { %v6402_v13 = vpop.eup %6401  ;;  %v2026_v14 = vmul.f32 %v6400_v12, %v6386_v48 }
 0x27b   : > { %v2024_v15 = vmul.f32 %v6402_v13, %v6384_v47 }
 0x27c   : > { %v2034_v16 = vpack.c.bf16 %v2026_v14, %v2026_v14 }
 0x27d   : > { %v2032_v17 = vpack.c.bf16 %v2024_v15, %v2024_v15 }
 0x27f   : > { %5218 = vmatmul.msk.bf16.vlgmr.msra.gmra.mxu1 %vm1778_vm1, %v2032_v17  ;;  %5220 = vmatmul.msk.bf16.vlgmr.msrb.gmra.mxu3 %vm1778_vm1, %v2034_v16  ;;  %v6404_v32 = vpop.eup %6403 }
 0x280   : > { %2312 = vmatpush.bf16.msra.mxu1 %v2303_v35  ;;  %2350 = vmatpush.bf16.msrb.mxu3 %v2341_v37  ;;  %v2383_v33 = vmul.f32 64.0, %v6404_v32  ;;  %vm2387_vm3 = vweird.f32 %v6404_v32 }
 0x282   : > { %v2384_v34 = vsub.f32 1.0, %v2383_v33  ;;  %v6158_v33 = vld [vmem:[%s7947_s26 + $0x328] sm:$0xff] }
 0x284   : > { %v2385_v35 = vmul.f32 %v6404_v32, %v2384_v34  ;;  %v6162_v34 = vld [vmem:[%s7947_s26 + $0x348] sm:$0xff] }
 0x286   : > { %v2386_v36 = vadd.f32 %v6404_v32, %v2385_v35  ;;  %v6178_v35 = vld [vmem:[%s7947_s26 + $0x3c8] sm:$0xff] }
 0x288   : > { %v7185_v37 = vsel %vm2387_vm3, %v6404_v32, %v2386_v36  ;;  %v6154_v32 = vld [vmem:[%s7947_s26 + $0x308] sm:$0xff]  ;;  %v6153_v36 = vld [vmem:[%s7947_s26 + $0x300] sm:$0xff] }
 0x2c9   : > { %v2051_v21 = vpop.f32.mrf.mxu0 }
 0x2ca   : > { %v2188_v23 = vpack.c.bf16 %v2051_v21, %v2051_v21 }
 0x2cc   : > { %5221 = vmatmul.msk.bf16.vlgmr.msrb.gmra.mxu0 %vm1778_vm1, %v2188_v23  ;;  %v6331_v23 = vld [vmem:[%s7909_s5] ss:$0 sm:$0xff] }
 0x2d1   : > { %v2053_v27 = vpop.f32.mrf.mxu0 }
 0x2d2   : > { %v6445_v27 = vld [vmem:[%s6695_s2] sm:$0xff]  ;;  %s7951_s2 = sld [smem:[#allocation13_spill]] }
 0x2e9   : > { %v2089_v38 = vpop.f32.mrf.mxu2 }
 0x2ea   : > { %v2190_v39 = vpack.c.bf16 %v2089_v38, %v2089_v38 }
 0x2eb   : > { %v2070_v40 = vpop.f32.mrf.mxu1 }
 0x2ec   : > { %v2189_v41 = vpack.c.bf16 %v2070_v40, %v2070_v40  ;;  %5223 = vmatmul.msk.bf16.vlgmr.msra.gmra.mxu2 %vm1778_vm1, %v2190_v39 }
 0x2ee   : > { %5222 = vmatmul.msk.bf16.vlgmr.msrb.gmra.mxu1 %vm1778_vm1, %v2189_v41 }
 0x2f1   : > { %v2091_v42 = vpop.f32.mrf.mxu2 }
 0x2f2   : > { %v2108_v43 = vpop.f32.mrf.mxu3 }
 0x2f3   : > { %v2191_v45 = vpack.c.bf16 %v2108_v43, %v2108_v43  ;;  %v2072_v46 = vpop.f32.mrf.mxu1  ;;  %v6144_v43 = vld [vmem:[%s7912_s8 + $0x18] sm:$0xff] }
 0x2f4   : > { %v2127_v44 = vpop.f32.mrf.mxu0  ;;  %2460 = vmatpush.bf16.msrb.mxu0 %v6144_v43  ;;  %v6142_v46 = vld [vmem:[%s7912_s8 + $0x8] sm:$0xff]  ;;  %v6176_v43 = vld [vmem:[%s7947_s26 + $0x3b8] sm:$0xff] }
 0x2f5   : > { %v2192_v47 = vpack.c.bf16 %v2127_v44, %v2127_v44  ;;  %5224 = vmatmul.msk.bf16.vlgmr.msra.gmra.mxu3 %vm1778_vm1, %v2191_v45  ;;  %v6143_v45 = vld [vmem:[%s7912_s8 + $0x10] sm:$0xff]  ;;  %v6141_v44 = vld [vmem:[%s7912_s8] sm:$0xff] }
 0x2f7   : > { %5225 = vmatmul.msk.bf16.vlgmr.msra.gmra.mxu0 %vm1778_vm1, %v2192_v47  ;;  %v6152_v47 = vld [vmem:[%s7914_s10 + $0x38] sm:$0xff] }
 0x2f8   : > { %2461 = vmatpush.bf16.msrb.mxu0 %v6143_v45  ;;  %2539 = vmatpush.bf16.msrb.mxu1 %v6152_v47  ;;  %v6167_v47 = vld [vmem:[%s7947_s26 + $0x370] sm:$0xff] }
 0x2f9   : > { %v2165_v48 = vpop.f32.mrf.mxu2 }
 0x2fa   : > { %v2110_v49 = vpop.f32.mrf.mxu3  ;;  %v2194_v52 = vpack.c.bf16 %v2165_v48, %v2165_v48 }
 0x2fc   : > { %v2129_v19 = vpop.f32.mrf.mxu0  ;;  %v2146_v53 = vpop.f32.mrf.mxu1  ;;  %5227 = vmatmul.msk.bf16.vlgmr.msrb.gmra.mxu2 %vm1778_vm1, %v2194_v52  ;;  %2462 = vmatpush.bf16.msrb.mxu0 %v6142_v46  ;;  %v6151_v52 = vld [vmem:[%s7914_s10 + $0x30] sm:$0xff]  ;;  %v6196_v46 = vld [vmem:[%s7947_s26 + $0x458] sm:$0xff] }
 0x2fd   : > { %v2193_v54 = vpack.c.bf16 %v2146_v53, %v2146_v53  ;;  %2540 = vmatpush.bf16.msrb.mxu1 %v6151_v52  ;;  %v6150_v53 = vld [vmem:[%s7914_s10 + $0x28] sm:$0xff]  ;;  %v6195_v52 = vld [vmem:[%s7947_s26 + $0x450] sm:$0xff] }
 0x2ff   : > { %5226 = vmatmul.msk.bf16.vlgmr.msra.gmra.mxu1 %vm1778_vm1, %v2193_v54  ;;  %v6149_v54 = vld [vmem:[%s7914_s10 + $0x20] sm:$0xff] }
 0x300   : > { %2463 = vmatpush.bf16.msrb.mxu0 %v6141_v44 }
 0x301   : > { %v2167_v55 = vpop.f32.mrf.mxu2  ;;  %2541 = vmatpush.bf16.msrb.mxu1 %v6150_v53  ;;  %v6166_v53 = vld [vmem:[%s7947_s26 + $0x368] sm:$0xff] }
 0x302   : > { %v2184_v56 = vpop.f32.mrf.mxu3 }
 0x303   : > { %v2195_v57 = vpack.c.bf16 %v2184_v56, %v2184_v56 }
 0x304   : > { %v2148_v59 = vpop.f32.mrf.mxu1 }
 0x305   : > { %5228 = vmatmul.msk.bf16.vlgmr.msrb.gmra.mxu3 %vm1778_vm1, %v2195_v57  ;;  %2542 = vmatpush.bf16.msrb.mxu1 %v6149_v54  ;;  %v6148_v57 = vld [vmem:[%s7914_s10 + $0x18] sm:$0xff]  ;;  %v6170_v54 = vld [vmem:[%s7947_s26 + $0x388] sm:$0xff] }
 0x309   : > { %2543 = vmatpush.bf16.msrb.mxu1 %v6148_v57  ;;  %v6165_v57 = vld [vmem:[%s7947_s26 + $0x360] sm:$0xff] }
 0x30a   : > { %v2186_v60 = vpop.f32.mrf.mxu3 }
 0x349   : > { %v2219_v61 = vpop.f32.mrf.mxu0 }
 0x34a   : > { %v2356_v4 = vsel %vm886_vm0, %v2219_v61, 0.0  ;;  %v6147_v61 = vld [vmem:[%s7914_s10 + $0x10] sm:$0xff] }
 0x34b   : > { %2544 = vmatpush.bf16.msrb.mxu1 %v6147_v61  ;;  %v6193_v61 = vld [vmem:[%s7947_s26 + $0x440] sm:$0xff] }
 0x351   : > { %v2221_v50 = vpop.f32.mrf.mxu0 }
 0x36b   : > { %v2238_v62 = vpop.f32.mrf.mxu1 }
 0x36c   : > { %v2357_v1 = vsel %vm886_vm0, %v2238_v62, 0.0 }
 0x36d   : > { %v2358_v6 = vadd.f32 %v2357_v1, %v2356_v4 }
 0x36f   : > { %v2257_v51 = vpop.f32.mrf.mxu2 }
 0x370   : > { %v2359_v5 = vsel %vm886_vm0, %v2257_v51, 0.0  ;;  %v6332_v51 = vld [vmem:[%s7910_s6] ss:$0 sm:$0xff] }
 0x371   : > { %v2360_v8 = vadd.f32 %v2359_v5, %v2358_v6  ;;  %v6146_v5 = vld [vmem:[%s7914_s10 + $0x8] sm:$0xff]  ;;  %v6145_v6 = vld [vmem:[%s7914_s10] sm:$0xff] }
 0x372   : > { %2545 = vmatpush.bf16.msrb.mxu1 %v6146_v5 }
 0x373   : > { %v2240_v63 = vpop.f32.mrf.mxu1 }
 0x374   : > { %v2295_v0 = vpop.f32.mrf.mxu0 }
 0x375   : > { %v2363_v13 = vsel %vm886_vm0, %v2295_v0, 0.0  ;;  %v6333_v0 = vld [vmem:[%s7911_s7] ss:$0 sm:$0xff] }
 0x376   : > { %2546 = vmatpush.bf16.msrb.mxu1 %v6145_v6 }
 0x377   : > { %v2259_v2 = vpop.f32.mrf.mxu2 }
 0x378   : > { %v2276_v3 = vpop.f32.mrf.mxu3 }
 0x379   : > { %v2361_v7 = vsel %vm886_vm0, %v2276_v3, 0.0 }
 0x37a   : > { %v2362_v10 = vadd.f32 %v2361_v7, %v2360_v8  ;;  %v6334_v7 = vld [vmem:[%s7913_s9] ss:$0 sm:$0xff] }
 0x37c   : > { %v2297_v58 = vpop.f32.mrf.mxu0  ;;  %v2314_v9 = vpop.f32.mrf.mxu1  ;;  %v2364_v14 = vadd.f32 %v2363_v13, %v2362_v10 }
 0x37d   : > { %v2365_v15 = vsel %vm886_vm0, %v2314_v9, 0.0 }
 0x37e   : > { %v2366_v18 = vadd.f32 %v2365_v15, %v2364_v14 }
 0x37f   : > { %v2333_v11 = vpop.f32.mrf.mxu2 }
 0x380   : > { %v2278_v12 = vpop.f32.mrf.mxu3  ;;  %v2367_v17 = vsel %vm886_vm0, %v2333_v11, 0.0 }
 0x381   : > { %v2368_v21 = vadd.f32 %v2367_v17, %v2366_v18  ;;  %v6335_v12 = vld [vmem:[%s7915_s11] ss:$0 sm:$0xff] }
 0x384   : > { %v2316_v16 = vpop.f32.mrf.mxu1 }
 0x387   : > { %v2335_v20 = vpop.f32.mrf.mxu2 }
 0x388   : > { %v2352_v22 = vpop.f32.mrf.mxu3 }
 0x389   : > { %v2369_v24 = vsel %vm886_vm0, %v2352_v22, 0.0 }
 0x38a   : > { %v2370_v25 = vadd.f32 %v2369_v24, %v2368_v21  ;;  %v6156_v24 = vld [vmem:[%s7947_s26 + $0x318] sm:$0xff] }
 0x38b   : > { %2907 = vmatpush.bf16.msra.mxu2 %v6156_v24  ;;  %v6209_v24 = vld [vmem:[%s7947_s26 + $0x4c0] sm:$0xff] }
 0x38c   : > { %v2375_v26 = vadd.f32 %v6331_v23, %v2370_v25  ;;  %v6160_v25 = vld [vmem:[%s7947_s26 + $0x338] sm:$0xff] }
 0x38d   : > { %2944 = vmatpush.bf16.msra.mxu3 %v6160_v25  ;;  %v6200_v25 = vld [vmem:[%s7947_s26 + $0x478] sm:$0xff] }
 0x38e   : > { %v2376_v28 = vadd.f32 %v6445_v27, %v2375_v26  ;;  %v6164_v26 = vld [vmem:[%s7947_s26 + $0x358] sm:$0xff] }
 0x38f   : > { %v6180_v27 = vld [vmem:[%s7947_s26 + $0x3d8] sm:$0xff]  ;;  %2981 = vmatpush.bf16.msra.mxu0 %v6164_v26 }
 0x390   : > { %v2354_v29 = vpop.f32.mrf.mxu3  ;;  %v2379_v30 = vsel %vm886_vm0, %v2376_v28, 0.0  ;;  %3129 = vmatpush.bf16.msra.mxu1 %v6180_v27  ;;  %v6204_v26 = vld [vmem:[%s7947_s26 + $0x498] sm:$0xff] }
 0x391   : > { %2380 = vadd.xlane.f32.xlu1 %v2379_v30  ;;  %v6159_v29 = vld [vmem:[%s7947_s26 + $0x330] sm:$0xff]  ;;  %v6208_v27 = vld [vmem:[%s7947_s26 + $0x4b8] sm:$0xff] }
 0x392   : > { %v6163_v30 = vld [vmem:[%s7947_s26 + $0x350] sm:$0xff]  ;;  %2945 = vmatpush.bf16.msra.mxu3 %v6159_v29 }
 0x393   : > { %2982 = vmatpush.bf16.msra.mxu0 %v6163_v30  ;;  %v6199_v29 = vld [vmem:[%s7947_s26 + $0x470] sm:$0xff] }
 0x394   : > { %3130 = vmatpush.bf16.msra.mxu1 %v6179_v31  ;;  %v6203_v30 = vld [vmem:[%s7947_s26 + $0x490] sm:$0xff] }
 0x395   : > { %v6207_v31 = vld [vmem:[%s7947_s26 + $0x4b0] sm:$0xff] }
 0x396   : > { %2946 = vmatpush.bf16.msra.mxu3 %v6158_v33  ;;  %v6198_v33 = vld [vmem:[%s7947_s26 + $0x468] sm:$0xff] }
 0x397   : > { %2983 = vmatpush.bf16.msra.mxu0 %v6162_v34  ;;  %v6202_v34 = vld [vmem:[%s7947_s26 + $0x488] sm:$0xff] }
 0x398   : > { %3131 = vmatpush.bf16.msra.mxu1 %v6178_v35  ;;  %v6206_v35 = vld [vmem:[%s7947_s26 + $0x4a8] sm:$0xff] }
 0x404   : > { %v2381_v38 = vpop.xlane.xlu1 %2380 }
 0x405   : > { %v2389_v39 = vmul.f32 %v7185_v37, %v2381_v38  ;;  %v6157_v38 = vld [vmem:[%s7947_s26 + $0x320] sm:$0xff] }
 0x406   : > { %2947 = vmatpush.bf16.msra.mxu3 %v6157_v38  ;;  %v6197_v38 = vld [vmem:[%s7947_s26 + $0x460] sm:$0xff] }
 0x407   : > { %v2390_v40 = vsub.f32 %v2376_v28, %v2389_v39  ;;  %v6155_v28 = vld [vmem:[%s7947_s26 + $0x310] sm:$0xff]  ;;  %v6161_v39 = vld [vmem:[%s7947_s26 + $0x340] sm:$0xff] }
 0x408   : > { %2908 = vmatpush.bf16.msra.mxu2 %v6155_v28  ;;  %2984 = vmatpush.bf16.msra.mxu0 %v6161_v39  ;;  %v6228_v28 = vld [vmem:[%s7947_s26 + $0x558] sm:$0xff]  ;;  %v6201_v39 = vld [vmem:[%s7947_s26 + $0x480] sm:$0xff] }
 0x409   : > { %v2391_v41 = vmul.f32 %v2390_v40, %v2390_v40 }
 0x40b   : > { %v2392_v42 = vsel %vm886_vm0, %v2391_v41, 0.0  ;;  %v6168_v41 = vld [vmem:[%s7947_s26 + $0x378] sm:$0xff] }
 0x40c   : > { %2393 = vadd.xlane.f32.xlu2 %v2392_v42  ;;  %2909 = vmatpush.bf16.msra.mxu2 %v6154_v32  ;;  %v6172_v42 = vld [vmem:[%s7947_s26 + $0x398] sm:$0xff]  ;;  %v6227_v32 = vld [vmem:[%s7947_s26 + $0x550] sm:$0xff] }
 0x40d   : > { %3055 = vmatpush.bf16.msrb.mxu3 %v6172_v42  ;;  %v6216_v42 = vld [vmem:[%s7947_s26 + $0x4f8] sm:$0xff] }
 0x410   : > { %2910 = vmatpush.bf16.msra.mxu2 %v6153_v36  ;;  %v6226_v36 = vld [vmem:[%s7947_s26 + $0x548] sm:$0xff] }
 0x414   : > { %3018 = vmatpush.bf16.msrb.mxu2 %v6168_v41  ;;  %v6225_v41 = vld [vmem:[%s7947_s26 + $0x540] sm:$0xff] }
 0x418   : > { %3019 = vmatpush.bf16.msrb.mxu2 %v6167_v47  ;;  %v6219_v47 = vld [vmem:[%s7947_s26 + $0x510] sm:$0xff] }
 0x41c   : > { %3020 = vmatpush.bf16.msrb.mxu2 %v6166_v53  ;;  %v6222_v53 = vld [vmem:[%s7947_s26 + $0x528] sm:$0xff] }
 0x420   : > { %3021 = vmatpush.bf16.msrb.mxu2 %v6165_v57  ;;  %v6221_v57 = vld [vmem:[%s7947_s26 + $0x520] sm:$0xff] }
 0x47f   : > { %v2394_v48 = vpop.xlane.xlu2 %2393 }
 0x480   : > { %v2395_v49 = vmul.f32 %v2394_v48, %v7185_v37  ;;  %v6171_v48 = vld [vmem:[%s7947_s26 + $0x390] sm:$0xff] }
 0x481   : > { %3056 = vmatpush.bf16.msrb.mxu3 %v6171_v48  ;;  %v6223_v48 = vld [vmem:[%s7947_s26 + $0x530] sm:$0xff] }
 0x482   : > { %v2396_v19 = vadd.f32 1e-05, %v2395_v49  ;;  %v6175_v49 = vld [vmem:[%s7947_s26 + $0x3b0] sm:$0xff] }
 0x484   : > { %6405 = vrsqrt.f32 %v2396_v19  ;;  %vm2403_vm5 = vweird.f32 %v2396_v19 }
 0x485   : > { %3057 = vmatpush.bf16.msrb.mxu3 %v6170_v54  ;;  %v6242_v54 = vld [vmem:[%s7947_s26 + $0x5c8] sm:$0xff] }
 0x48a   : > { %v6406_v55 = vpop.eup %6405 }
 0x48b   : > { %v2398_v56 = vmul.f32 %v6406_v55, %v2396_v19  ;;  %vm2404_vm4 = vweird.f32 %v6406_v55 }
 0x48c   : > { %vm2405_vm6 = vmor %vm2403_vm5, %vm2404_vm4 }
 0x48d   : > { %v2399_v59 = vmul.f32 %v6406_v55, %v2398_v56  ;;  %v6194_v56 = vld [vmem:[%s7947_s26 + $0x448] sm:$0xff] }
 0x48f   : > { %v2400_v60 = vmul.f32 0.5, %v2399_v59  ;;  %v6169_v59 = vld [vmem:[%s7947_s26 + $0x380] sm:$0xff] }
 0x490   : > { %3058 = vmatpush.bf16.msrb.mxu3 %v6169_v59  ;;  %v6241_v59 = vld [vmem:[%s7947_s26 + $0x5c0] sm:$0xff] }
 0x491   : > { %v2401_v50 = vsub.f32 1.5, %v2400_v60  ;;  %v6173_v60 = vld [vmem:[%s7947_s26 + $0x3a0] sm:$0xff] }
 0x493   : > { %v2402_v62 = vmul.f32 %v6406_v55, %v2401_v50 }
 0x495   : > { %v2406_v63 = vsel %vm2405_vm6, %v6406_v55, %v2402_v62  ;;  %v6174_v55 = vld [vmem:[%s7947_s26 + $0x3a8] sm:$0xff] }
 0x496   : > { %v2407_v1 = vmul.f32 %v2406_v63, %v2390_v40  ;;  %v6177_v40 = vld [vmem:[%s7947_s26 + $0x3c0] sm:$0xff] }
 0x497   : > { %3132 = vmatpush.bf16.msra.mxu1 %v6177_v40  ;;  %v6205_v40 = vld [vmem:[%s7947_s26 + $0x4a0] sm:$0xff] }
 0x498   : > { %v2411_v2 = vmul.f32 %v6332_v51, %v2407_v1 }
 0x49a   : > { %v2415_v3 = vadd.f32 %v6333_v0, %v2411_v2  ;;  %v6336_v2 = vld [vmem:[%s7916_s12] ss:$0 sm:$0xff] }
 0x49c   : > { %v2416_v4 = vpack.c.bf16 %v2415_v3, %v2415_v3 }
 0x49e   : > { %5245 = vmatmul.msk.bf16.vlgmr.msrb.gmra.mxu0 %vm886_vm0, %v2416_v4  ;;  %v6337_v4 = vld [vmem:[%s7917_s13] ss:$0 sm:$0xff] }
 0x49f   : > { %3092 = vmatpush.bf16.msrb.mxu0 %v6176_v43  ;;  %v6220_v43 = vld [vmem:[%s7947_s26 + $0x518] sm:$0xff] }
 0x4a3   : > { %3093 = vmatpush.bf16.msrb.mxu0 %v6175_v49  ;;  %v6243_v49 = vld [vmem:[%s7947_s26 + $0x5d0] sm:$0xff] }
 0x4a7   : > { %3094 = vmatpush.bf16.msrb.mxu0 %v6174_v55  ;;  %v6213_v55 = vld [vmem:[%s7947_s26 + $0x4e0] sm:$0xff] }
 0x4ab   : > { %3095 = vmatpush.bf16.msrb.mxu0 %v6173_v60  ;;  %v6232_v60 = vld [vmem:[%s7947_s26 + $0x578] sm:$0xff] }
 0x51b   : > { %v2465_v8 = vpop.f32.mrf.mxu0 }
 0x51c   : > { %v2466_v58 = vadd.f32 %v6334_v7, %v2465_v8 }
 0x51e   : > { %v2469_v9 = vmax.f32 %v2466_v58, 0.0  ;;  %v6184_v58 = vld [vmem:[%s7947_s26 + $0x3f8] sm:$0xff] }
 0x520   : > { %v2470_v10 = vpack.c.bf16 %v2469_v9, %v2469_v9  ;;  %v6188_v9 = vld [vmem:[%s7947_s26 + $0x418] sm:$0xff] }
 0x522   : > { %2547 = vmatmul.bf16.vlgmr.msrb.gmra.mxu1 %v2470_v10  ;;  %v6192_v10 = vld [vmem:[%s7947_s26 + $0x438] sm:$0xff] }
 0x523   : > { %v2467_v11 = vpop.f32.mrf.mxu0  ;;  %3277 = vmatpush.bf16.msrb.mxu1 %v6196_v46  ;;  %v6244_v46 = vld [vmem:[%s7947_s26 + $0x5d8] sm:$0xff] }
 0x524   : > { %v6212_v11 = vld [vmem:[%s7947_s26 + $0x4d8] sm:$0xff] }
 0x527   : > { %3278 = vmatpush.bf16.msrb.mxu1 %v6195_v52  ;;  %v6214_v52 = vld [vmem:[%s7947_s26 + $0x4e8] sm:$0xff] }
 0x52b   : > { %3279 = vmatpush.bf16.msrb.mxu1 %v6194_v56  ;;  %v6217_v56 = vld [vmem:[%s7947_s26 + $0x500] sm:$0xff] }
 0x52f   : > { %3280 = vmatpush.bf16.msrb.mxu1 %v6193_v61  ;;  %v6236_v61 = vld [vmem:[%s7947_s26 + $0x598] sm:$0xff] }
 0x59f   : > { %v2548_v13 = vpop.f32.mrf.mxu1 }
 0x5a0   : > { %v2549_v14 = vadd.f32 %v6335_v12, %v2548_v13  ;;  %v6183_v12 = vld [vmem:[%s7947_s26 + $0x3f0] sm:$0xff] }
 0x5a1   : > { %v6187_v13 = vld [vmem:[%s7947_s26 + $0x410] sm:$0xff] }
 0x5a2   : > { %v2552_v15 = vadd.f32 %v2549_v14, %v2415_v3  ;;  %v6191_v14 = vld [vmem:[%s7947_s26 + $0x430] sm:$0xff] }
 0x5a4   : > { %v2555_v16 = vsel %vm886_vm0, %v2552_v15, 0.0 }
 0x5a5   : > { %2556 = vadd.xlane.f32.xlu0 %v2555_v16  ;;  %v6182_v16 = vld [vmem:[%s7947_s26 + $0x3e8] sm:$0xff] }
 0x5a7   : > { %v2550_v17 = vpop.f32.mrf.mxu1 }
 0x5a8   : > { %v6186_v17 = vld [vmem:[%s7947_s26 + $0x408] sm:$0xff] }
 0x618   : > { %v2557_v18 = vpop.xlane.xlu0 %2556 }
 0x619   : > { %v2558_v20 = vmul.f32 %v2557_v18, %v7185_v37  ;;  %v6190_v18 = vld [vmem:[%s7947_s26 + $0x428] sm:$0xff] }
 0x61b   : > { %v7241_v21 = vsub.f32 %v2552_v15, %v2558_v20  ;;  %v6211_v15 = vld [vmem:[%s7947_s26 + $0x4d0] sm:$0xff]  ;;  %v6210_v20 = vld [vmem:[%s7947_s26 + $0x4c8] sm:$0xff] }
 0x61d   : > { %v2560_v22 = vmul.f32 %v7241_v21, %v7241_v21 }
 0x61f   : > { %v2561_v23 = vsel %vm886_vm0, %v2560_v22, 0.0  ;;  %v6185_v22 = vld [vmem:[%s7947_s26 + $0x400] sm:$0xff] }
 0x620   : > { %2562 = vadd.xlane.f32.xlu1 %v2561_v23  ;;  %v6189_v23 = vld [vmem:[%s7947_s26 + $0x420] sm:$0xff] }
 0x693   : > { %v2563_v45 = vpop.xlane.xlu1 %2562 }
 0x694   : > { %v2564_v44 = vmul.f32 %v2563_v45, %v7185_v37  ;;  %v6224_v45 = vld [vmem:[%s7947_s26 + $0x538] sm:$0xff] }
 0x696   : > { %v2565_v19 = vadd.f32 1e-05, %v2564_v44  ;;  %v6215_v44 = vld [vmem:[%s7947_s26 + $0x4f0] sm:$0xff] }
 0x698   : > { %6407 = vrsqrt.f32 %v2565_v19  ;;  %vm2572_vm8 = vweird.f32 %v2565_v19 }
 0x69e   : > { %v6408_v50 = vpop.eup %6407 }
 0x69f   : > { %v2567_v62 = vmul.f32 %v6408_v50, %v2565_v19  ;;  %vm2573_vm7 = vweird.f32 %v6408_v50  ;;  %v6218_v19 = vld [vmem:[%s7947_s26 + $0x508] sm:$0xff] }
 0x6a0   : > { %vm2574_vm9 = vmor %vm2572_vm8, %vm2573_vm7 }
 0x6a1   : > { %v2568_v51 = vmul.f32 %v6408_v50, %v2567_v62  ;;  %v6231_v62 = vld [vmem:[%s7947_s26 + $0x570] sm:$0xff] }
 0x6a3   : > { %v2569_v63 = vmul.f32 0.5, %v2568_v51  ;;  %v6235_v51 = vld [vmem:[%s7947_s26 + $0x590] sm:$0xff] }
 0x6a5   : > { %v2570_v0 = vsub.f32 1.5, %v2569_v63  ;;  %v6239_v63 = vld [vmem:[%s7947_s26 + $0x5b0] sm:$0xff] }
 0x6a7   : > { %v2571_v1 = vmul.f32 %v6408_v50, %v2570_v0  ;;  %v6230_v0 = vld [vmem:[%s7947_s26 + $0x568] sm:$0xff] }
 0x6a9   : > { %v2575_v3 = vsel %vm2574_vm9, %v6408_v50, %v2571_v1  ;;  %v6240_v50 = vld [vmem:[%s7947_s26 + $0x5b8] sm:$0xff]  ;;  %v6234_v1 = vld [vmem:[%s7947_s26 + $0x588] sm:$0xff] }
 0x6aa   : > { %v2576_v5 = vmul.f32 %v2575_v3, %v7241_v21  ;;  %v6181_v21 = vld [vmem:[%s7947_s26 + $0x3e0] sm:$0xff] }
 0x6ab   : > { %v6229_v3 = vld [vmem:[%s7947_s26 + $0x560] sm:$0xff] }
 0x6ac   : > { %v2580_v6 = vmul.f32 %v6336_v2, %v2576_v5  ;;  %v6238_v2 = vld [vmem:[%s7947_s26 + $0x5a8] sm:$0xff]  ;;  %v6237_v5 = vld [vmem:[%s7947_s26 + $0x5a0] sm:$0xff] }
 0x6ae   : > { %v7350_v7 = vadd.f32 %v6337_v4, %v2580_v6  ;;  %v6233_v4 = vld [vmem:[%s7947_s26 + $0x580] sm:$0xff]  ;;  %v6248_v6 = vld [vmem:[%s7947_s26 + $0x5f8] sm:$0xff] }
 0x6b0   : > { %v7354_v8 = vpack.c.bf16 %v7350_v7, %v7350_v7 }
 0x6b2   : > { %5510 = vmatmul.msk.bf16.vlgmr.msra.gmra.mxu2 %vm886_vm0, %v7354_v8  ;;  %5527 = vmatmul.msk.bf16.vlgmr.msra.gmra.mxu3 %vm886_vm0, %v7354_v8 }
 0x6b3   : > { %5544 = vmatmul.msk.bf16.vlgmr.msra.gmra.mxu0 %vm886_vm0, %v7354_v8  ;;  %5612 = vmatmul.msk.bf16.vlgmr.msra.gmra.mxu1 %vm886_vm0, %v7354_v8 }
 0x6b4   : > { %3166 = vmatpush.bf16.msra.mxu2 %v6184_v58  ;;  %3203 = vmatpush.bf16.msra.mxu3 %v6188_v9  ;;  %v6247_v58 = vld [vmem:[%s7947_s26 + $0x5f0] sm:$0xff]  ;;  %v6246_v9 = vld [vmem:[%s7947_s26 + $0x5e8] sm:$0xff] }
 0x6b5   : > { %3240 = vmatpush.bf16.msra.mxu0 %v6192_v10  ;;  %3425 = vmatpush.bf16.msra.mxu1 %v6212_v11  ;;  %v6245_v10 = vld [vmem:[%s7947_s26 + $0x5e0] sm:$0xff] }
 0x6b8   : > { %3167 = vmatpush.bf16.msra.mxu2 %v6183_v12  ;;  %3204 = vmatpush.bf16.msra.mxu3 %v6187_v13 }
 0x6b9   : > { %3241 = vmatpush.bf16.msra.mxu0 %v6191_v14  ;;  %3426 = vmatpush.bf16.msra.mxu1 %v6211_v15 }
 0x6bc   : > { %3168 = vmatpush.bf16.msra.mxu2 %v6182_v16  ;;  %3205 = vmatpush.bf16.msra.mxu3 %v6186_v17 }
 0x6bd   : > { %3242 = vmatpush.bf16.msra.mxu0 %v6190_v18  ;;  %3427 = vmatpush.bf16.msra.mxu1 %v6210_v20  ;;  %v6343_v20 = vld [vmem:[%s7949_s3 + $0x22] ss:$0 sm:$0xff] }
 0x6c0   : > { %3169 = vmatpush.bf16.msra.mxu2 %v6181_v21  ;;  %3206 = vmatpush.bf16.msra.mxu3 %v6185_v22 }
 0x6c1   : > { %3243 = vmatpush.bf16.msra.mxu0 %v6189_v23  ;;  %3428 = vmatpush.bf16.msra.mxu1 %v6209_v24 }
 0x6c2   : > { %5561 = vmatmul.msk.bf16.vlgmr.msrb.gmra.mxu2 %vm886_vm0, %v7354_v8  ;;  %5578 = vmatmul.msk.bf16.vlgmr.msrb.gmra.mxu3 %vm886_vm0, %v7354_v8 }
 0x6c3   : > { %5595 = vmatmul.msk.bf16.vlgmr.msrb.gmra.mxu0 %vm886_vm0, %v7354_v8  ;;  %5680 = vmatmul.msk.bf16.vlgmr.msrb.gmra.mxu1 %vm886_vm0, %v7354_v8 }
 0x6c4   : > { %3314 = vmatpush.bf16.msrb.mxu2 %v6200_v25  ;;  %3351 = vmatpush.bf16.msrb.mxu3 %v6204_v26 }
 0x6c5   : > { %3388 = vmatpush.bf16.msrb.mxu0 %v6208_v27  ;;  %3573 = vmatpush.bf16.msrb.mxu1 %v6228_v28 }
 0x6c8   : > { %3315 = vmatpush.bf16.msrb.mxu2 %v6199_v29  ;;  %3352 = vmatpush.bf16.msrb.mxu3 %v6203_v30 }
 0x6c9   : > { %3389 = vmatpush.bf16.msrb.mxu0 %v6207_v31  ;;  %3574 = vmatpush.bf16.msrb.mxu1 %v6227_v32 }
 0x6cc   : > { %3316 = vmatpush.bf16.msrb.mxu2 %v6198_v33  ;;  %3353 = vmatpush.bf16.msrb.mxu3 %v6202_v34  ;;  %v6346_v34 = vld [vmem:[%s7949_s3 + $0x21] ss:$0 sm:$0xff] }
 0x6cd   : > { %3390 = vmatpush.bf16.msrb.mxu0 %v6206_v35  ;;  %3575 = vmatpush.bf16.msrb.mxu1 %v6226_v36  ;;  %v6347_v35 = vld [vmem:[%s7949_s3 + $0x26] ss:$0 sm:$0xff] }
 0x6d0   : > { %3317 = vmatpush.bf16.msrb.mxu2 %v6197_v38  ;;  %3354 = vmatpush.bf16.msrb.mxu3 %v6201_v39 }
 0x6d1   : > { %3391 = vmatpush.bf16.msrb.mxu0 %v6205_v40  ;;  %3576 = vmatpush.bf16.msrb.mxu1 %v6225_v41  ;;  %v6349_v41 = vld [vmem:[%s7949_s3 + $0x20] ss:$0 sm:$0xff] }
 0x6d2   : > { %5629 = vmatmul.msk.bf16.vlgmr.msra.gmra.mxu2 %vm886_vm0, %v7354_v8  ;;  %5646 = vmatmul.msk.bf16.vlgmr.msra.gmra.mxu3 %vm886_vm0, %v7354_v8 }
 0x6d3   : > { %5663 = vmatmul.msk.bf16.vlgmr.msra.gmra.mxu0 %vm886_vm0, %v7354_v8  ;;  %5748 = vmatmul.msk.bf16.vlgmr.msra.gmra.mxu1 %vm886_vm0, %v7354_v8 }
 0x6d4   : > { %3462 = vmatpush.bf16.msra.mxu2 %v6216_v42  ;;  %3499 = vmatpush.bf16.msra.mxu3 %v6220_v43  ;;  %v6339_v42 = vld [vmem:[%s7949_s3 + $0x1e] ss:$0 sm:$0xff]  ;;  %v6341_v43 = vld [vmem:[%s7949_s3 + $0x19] ss:$0 sm:$0xff] }
 0x6d5   : > { %3536 = vmatpush.bf16.msra.mxu0 %v6224_v45  ;;  %3721 = vmatpush.bf16.msra.mxu1 %v6244_v46 }
 0x6d8   : > { %3463 = vmatpush.bf16.msra.mxu2 %v6215_v44  ;;  %3500 = vmatpush.bf16.msra.mxu3 %v6219_v47 }
 0x6d9   : > { %3537 = vmatpush.bf16.msra.mxu0 %v6223_v48  ;;  %3722 = vmatpush.bf16.msra.mxu1 %v6243_v49 }
 0x6dc   : > { %3464 = vmatpush.bf16.msra.mxu2 %v6214_v52  ;;  %3501 = vmatpush.bf16.msra.mxu3 %v6218_v19 }
 0x6dd   : > { %3538 = vmatpush.bf16.msra.mxu0 %v6222_v53  ;;  %3723 = vmatpush.bf16.msra.mxu1 %v6242_v54  ;;  %v6340_v54 = vld [vmem:[%s7949_s3 + $0x18] ss:$0 sm:$0xff] }
 0x6e0   : > { %3465 = vmatpush.bf16.msra.mxu2 %v6213_v55  ;;  %3502 = vmatpush.bf16.msra.mxu3 %v6217_v56 }
 0x6e1   : > { %3539 = vmatpush.bf16.msra.mxu0 %v6221_v57  ;;  %3724 = vmatpush.bf16.msra.mxu1 %v6241_v59 }
 0x6e2   : > { %5697 = vmatmul.msk.bf16.vlgmr.msrb.gmra.mxu2 %vm886_vm0, %v7354_v8  ;;  %5714 = vmatmul.msk.bf16.vlgmr.msrb.gmra.mxu3 %vm886_vm0, %v7354_v8 }
 0x6e3   : > { %5731 = vmatmul.msk.bf16.vlgmr.msrb.gmra.mxu0 %vm886_vm0, %v7354_v8  ;;  %5816 = vmatmul.msk.bf16.vlgmr.msrb.gmra.mxu1 %vm886_vm0, %v7354_v8 }
 0x6e4   : > { %3610 = vmatpush.bf16.msrb.mxu2 %v6232_v60  ;;  %3647 = vmatpush.bf16.msrb.mxu3 %v6236_v61 }
 0x6e5   : > { %3684 = vmatpush.bf16.msrb.mxu0 %v6240_v50 }
 0x6e8   : > { %3611 = vmatpush.bf16.msrb.mxu2 %v6231_v62  ;;  %3648 = vmatpush.bf16.msrb.mxu3 %v6235_v51 }
 0x6e9   : > { %3685 = vmatpush.bf16.msrb.mxu0 %v6239_v63  ;;  %v6350_v63 = vld [vmem:[%s7949_s3 + $0x25] ss:$0 sm:$0xff] }
 0x6ec   : > { %3612 = vmatpush.bf16.msrb.mxu2 %v6230_v0  ;;  %3649 = vmatpush.bf16.msrb.mxu3 %v6234_v1  ;;  %v6351_v0 = vld [vmem:[%s7949_s3 + $0x2a] ss:$0 sm:$0xff] }
 0x6ed   : > { %3686 = vmatpush.bf16.msrb.mxu0 %v6238_v2 }
 0x6f0   : > { %3613 = vmatpush.bf16.msrb.mxu2 %v6229_v3  ;;  %3650 = vmatpush.bf16.msrb.mxu3 %v6233_v4 }
 0x6f1   : > { %3687 = vmatpush.bf16.msrb.mxu0 %v6237_v5 }
 0x6f2   : > { %5765 = vmatmul.msk.bf16.vlgmr.msra.gmra.mxu2 %vm886_vm0, %v7354_v8  ;;  %5782 = vmatmul.msk.bf16.vlgmr.msra.gmra.mxu3 %vm886_vm0, %v7354_v8 }
 0x6f3   : > { %5799 = vmatmul.msk.bf16.vlgmr.msra.gmra.mxu0 %vm886_vm0, %v7354_v8  ;;  %5884 = vmatmul.msk.bf16.vlgmr.msra.gmra.mxu1 %vm886_vm0, %v7354_v8 }
 0x6f4   : > { %3758 = vmatpush.bf16.msra.mxu2 %v6248_v6  ;;  %v6352_v6 = vld [vmem:[%s7949_s3 + $0x23] ss:$0 sm:$0xff] }
 0x6f8   : > { %3759 = vmatpush.bf16.msra.mxu2 %v6247_v58  ;;  %v6353_v58 = vld [vmem:[%s7949_s3 + $0x24] ss:$0 sm:$0xff] }
 0x6fc   : > { %3760 = vmatpush.bf16.msra.mxu2 %v6246_v9  ;;  %v6342_v9 = vld [vmem:[%s7949_s3 + $0x1d] ss:$0 sm:$0xff] }
 0x700   : > { %3761 = vmatpush.bf16.msra.mxu2 %v6245_v10 }
 0x702   : > { %5833 = vmatmul.msk.bf16.vlgmr.msrb.gmra.mxu2 %vm886_vm0, %v7354_v8  ;;  %5850 = vmatmul.msk.bf16.vlgmr.msrb.gmra.mxu3 %vm886_vm0, %v7354_v8 }
 0x703   : > { %5867 = vmatmul.msk.bf16.vlgmr.msrb.gmra.mxu0 %vm886_vm0, %v7354_v8 }
 0x712   : > { %5901 = vmatmul.msk.bf16.vlgmr.msra.gmra.mxu2 %vm886_vm0, %v7354_v8  ;;  %v6338_v8 = vld [vmem:[%s7949_s3 + $0x1a] ss:$0 sm:$0xff] }
 0x730   : > { %v2986_v11 = vpop.f32.mrf.mxu0  ;;  %v3134_v12 = vpop.f32.mrf.mxu1 }
 0x731   : > { %v2987_v28 = vadd.f32 %v6338_v8, %v2986_v11  ;;  %v3135_v19 = vadd.f32 %v6339_v42, %v3134_v12  ;;  %v6357_v42 = vld [vmem:[%s7949_s3 + $0x28] ss:$0 sm:$0xff] }
 0x733   : > { %v3769_v31 = vpack.c.bf16 %v2987_v28, %v2987_v28  ;;  %v3773_v60 = vpack.c.bf16 %v3135_v19, %v3135_v19 }
 0x735   : > { %v2912_v13 = vpop.f32.mrf.mxu2  ;;  %v2949_v14 = vpop.f32.mrf.mxu3 }
 0x736   : > { %v2950_v53 = vadd.f32 %v6341_v43, %v2949_v14  ;;  %v2913_v50 = vadd.f32 %v6340_v54, %v2912_v13 }
 0x738   : > { %v2988_v15 = vpop.f32.mrf.mxu0  ;;  %v3136_v16 = vpop.f32.mrf.mxu1  ;;  %v3768_v61 = vpack.c.bf16 %v2950_v53, %v2950_v53  ;;  %v3767_v1 = vpack.c.bf16 %v2913_v50, %v2913_v50  ;;  %v6348_v53 = vld [vmem:[%s7949_s3 + $0x1f] ss:$0 sm:$0xff] }
 0x73d   : > { %v2914_v17 = vpop.f32.mrf.mxu2  ;;  %v2951_v18 = vpop.f32.mrf.mxu3 }
 0x740   : > { %v7599_v21 = vpop.f32.mrf.mxu0  ;;  %v3282_v22 = vpop.f32.mrf.mxu1 }
 0x741   : > { %v3283_v23 = vadd.f32 %v6343_v20, %v3282_v22  ;;  %v3098_v18 = vadd.f32 %v6342_v9, %v7599_v21  ;;  %v6344_v20 = vld [vmem:[%s7949_s3 + $0x1b] ss:$0 sm:$0xff]  ;;  %v6345_v22 = vld [vmem:[%s7949_s3 + $0x1c] ss:$0 sm:$0xff] }
 0x743   : > { %v3777_v24 = vpack.c.bf16 %v3283_v23, %v3283_v23 }
 0x745   : > { %v3833_v25 = vsel %vm1778_vm1, %v3777_v24, 0  ;;  %v7605_v26 = vpop.f32.mrf.mxu2  ;;  %v7607_v27 = vpop.f32.mrf.mxu3 }
 0x746   : > { %3842 = vmatpush.bf16.xpose.msrb.mxu1 %v3833_v25  ;;  %v3024_v21 = vadd.f32 %v6344_v20, %v7605_v26 }
 0x748   : > { %v3099_v29 = vpop.f32.mrf.mxu0  ;;  %v3284_v30 = vpop.f32.mrf.mxu1 }
 0x749   : > { %v3772_v30 = vpack.c.bf16 %v3098_v18, %v3098_v18 }
 0x74d   : > { %5904 = vmatmul.msk.bf16.vlgmr.msrb.gmra.mxu1 %vm1778_vm1, %v3769_v31  ;;  %v3025_v32 = vpop.f32.mrf.mxu2  ;;  %v3062_v33 = vpop.f32.mrf.mxu3  ;;  %v3061_v31 = vadd.f32 %v6345_v22, %v7607_v27  ;;  %v6356_v27 = vld [vmem:[%s7949_s3 + $0x27] ss:$0 sm:$0xff] }
 0x750   : > { %v3245_v36 = vpop.f32.mrf.mxu0  ;;  %v3430_v38 = vpop.f32.mrf.mxu1 }
 0x751   : > { %v3246_v39 = vadd.f32 %v6346_v34, %v3245_v36  ;;  %v3431_v40 = vadd.f32 %v6347_v35, %v3430_v38  ;;  %v6354_v34 = vld [vmem:[%s7949_s3 + $0x29] ss:$0 sm:$0xff]  ;;  %v6355_v35 = vld [vmem:[%s7949_s3 + $0x2e] ss:$0 sm:$0xff]  ;;  %v3770_v36 = vpack.c.bf16 %v3024_v21, %v3024_v21  ;;  %v3771_v38 = vpack.c.bf16 %v3061_v31, %v3061_v31 }
 0x753   : > { %v3776_v45 = vpack.c.bf16 %v3246_v39, %v3246_v39  ;;  %v3781_v46 = vpack.c.bf16 %v3431_v40, %v3431_v40 }
 0x755   : > { %v3814_v44 = vsel %vm1778_vm1, %v3776_v45, 0  ;;  %v3909_v47 = vsel %vm1778_vm1, %v3781_v46, 0  ;;  %v7627_v48 = vpop.f32.mrf.mxu2  ;;  %v3208_v49 = vpop.f32.mrf.mxu3 }
 0x756   : > { %v3209_v52 = vadd.f32 %v6349_v41, %v3208_v49  ;;  %3823 = vmatpush.bf16.xpose.msra.mxu0 %v3814_v44  ;;  %3918 = vmatpush.bf16.xpose.msra.mxu1 %v3909_v47 }
 0x758   : > { %v3775_v55 = vpack.c.bf16 %v3209_v52, %v3209_v52  ;;  %v3247_v56 = vpop.f32.mrf.mxu0  ;;  %v3432_v57 = vpop.f32.mrf.mxu1 }
 0x75a   : > { %v3795_v59 = vsel %vm1778_vm1, %v3775_v55, 0 }
 0x75b   : > { %3804 = vmatpush.bf16.xpose.msra.mxu3 %v3795_v59 }
 0x75d   : > { %5903 = vmatmul.msk.bf16.vlgmr.msra.gmra.mxu0 %vm1778_vm1, %v3768_v61  ;;  %5908 = vmatmul.msk.bf16.vlgmr.msra.gmra.mxu1 %vm1778_vm1, %v3773_v60  ;;  %v3173_v62 = vpop.f32.mrf.mxu2  ;;  %v3210_v51 = vpop.f32.mrf.mxu3  ;;  %v3172_v61 = vadd.f32 %v6348_v53, %v7627_v48 }
 0x75e   : > { %v6358_v51 = vld [vmem:[%s7949_s3 + $0x2d] ss:$0 sm:$0xff] }
 0x760   : > { %v3393_v2 = vpop.f32.mrf.mxu0  ;;  %v3578_v3 = vpop.f32.mrf.mxu1 }
 0x761   : > { %v3394_v4 = vadd.f32 %v6350_v63, %v3393_v2  ;;  %v3579_v5 = vadd.f32 %v6351_v0, %v3578_v3  ;;  %v3774_v63 = vpack.c.bf16 %v3172_v61, %v3172_v61  ;;  %v6359_v2 = vld [vmem:[%s7949_s3 + $0x2b] ss:$0 sm:$0xff]  ;;  %v6360_v3 = vld [vmem:[%s7949_s3 + $0x2c] ss:$0 sm:$0xff] }
 0x762   : > { %5902 = vmatmul.msk.bf16.vlgmr.msra.gmra.mxu3 %vm1778_vm1, %v3767_v1 }
 0x763   : > { %v3780_v10 = vpack.c.bf16 %v3394_v4, %v3394_v4  ;;  %v3785_v11 = vpack.c.bf16 %v3579_v5, %v3579_v5 }
 0x765   : > { %v3890_v12 = vsel %vm1778_vm1, %v3780_v10, 0  ;;  %v4089_v13 = vsel %vm2038_vm2, %v3785_v11, 0  ;;  %v3319_v14 = vpop.f32.mrf.mxu2  ;;  %v3356_v15 = vpop.f32.mrf.mxu3 }
 0x766   : > { %v3320_v16 = vadd.f32 %v6352_v6, %v3319_v14  ;;  %v3357_v17 = vadd.f32 %v6353_v58, %v3356_v15  ;;  %3899 = vmatpush.bf16.xpose.msrb.mxu0 %v3890_v12  ;;  %4098 = vmatpush.bf16.msrb.mxu1 %v4089_v13 }
 0x768   : > { %v3778_v23 = vpack.c.bf16 %v3320_v16, %v3320_v16  ;;  %v3779_v8 = vpack.c.bf16 %v3357_v17, %v3357_v17  ;;  %v3395_v24 = vpop.f32.mrf.mxu0  ;;  %v3580_v25 = vpop.f32.mrf.mxu1  ;;  %v6361_v17 = vld [vmem:[%s7949_s3 + $0x2f] ss:$0 sm:$0xff]  ;;  %s4717_s3 = scalar_lea.sflag [#allocation3], %s564_s27 }
 0x76a   : > { %v3852_v28 = vsel %vm1778_vm1, %v3778_v23, 0  ;;  %v3871_v29 = vsel %vm1778_vm1, %v3779_v8, 0 }
 0x76b   : > { %3861 = vmatpush.bf16.xpose.msrb.mxu2 %v3852_v28  ;;  %3880 = vmatpush.bf16.xpose.msrb.mxu3 %v3871_v29 }
 0x76d   : > { %5907 = vmatmul.msk.bf16.vlgmr.msrb.gmra.mxu0 %vm1778_vm1, %v3772_v30  ;;  %v3321_v32 = vpop.f32.mrf.mxu2  ;;  %v3358_v33 = vpop.f32.mrf.mxu3 }
 0x770   : > { %v3541_v39 = vpop.f32.mrf.mxu0  ;;  %v3726_v40 = vpop.f32.mrf.mxu1 }
 0x771   : > { %v3542_v41 = vadd.f32 %v6354_v34, %v3541_v39  ;;  %v3727_v26 = vadd.f32 %v6355_v35, %v3726_v40 }
 0x772   : > { %5905 = vmatmul.msk.bf16.vlgmr.msrb.gmra.mxu2 %vm1778_vm1, %v3770_v36  ;;  %5906 = vmatmul.msk.bf16.vlgmr.msrb.gmra.mxu3 %vm1778_vm1, %v3771_v38 }
 0x773   : > { %v3784_v43 = vpack.c.bf16 %v3542_v41, %v3542_v41  ;;  %v3789_v45 = vpack.c.bf16 %v3727_v26, %v3727_v26 }
 0x775   : > { %v4070_v46 = vsel %vm2038_vm2, %v3784_v43, 0  ;;  %v4165_v44 = vsel %vm2038_vm2, %v3789_v45, 0  ;;  %v3467_v47 = vpop.f32.mrf.mxu2  ;;  %v3504_v49 = vpop.f32.mrf.mxu3 }
 0x776   : > { %v3468_v52 = vadd.f32 %v6356_v27, %v3467_v47  ;;  %v3505_v19 = vadd.f32 %v6357_v42, %v3504_v49  ;;  %4079 = vmatpush.bf16.msra.mxu0 %v4070_v46  ;;  %4174 = vmatpush.bf16.msra.mxu1 %v4165_v44 }
 0x778   : > { %v3782_v54 = vpack.c.bf16 %v3468_v52, %v3468_v52  ;;  %v3783_v55 = vpack.c.bf16 %v3505_v19, %v3505_v19  ;;  %v3543_v56 = vpop.f32.mrf.mxu0  ;;  %v3728_v57 = vpop.f32.mrf.mxu1 }
 0x77a   : > { %v3928_v59 = vsel %vm1778_vm1, %v3782_v54, 0  ;;  %v4051_v60 = vsel %vm2038_vm2, %v3783_v55, 0 }
 0x77b   : > { %3937 = vmatpush.bf16.xpose.msra.mxu2 %v3928_v59  ;;  %4060 = vmatpush.bf16.msra.mxu3 %v4051_v60 }
 0x77d   : > { %v3469_v50 = vpop.f32.mrf.mxu2  ;;  %v3506_v62 = vpop.f32.mrf.mxu3 }
 0x780   : > { %v3689_v0 = vpop.f32.mrf.mxu0 }
 0x781   : > { %v3690_v1 = vadd.f32 %v6358_v51, %v3689_v0 }
 0x782   : > { %5909 = vmatmul.msk.bf16.vlgmr.msra.gmra.mxu2 %vm1778_vm1, %v3774_v63 }
 0x783   : > { %v3788_v48 = vpack.c.bf16 %v3690_v1, %v3690_v1 }
 0x785   : > { %v4146_v4 = vsel %vm2038_vm2, %v3788_v48, 0  ;;  %v3615_v5 = vpop.f32.mrf.mxu2  ;;  %v3652_v6 = vpop.f32.mrf.mxu3 }
 0x786   : > { %v3616_v58 = vadd.f32 %v6359_v2, %v3615_v5  ;;  %v3653_v9 = vadd.f32 %v6360_v3, %v3652_v6  ;;  %4155 = vmatpush.bf16.msrb.mxu0 %v4146_v4 }
 0x788   : > { %v3786_v10 = vpack.c.bf16 %v3616_v58, %v3616_v58  ;;  %v3787_v11 = vpack.c.bf16 %v3653_v9, %v3653_v9  ;;  %v3691_v12 = vpop.f32.mrf.mxu0 }
 0x78a   : > { %v4108_v13 = vsel %vm2038_vm2, %v3786_v10, 0  ;;  %v4127_v14 = vsel %vm2038_vm2, %v3787_v11, 0 }
 0x78b   : > { %4117 = vmatpush.bf16.msrb.mxu2 %v4108_v13  ;;  %4136 = vmatpush.bf16.msrb.mxu3 %v4127_v14 }
 0x78d   : > { %v3617_v15 = vpop.f32.mrf.mxu2  ;;  %v3654_v16 = vpop.f32.mrf.mxu3 }
 0x795   : > { %v3763_v18 = vpop.f32.mrf.mxu2 }
 0x796   : > { %v3764_v20 = vadd.f32 %v6361_v17, %v3763_v18 }
 0x798   : > { %v3790_v22 = vpack.c.bf16 %v3764_v20, %v3764_v20 }
 0x79a   : > { %v4184_v23 = vsel %vm2038_vm2, %v3790_v22, 0 }
 0x79b   : > { %4193 = vmatpush.bf16.msra.mxu2 %v4184_v23 }
 0x79d   : > { %v3765_v8 = vpop.f32.mrf.mxu2 }
 0x7ca   : > { %v3844_v24 = vpop.f32.mrf.mxu1 }
 0x7cb   : > { %v3945_v38 = vmul.f32 0.35355338, %v3844_v24 }
 0x7cd   : > { %v3957_v40 = vsel %vm1778_vm1, %v3945_v38, -inf }
 0x7d2   : > { %v3846_v25 = vpop.f32.mrf.mxu1 }
 0x7da   : > { %v3825_v28 = vpop.f32.mrf.mxu0  ;;  %v3920_v29 = vpop.f32.mrf.mxu1 }
 0x7db   : > { %v3944_v30 = vmul.f32 0.35355338, %v3825_v28  ;;  %v3949_v19 = vmul.f32 0.35355338, %v3920_v29 }
 0x7dd   : > { %v3954_v21 = vsel %vm1778_vm1, %v3944_v30, -inf  ;;  %v3969_v56 = vsel %vm1778_vm1, %v3949_v19, -inf }
 0x7de   : > { %3955 = vmax.xlane.f32.xlu1 %v3954_v21 }
 0x7e2   : > { %v3827_v31 = vpop.f32.mrf.mxu0  ;;  %v3922_v32 = vpop.f32.mrf.mxu1 }
 0x7e5   : > { %v3806_v33 = vpop.f32.mrf.mxu3 }
 0x7e6   : > { %v3943_v34 = vmul.f32 0.35355338, %v3806_v33 }
 0x7e8   : > { %v3951_v35 = vsel %vm1778_vm1, %v3943_v34, -inf }
 0x7e9   : > { %3952 = vmax.xlane.f32.xlu2 %v3951_v35 }
 0x7ea   : > { %v3901_v36 = vpop.f32.mrf.mxu0 }
 0x7eb   : > { %v3948_v26 = vmul.f32 0.35355338, %v3901_v36 }
 0x7ed   : > { %v3808_v39 = vpop.f32.mrf.mxu3  ;;  %v3966_v46 = vsel %vm1778_vm1, %v3948_v26, -inf }
 0x7f1   : > { %3958 = vmax.xlane.f32.xlu2 %v3957_v40 }
 0x7f2   : > { %v3903_v41 = vpop.f32.mrf.mxu0 }
 0x7f5   : > { %v3863_v27 = vpop.f32.mrf.mxu2  ;;  %v3882_v42 = vpop.f32.mrf.mxu3 }
 0x7f6   : > { %v3946_v43 = vmul.f32 0.35355338, %v3863_v27  ;;  %v3947_v44 = vmul.f32 0.35355338, %v3882_v42 }
 0x7f8   : > { %v3960_v45 = vsel %vm1778_vm1, %v3946_v43, -inf  ;;  %v3963_v52 = vsel %vm1778_vm1, %v3947_v44, -inf }
 0x7f9   : > { %3961 = vmax.xlane.f32.xlu0 %v3960_v45  ;;  %3967 = vmax.xlane.f32.xlu2 %v3966_v46 }
 0x7fd   : > { %v3865_v47 = vpop.f32.mrf.mxu2  ;;  %v3884_v49 = vpop.f32.mrf.mxu3 }
 0x801   : > { %3964 = vmax.xlane.f32.xlu0 %v3963_v52 }
 0x805   : > { %v3939_v53 = vpop.f32.mrf.mxu2 }
 0x806   : > { %v3950_v54 = vmul.f32 0.35355338, %v3939_v53 }
 0x808   : > { %v3972_v55 = vsel %vm1778_vm1, %v3950_v54, -inf }
 0x809   : > { %3973 = vmax.xlane.f32.xlu1 %v3972_v55  ;;  %3970 = vmax.xlane.f32.xlu0 %v3969_v56 }
 0x80d   : > { %v3941_v57 = vpop.f32.mrf.mxu2 }
 0x851   : > { %v3956_v59 = vpop.xlane.xlu1 %3955 }
 0x852   : > { %v3976_v60 = vsub.f32 %v3944_v30, %v3956_v59 }
 0x854   : > { %v3985_v61 = vmul.f32 1.442695, %v3976_v60 }
 0x856   : > { %6409 = vpow2.f32 %v3985_v61 }
 0x85c   : > { %v6410_v50 = vpop.eup %6409  ;;  %v3953_v62 = vpop.xlane.xlu2 %3952 }
 0x85d   : > { %v3975_v51 = vsub.f32 %v3943_v34, %v3953_v62  ;;  %v4002_v63 = vsel %vm1778_vm1, %v6410_v50, 0.0 }
 0x85e   : > { %4003 = vadd.xlane.f32.xlu0 %v4002_v63 }
 0x85f   : > { %v3983_v0 = vmul.f32 1.442695, %v3975_v51 }
 0x861   : > { %6411 = vpow2.f32 %v3983_v0 }
 0x864   : > { %v3959_v1 = vpop.xlane.xlu2 %3958 }
 0x865   : > { %v3977_v2 = vsub.f32 %v3945_v38, %v3959_v1 }
 0x867   : > { %v6412_v3 = vpop.eup %6411  ;;  %v3987_v48 = vmul.f32 1.442695, %v3977_v2 }
 0x868   : > { %v3999_v4 = vsel %vm1778_vm1, %v6412_v3, 0.0 }
 0x869   : > { %6413 = vpow2.f32 %v3987_v48  ;;  %4000 = vadd.xlane.f32.xlu1 %v3999_v4  ;;  %v5918_v4 = vld [vmem:[%s7950_s4 + $0x20] sm:$0xf] }
 0x86c   : > { %v3962_v5 = vpop.xlane.xlu0 %3961  ;;  %v3968_v6 = vpop.xlane.xlu2 %3967 }
 0x86d   : > { %v3978_v58 = vsub.f32 %v3946_v43, %v3962_v5  ;;  %v3980_v9 = vsub.f32 %v3948_v26, %v3968_v6  ;;  %v4220_v5 = vsel %vm2038_vm2, %v5918_v4, 0  ;;  %v5920_v6 = vld [vmem:[%s7950_s4 + $0x28] sm:$0xf] }
 0x86f   : > { %v6414_v10 = vpop.eup %6413  ;;  %v3989_v11 = vmul.f32 1.442695, %v3978_v58  ;;  %v3993_v12 = vmul.f32 1.442695, %v3980_v9  ;;  %v4258_v58 = vsel %vm2038_vm2, %v5920_v6, 0 }
 0x870   : > { %v4005_v13 = vsel %vm1778_vm1, %v6414_v10, 0.0  ;;  %v5923_v9 = vld [vmem:[%s7950_s4 + $0x34] sm:$0xf] }
 0x871   : > { %6415 = vpow2.f32 %v3989_v11  ;;  %4006 = vadd.xlane.f32.xlu1 %v4005_v13 }
 0x872   : > { %6417 = vpow2.f32 %v3993_v12  ;;  %v5921_v12 = vld [vmem:[%s7950_s4 + $0x2c] sm:$0xf] }
 0x874   : > { %v3965_v14 = vpop.xlane.xlu0 %3964 }
 0x875   : > { %v3979_v15 = vsub.f32 %v3947_v44, %v3965_v14  ;;  %v4277_v14 = vsel %vm2038_vm2, %v5921_v12, 0 }
 0x877   : > { %v6416_v16 = vpop.eup %6415  ;;  %v3991_v17 = vmul.f32 1.442695, %v3979_v15 }
 0x878   : > { %v6418_v18 = vpop.eup %6417  ;;  %v4008_v20 = vsel %vm1778_vm1, %v6416_v16, 0.0 }
 0x879   : > { %6419 = vpow2.f32 %v3991_v17  ;;  %4009 = vadd.xlane.f32.xlu2 %v4008_v20  ;;  %v4014_v22 = vsel %vm1778_vm1, %v6418_v18, 0.0 }
 0x87a   : > { %4015 = vadd.xlane.f32.xlu1 %v4014_v22  ;;  %v5925_v22 = vld [vmem:[%s7950_s4 + $0x3c] sm:$0xf] }
 0x87c   : > { %v3974_v23 = vpop.xlane.xlu1 %3973  ;;  %v3971_v8 = vpop.xlane.xlu0 %3970 }
 0x87d   : > { %v3982_v24 = vsub.f32 %v3950_v54, %v3974_v23  ;;  %v3981_v25 = vsub.f32 %v3949_v19, %v3971_v8  ;;  %v4353_v8 = vsel %vm2038_vm2, %v5925_v22, 0 }
 0x87f   : > { %v6420_v28 = vpop.eup %6419  ;;  %v3997_v29 = vmul.f32 1.442695, %v3982_v24  ;;  %v3995_v30 = vmul.f32 1.442695, %v3981_v25 }
 0x880   : > { %v4011_v21 = vsel %vm1778_vm1, %v6420_v28, 0.0 }
 0x881   : > { %6421 = vpow2.f32 %v3997_v29  ;;  %4012 = vadd.xlane.f32.xlu2 %v4011_v21 }
 0x882   : > { %6423 = vpow2.f32 %v3995_v30 }
 0x887   : > { %v6422_v31 = vpop.eup %6421 }
 0x888   : > { %v6424_v32 = vpop.eup %6423  ;;  %v4020_v33 = vsel %vm1778_vm1, %v6422_v31, 0.0 }
 0x889   : > { %4021 = vadd.xlane.f32.xlu0 %v4020_v33  ;;  %v4017_v34 = vsel %vm1778_vm1, %v6424_v32, 0.0 }
 0x88a   : > { %4018 = vadd.xlane.f32.xlu2 %v4017_v34 }
 0x8d1   : > { %v4004_v35 = vpop.xlane.xlu0 %4003 }
 0x8d2   : > { %6425 = vrcp.f32 %v4004_v35 }
 0x8d8   : > { %v6426_v36 = vpop.eup %6425 }
 0x8d9   : > { %v4032_v38 = vmul.f32 %v6426_v36, %v6410_v50 }
 0x8db   : > { %v4040_v39 = vpack.c.bf16 %v4032_v38, %v4032_v38 }
 0x8dc   : > { %v4001_v40 = vpop.xlane.xlu1 %4000 }
 0x8dd   : > { %6427 = vrcp.f32 %v4001_v40  ;;  %5911 = vmatmul.msk.bf16.vlgmr.msra.gmra.mxu0 %vm1778_vm1, %v4040_v39 }
 0x8e3   : > { %v6428_v41 = vpop.eup %6427 }
 0x8e4   : > { %v4031_v26 = vmul.f32 %v6428_v41, %v6412_v3  ;;  %v4007_v27 = vpop.xlane.xlu1 %4006  ;;  %v5919_v3 = vld [vmem:[%s7950_s4 + $0x24] sm:$0xf] }
 0x8e5   : > { %6429 = vrcp.f32 %v4007_v27  ;;  %v4239_v48 = vsel %vm2038_vm2, %v5919_v3, 0 }
 0x8e6   : > { %v4039_v42 = vpack.c.bf16 %v4031_v26, %v4031_v26  ;;  %4248 = vmatpush.bf16.msra.mxu0 %v4239_v48 }
 0x8e8   : > { %5910 = vmatmul.msk.bf16.vlgmr.msra.gmra.mxu3 %vm1778_vm1, %v4039_v42 }
 0x8e9   : > { %4229 = vmatpush.bf16.msra.mxu3 %v4220_v5 }
 0x8eb   : > { %v6430_v43 = vpop.eup %6429 }
 0x8ec   : > { %v4033_v45 = vmul.f32 %v6430_v43, %v6414_v10  ;;  %v4010_v46 = vpop.xlane.xlu2 %4009  ;;  %v4315_v10 = vsel %vm2038_vm2, %v5923_v9, 0  ;;  %v6362_v9 = vld [vmem:[%s7909_s5 + $0x1] ss:$0 sm:$0xff] }
 0x8ed   : > { %v4016_v44 = vpop.xlane.xlu1 %4015  ;;  %6431 = vrcp.f32 %v4010_v46 }
 0x8ee   : > { %v4041_v47 = vpack.c.bf16 %v4033_v45, %v4033_v45  ;;  %6433 = vrcp.f32 %v4016_v44 }
 0x8f0   : > { %5912 = vmatmul.msk.bf16.vlgmr.msrb.gmra.mxu1 %vm1778_vm1, %v4041_v47 }
 0x8f1   : > { %4267 = vmatpush.bf16.msrb.mxu1 %v4258_v58 }
 0x8f3   : > { %v6432_v49 = vpop.eup %6431 }
 0x8f4   : > { %v6434_v52 = vpop.eup %6433  ;;  %v4034_v19 = vmul.f32 %v6432_v49, %v6416_v16  ;;  %v4013_v53 = vpop.xlane.xlu2 %4012  ;;  %v5922_v16 = vld [vmem:[%s7950_s4 + $0x30] sm:$0xf] }
 0x8f5   : > { %v4036_v54 = vmul.f32 %v6434_v52, %v6418_v18  ;;  %6435 = vrcp.f32 %v4013_v53  ;;  %v4296_v17 = vsel %vm2038_vm2, %v5922_v16, 0  ;;  %v5924_v18 = vld [vmem:[%s7950_s4 + $0x38] sm:$0xf]  ;;  %s6462_s4 = scalar_lea.hbm %s6461_s0, 8 }
 0x8f6   : > { %v4042_v55 = vpack.c.bf16 %v4034_v19, %v4034_v19  ;;  %v4334_v20 = vsel %vm2038_vm2, %v5924_v18, 0  ;;  %p6463_p11 = scmp.ne.s32.totalorder %s6461_s0, %s6462_s4 }
 0x8f7   : > { %v4044_v56 = vpack.c.bf16 %v4036_v54, %v4036_v54 }
 0x8f8   : > { %5913 = vmatmul.msk.bf16.vlgmr.msrb.gmra.mxu2 %vm1778_vm1, %v4042_v55  ;;  %p6464_p12 = pnand %p6463_p11, %p6644_p5 }
 0x8f9   : > { %5915 = vmatmul.msk.bf16.vlgmr.msrb.gmra.mxu0 %vm1778_vm1, %v4044_v56  ;;  %4286 = vmatpush.bf16.msrb.mxu2 %v4277_v14 }
 0x8fa   : > { %4324 = vmatpush.bf16.msrb.mxu0 %v4315_v10  ;;  %p6465_p13 = pneg %p6464_p12 }
 0x8fb   : > { %v6436_v57 = vpop.eup %6435 }
 0x8fc   : > { %v4035_v59 = vmul.f32 %v6436_v57, %v6420_v28  ;;  %v4022_v60 = vpop.xlane.xlu0 %4021 }
 0x8fd   : > { %v4019_v61 = vpop.xlane.xlu2 %4018  ;;  %6437 = vrcp.f32 %v4022_v60 }
 0x8fe   : > { %v4043_v50 = vpack.c.bf16 %v4035_v59, %v4035_v59  ;;  %6439 = vrcp.f32 %v4019_v61 }
 0x900   : > { %5914 = vmatmul.msk.bf16.vlgmr.msrb.gmra.mxu3 %vm1778_vm1, %v4043_v50 }
 0x901   : > { %4305 = vmatpush.bf16.msrb.mxu3 %v4296_v17 }
 0x903   : > { %v6438_v62 = vpop.eup %6437 }
 0x904   : > { %v6440_v51 = vpop.eup %6439  ;;  %v4038_v63 = vmul.f32 %v6438_v62, %v6422_v31 }
 0x905   : > { %v4037_v0 = vmul.f32 %v6440_v51, %v6424_v32 }
 0x906   : > { %v4046_v1 = vpack.c.bf16 %v4038_v63, %v4038_v63 }
 0x907   : > { %v4045_v2 = vpack.c.bf16 %v4037_v0, %v4037_v0 }
 0x908   : > { %5917 = vmatmul.msk.bf16.vlgmr.msra.gmra.mxu2 %vm1778_vm1, %v4046_v1 }
 0x909   : > { %5916 = vmatmul.msk.bf16.vlgmr.msra.gmra.mxu1 %vm1778_vm1, %v4045_v2  ;;  %4362 = vmatpush.bf16.msra.mxu2 %v4353_v8  ;;  %v6250_v8 = vld [vmem:[%s7912_s8 + $0x28] sm:$0xff] }
 0x90a   : > { %4343 = vmatpush.bf16.msra.mxu1 %v4334_v20 }
 0x95a   : > { %v4081_v11 = vpop.f32.mrf.mxu0 }
 0x95b   : > { %v4200_v13 = vpack.c.bf16 %v4081_v11, %v4081_v11 }
 0x95d   : > { %5927 = vmatmul.msk.bf16.vlgmr.msra.gmra.mxu0 %vm1778_vm1, %v4200_v13 }
 0x962   : > { %v4083_v15 = vpop.f32.mrf.mxu0 }
 0x96b   : > { %v4062_v23 = vpop.f32.mrf.mxu3 }
 0x96c   : > { %v4199_v24 = vpack.c.bf16 %v4062_v23, %v4062_v23  ;;  %v6252_v23 = vld [vmem:[%s7912_s8 + $0x38] sm:$0xff] }
 0x96d   : > { %v4100_v25 = vpop.f32.mrf.mxu1 }
 0x96e   : > { %v4201_v28 = vpack.c.bf16 %v4100_v25, %v4100_v25  ;;  %5926 = vmatmul.msk.bf16.vlgmr.msra.gmra.mxu3 %vm1778_vm1, %v4199_v24  ;;  %v6249_v24 = vld [vmem:[%s7912_s8 + $0x20] sm:$0xff]  ;;  %v6260_v25 = vld [vmem:[%s7914_s10 + $0x78] sm:$0xff] }
 0x96f   : > { %4470 = vmatpush.bf16.msra.mxu3 %v6252_v23  ;;  %4551 = vmatpush.bf16.msra.mxu0 %v6260_v25  ;;  %v6261_v23 = vld [vmem:[%s7918_s14] sm:$0xff] }
 0x970   : > { %5928 = vmatmul.msk.bf16.vlgmr.msrb.gmra.mxu1 %vm1778_vm1, %v4201_v28  ;;  %v6265_v25 = vld [vmem:[%s7920_s16] sm:$0xff] }
 0x973   : > { %v4064_v29 = vpop.f32.mrf.mxu3 }
 0x975   : > { %v4102_v30 = vpop.f32.mrf.mxu1 }
 0x976   : > { %v4157_v21 = vpop.f32.mrf.mxu0  ;;  %v6259_v30 = vld [vmem:[%s7914_s10 + $0x70] sm:$0xff] }
 0x977   : > { %v4204_v31 = vpack.c.bf16 %v4157_v21, %v4157_v21  ;;  %4552 = vmatpush.bf16.msra.mxu0 %v6259_v30 }
 0x979   : > { %5931 = vmatmul.msk.bf16.vlgmr.msrb.gmra.mxu0 %vm1778_vm1, %v4204_v31  ;;  %v6258_v31 = vld [vmem:[%s7914_s10 + $0x68] sm:$0xff] }
 0x97b   : > { %v4119_v32 = vpop.f32.mrf.mxu2  ;;  %4553 = vmatpush.bf16.msra.mxu0 %v6258_v31 }
 0x97c   : > { %v4202_v33 = vpack.c.bf16 %v4119_v32, %v4119_v32  ;;  %v6257_v32 = vld [vmem:[%s7914_s10 + $0x60] sm:$0xff] }
 0x97e   : > { %v4159_v34 = vpop.f32.mrf.mxu0  ;;  %5929 = vmatmul.msk.bf16.vlgmr.msrb.gmra.mxu2 %vm1778_vm1, %v4202_v33 }
 0x97f   : > { %4554 = vmatpush.bf16.msra.mxu0 %v6257_v32 }
 0x983   : > { %v4121_v35 = vpop.f32.mrf.mxu2  ;;  %v4138_v36 = vpop.f32.mrf.mxu3 }
 0x984   : > { %v4203_v38 = vpack.c.bf16 %v4138_v36, %v4138_v36  ;;  %v6256_v35 = vld [vmem:[%s7914_s10 + $0x58] sm:$0xff] }
 0x985   : > { %4555 = vmatpush.bf16.msra.mxu0 %v6256_v35 }
 0x986   : > { %v4176_v39 = vpop.f32.mrf.mxu1  ;;  %5930 = vmatmul.msk.bf16.vlgmr.msrb.gmra.mxu3 %vm1778_vm1, %v4203_v38 }
 0x987   : > { %v4205_v40 = vpack.c.bf16 %v4176_v39, %v4176_v39  ;;  %v6255_v39 = vld [vmem:[%s7914_s10 + $0x50] sm:$0xff] }
 0x989   : > { %5932 = vmatmul.msk.bf16.vlgmr.msra.gmra.mxu1 %vm1778_vm1, %v4205_v40  ;;  %4556 = vmatpush.bf16.msra.mxu0 %v6255_v39 }
 0x98b   : > { %v4140_v41 = vpop.f32.mrf.mxu3  ;;  %v4195_v26 = vpop.f32.mrf.mxu2 }
 0x98c   : > { %v4206_v27 = vpack.c.bf16 %v4195_v26, %v4195_v26  ;;  %v6363_v26 = vld [vmem:[%s7910_s6 + $0x1] ss:$0 sm:$0xff] }
 0x98e   : > { %v4178_v42 = vpop.f32.mrf.mxu1  ;;  %5933 = vmatmul.msk.bf16.vlgmr.msra.gmra.mxu2 %vm1778_vm1, %v4206_v27 }
 0x98f   : > { %v6364_v42 = vld [vmem:[%s7911_s7 + $0x1] ss:$0 sm:$0xff] }
 0x993   : > { %v4197_v43 = vpop.f32.mrf.mxu2 }
 0x9da   : > { %v4250_v45 = vpop.f32.mrf.mxu0 }
 0x9db   : > { %v4369_v56 = vsel %vm886_vm0, %v4250_v45, 0.0 }
 0x9e2   : > { %v4252_v46 = vpop.f32.mrf.mxu0 }
 0x9ed   : > { %v4269_v44 = vpop.f32.mrf.mxu1 }
 0x9ee   : > { %v4371_v59 = vsel %vm886_vm0, %v4269_v44, 0.0 }
 0x9f1   : > { %v4231_v47 = vpop.f32.mrf.mxu3 }
 0x9f2   : > { %v4368_v54 = vsel %vm886_vm0, %v4231_v47, 0.0  ;;  %v6254_v47 = vld [vmem:[%s7914_s10 + $0x48] sm:$0xff] }
 0x9f3   : > { %v4370_v57 = vadd.f32 %v4369_v56, %v4368_v54  ;;  %4557 = vmatpush.bf16.msra.mxu0 %v6254_v47 }
 0x9f5   : > { %v4271_v49 = vpop.f32.mrf.mxu1  ;;  %v4372_v50 = vadd.f32 %v4371_v59, %v4370_v57  ;;  %v6366_v57 = vld [vmem:[%s7915_s11 + $0x1] ss:$0 sm:$0xff] }
 0x9f6   : > { %v4326_v52 = vpop.f32.mrf.mxu0  ;;  %v6253_v49 = vld [vmem:[%s7914_s10 + $0x40] sm:$0xff] }
 0x9f7   : > { %v4377_v2 = vsel %vm886_vm0, %v4326_v52, 0.0  ;;  %4558 = vmatpush.bf16.msra.mxu0 %v6253_v49  ;;  %v6365_v52 = vld [vmem:[%s7913_s9 + $0x1] ss:$0 sm:$0xff] }
 0x9f9   : > { %v4233_v19 = vpop.f32.mrf.mxu3 }
 0x9fe   : > { %v4328_v53 = vpop.f32.mrf.mxu0 }
 0xa01   : > { %v4288_v55 = vpop.f32.mrf.mxu2 }
 0xa02   : > { %v4373_v60 = vsel %vm886_vm0, %v4288_v55, 0.0 }
 0xa03   : > { %v4374_v62 = vadd.f32 %v4373_v60, %v4372_v50 }
 0xa06   : > { %v4345_v61 = vpop.f32.mrf.mxu1 }
 0xa07   : > { %v4379_v4 = vsel %vm886_vm0, %v4345_v61, 0.0 }
 0xa09   : > { %v4290_v51 = vpop.f32.mrf.mxu2  ;;  %v4307_v63 = vpop.f32.mrf.mxu3 }
 0xa0a   : > { %v4375_v0 = vsel %vm886_vm0, %v4307_v63, 0.0 }
 0xa0b   : > { %v4376_v1 = vadd.f32 %v4375_v0, %v4374_v62 }
 0xa0d   : > { %v4378_v3 = vadd.f32 %v4377_v2, %v4376_v1 }
 0xa0e   : > { %v4347_v48 = vpop.f32.mrf.mxu1 }
 0xa0f   : > { %v4380_v58 = vadd.f32 %v4379_v4, %v4378_v3  ;;  %v6264_v3 = vld [vmem:[%s7918_s14 + $0x18] sm:$0xff]  ;;  %v6263_v4 = vld [vmem:[%s7918_s14 + $0x10] sm:$0xff] }
 0xa10   : > { %4667 = vmatpush.bf16.msrb.mxu2 %v6264_v3 }
 0xa11   : > { %v4309_v5 = vpop.f32.mrf.mxu3  ;;  %v4364_v6 = vpop.f32.mrf.mxu2 }
 0xa12   : > { %v4381_v10 = vsel %vm886_vm0, %v4364_v6, 0.0 }
 0xa13   : > { %v4382_v11 = vadd.f32 %v4381_v10, %v4380_v58  ;;  %v6262_v58 = vld [vmem:[%s7918_s14 + $0x8] sm:$0xff] }
 0xa14   : > { %4668 = vmatpush.bf16.msrb.mxu2 %v6263_v4 }
 0xa15   : > { %v4388_v12 = vadd.f32 %v6362_v9, %v4382_v11 }
 0xa17   : > { %v4389_v13 = vadd.f32 %v4388_v12, %v7350_v7  ;;  %v6251_v7 = vld [vmem:[%s7912_s8 + $0x30] sm:$0xff] }
 0xa18   : > { %4471 = vmatpush.bf16.msra.mxu3 %v6251_v7  ;;  %4669 = vmatpush.bf16.msrb.mxu2 %v6262_v58  ;;  %v6266_v7 = vld [vmem:[%s7920_s16 + $0x8] sm:$0xff] }
 0xa19   : > { %v4366_v14 = vpop.f32.mrf.mxu2  ;;  %v4394_v15 = vsel %vm886_vm0, %v4389_v13, 0.0 }
 0xa1a   : > { %4395 = vadd.xlane.f32.xlu0 %v4394_v15 }
 0xa1c   : > { %4472 = vmatpush.bf16.msra.mxu3 %v6250_v8  ;;  %4670 = vmatpush.bf16.msrb.mxu2 %v6261_v23 }
 0xa20   : > { %4473 = vmatpush.bf16.msra.mxu3 %v6249_v24 }
 0xa24   : > { %4708 = vmatpush.bf16.msrb.mxu3 %v6266_v7 }
 0xa28   : > { %4709 = vmatpush.bf16.msrb.mxu3 %v6265_v25 }
 0xa8d   : > { %v4396_v16 = vpop.xlane.xlu0 %4395 }
 0xa8e   : > { %v4397_v17 = vmul.f32 %v4396_v16, %v7185_v37 }
 0xa90   : > { %v4398_v18 = vsub.f32 %v4389_v13, %v4397_v17  ;;  %v6368_v17 = vld [vmem:[%s7917_s13 + $0x1] ss:$0 sm:$0xff] }
 0xa92   : > { %v4399_v20 = vmul.f32 %v4398_v18, %v4398_v18 }
 0xa94   : > { %v4400_v22 = vsel %vm886_vm0, %v4399_v20, 0.0 }
 0xa95   : > { %4401 = vadd.xlane.f32.xlu1 %v4400_v22  ;;  %v4599_v22 = vld [vmem:[%s7951_s2] sm:$0xff]  ;;  %s6466_s2 = scalar_lea.hbm %s7922_s18, 16 }
 0xa96   : > { %p6468_p1 = scmp.lt.s32.totalorder %s6466_s2, %s6462_s4 }
 0xa98   : > { %p6469_p2 = por %p6468_p1, %p6467_p0 }
 0xa9a   : > { %p6470_p3 = pnand %p6469_p2, %p6465_p13 }
 0xb08   : > { %v4402_v28 = vpop.xlane.xlu1 %4401 }
 0xb09   : > { %v4403_v29 = vmul.f32 %v4402_v28, %v7185_v37  ;;  %v6369_v28 = vld [vmem:[%s7919_s15] ss:$0 sm:$0xff] }
 0xb0b   : > { %v4404_v21 = vadd.f32 1e-05, %v4403_v29 }
 0xb0d   : > { %6441 = vrsqrt.f32 %v4404_v21  ;;  %vm4411_vm11 = vweird.f32 %v4404_v21 }
 0xb13   : > { %v6442_v33 = vpop.eup %6441 }
 0xb14   : > { %v4406_v34 = vmul.f32 %v6442_v33, %v4404_v21  ;;  %vm4412_vm10 = vweird.f32 %v6442_v33 }
 0xb15   : > { %vm4413_vm12 = vmor %vm4411_vm11, %vm4412_vm10 }
 0xb16   : > { %v4407_v36 = vmul.f32 %v6442_v33, %v4406_v34 }
 0xb18   : > { %v4408_v38 = vmul.f32 0.5, %v4407_v36 }
 0xb1a   : > { %v4409_v40 = vsub.f32 1.5, %v4408_v38 }
 0xb1c   : > { %v4410_v41 = vmul.f32 %v6442_v33, %v4409_v40 }
 0xb1e   : > { %v4414_v27 = vsel %vm4413_vm12, %v6442_v33, %v4410_v41  ;;  %v6370_v33 = vld [vmem:[%s7953_s19] ss:$0 sm:$0xff] }
 0xb1f   : > { %v4415_v43 = vmul.f32 %v4414_v27, %v4398_v18 }
 0xb21   : > { %v4419_v45 = vmul.f32 %v6363_v26, %v4415_v43 }
 0xb23   : > { %v4423_v46 = vadd.f32 %v6364_v42, %v4419_v45 }
 0xb25   : > { %v4424_v44 = vpack.c.bf16 %v4423_v46, %v4423_v46 }
 0xb27   : > { %5962 = vmatmul.msk.bf16.vlgmr.msra.gmra.mxu3 %vm886_vm0, %v4424_v44 }
 0xbaa   : > { %v4475_v19 = vpop.f32.mrf.mxu3 }
 0xbab   : > { %v4476_v53 = vadd.f32 %v6365_v52, %v4475_v19 }
 0xbad   : > { %v4479_v54 = vmax.f32 %v4476_v53, 0.0 }
 0xbaf   : > { %v4480_v55 = vpack.c.bf16 %v4479_v54, %v4479_v54 }
 0xbb1   : > { %4559 = vmatmul.bf16.vlgmr.msra.gmra.mxu0 %v4480_v55 }
 0xbb2   : > { %v4477_v56 = vpop.f32.mrf.mxu3 }
 0xc2e   : > { %v4560_v59 = vpop.f32.mrf.mxu0 }
 0xc2f   : > { %v4561_v60 = vadd.f32 %v6366_v57, %v4560_v59 }
 0xc31   : > { %v4564_v61 = vadd.f32 %v4561_v60, %v4423_v46 }
 0xc33   : > { %v4569_v50 = vsel %vm886_vm0, %v4564_v61, 0.0 }
 0xc34   : > { %4570 = vadd.xlane.f32.xlu2 %v4569_v50 }
 0xc36   : > { %v4562_v62 = vpop.f32.mrf.mxu0 }
 0xca7   : > { %v4571_v51 = vpop.xlane.xlu2 %4570 }
 0xca8   : > { %v4572_v63 = vmul.f32 %v4571_v51, %v7185_v37 }
 0xcaa   : > { %v4573_v0 = vsub.f32 %v4564_v61, %v4572_v63 }
 0xcac   : > { %v4574_v1 = vmul.f32 %v4573_v0, %v4573_v0 }
 0xcae   : > { %v4575_v2 = vsel %vm886_vm0, %v4574_v1, 0.0 }
 0xcaf   : > { %4576 = vadd.xlane.f32.xlu0 %v4575_v2 }
 0xd22   : > { %v4577_v48 = vpop.xlane.xlu0 %4576 }
 0xd23   : > { %v4578_v5 = vmul.f32 %v4577_v48, %v7185_v37  ;;  %v6367_v37 = vld [vmem:[%s7916_s12 + $0x1] ss:$0 sm:$0xff] }
 0xd25   : > { %v4579_v6 = vadd.f32 1e-05, %v4578_v5 }
 0xd27   : > { %6443 = vrsqrt.f32 %v4579_v6  ;;  %vm4586_vm14 = vweird.f32 %v4579_v6 }
 0xd2d   : > { %v6444_v9 = vpop.eup %6443 }
 0xd2e   : > { %v4581_v10 = vmul.f32 %v6444_v9, %v4579_v6  ;;  %vm4587_vm13 = vweird.f32 %v6444_v9 }
 0xd2f   : > { %vm4588_vm15 = vmor %vm4586_vm14, %vm4587_vm13 }
 0xd30   : > { %v4582_v11 = vmul.f32 %v6444_v9, %v4581_v10 }
 0xd32   : > { %v4583_v12 = vmul.f32 0.5, %v4582_v11 }
 0xd34   : > { %v4584_v13 = vsub.f32 1.5, %v4583_v12 }
 0xd36   : > { %v4585_v14 = vmul.f32 %v6444_v9, %v4584_v13 }
 0xd38   : > { %v4589_v15 = vsel %vm4588_vm15, %v6444_v9, %v4585_v14 }
 0xd39   : > { %v4590_v16 = vmul.f32 %v4589_v15, %v4573_v0 }
 0xd3b   : > { %v4594_v18 = vmul.f32 %v6367_v37, %v4590_v16 }
 0xd3d   : > { %v4598_v20 = vadd.f32 %v6368_v17, %v4594_v18 }
 0xd3f   : > { %4618 = vmatpush.msrb.mxu1 %v4598_v20 }
 0xd40   : > { %6014 = vmatmul.msk.f32.vlgmr.msrb.gmra.mxu1 %vm1778_vm1, %v4599_v22  ;;  %vm4698_vm1 = vcmask 261120  }
 0xdbd   : > { %v4620_v8 = vpop.f32.mrf.mxu1 }
 0xdbe   : > { %v4623_v24 = vpack.c.bf16 %v4620_v8, %v4620_v8 }
 0xdc0   : > { %6031 = vmatmul.msk.bf16.vlgmr.msrb.gmra.mxu2 %vm886_vm0, %v4623_v24 }
 0xe43   : > { %v4672_v29 = vpop.f32.mrf.mxu2 }
 0xe44   : > { %v4673_v30 = vadd.f32 %v6369_v28, %v4672_v29 }
 0xe46   : > { %v4676_v21 = vmax.f32 %v4673_v30, 0.0 }
 0xe48   : > { %v4677_v31 = vpack.c.bf16 %v4676_v21, %v4676_v21 }
 0xe4a   : > { %6040 = vmatmul.msk.bf16.vlgmr.msrb.gmra.mxu3 %vm4698_vm1, %v4677_v31 }
 0xe4b   : > { %v4674_v32 = vpop.f32.mrf.mxu2 }
 0xecd   : > { %v4711_v34 = vpop.f32.mrf.mxu3 }
 0xece   : > { %v4712_v35 = vadd.f32 %v6370_v33, %v4711_v34 }
 0xed0   : > { %4715 = vst [vmem:[%s566_s29] sm:$0xff] %v4712_v35 }
 0xed1   : > { %6473 = shalt.err (!%p6470_p3)
}
 0xed2   : > { %6267 = dma.vmem_to_hbm [thread:$0]  (%p6644_p5), %s4730_s23, 128, %s4732_s24, %s4717_s3  }
 0xed5   : > { %v4713_v36 = vpop.f32.mrf.mxu3 }
 0xed6 PF: > { %s7954_s27 = sld [smem:[#allocation7_spill]] }
 0xed7   : > { %s7955_s1 = sld [smem:[#allocation5_spill]] }
 0xedc   : > { %p6273_p4 = scmp.ge.s32.totalorder %s7954_s27, 2 }
 0xedd   : > { %s4743_s19 = sand.u32 1, %s7955_s1  }
 0xede   : > { %p6270_p7 = pnand %p6273_p4, %p6648_p6  ;;  %s4744_s29 = scalar_lea.sflag [#allocation3], %s4743_s19 }
 0xee0   : > { %p6271_p8 = pneg %p6270_p7 }
 0xee2   : > { %6491 = dma.done.wait (%p6271_p8), %s4744_s29, 128  }
 0xee3   : > { %6493 = vsyncadd (%p6271_p8), %s4744_s29, 4294967168  ;;  %s7957_s30 = sld [smem:[#allocation8_spill]]  ;;  %s7960_s27 = smov %s6500_s28 }
 0xee4   : > { %s7958_s4 = sld [smem:[#allocation6_spill]] }
 0xee5   : > { %s7959_s29 = sld [smem:[#allocation9_spill]] }
 0xee9   : > { %p28_p9 = scmp.ge.s32.totalorder %s7957_s30, 4  }
 0xeea   : > { %s7961_s28 = smov %s7958_s4 }
 0xeeb   :  { %30 = sbr.rel (!%p28_p9) target bundleno = 10 (0xa), region = 139 }
 0xef0   :  { %4750 = vsyncpa [#allocation3], 1 }
 0xef1   :  { %4752 = vsyncpa [#allocation3 + $0x1], 1 }

</bundles_post_ra>
